<compile_context>
chip_gen: v6e
topology: v6e:2x2x1
jax: 0.10.0
libtpu: 0.0.40
codegen_flags: <defaults>
</compile_context>

<pallas_src>
import math
import jax
import jax.numpy as jnp
from jax import lax
from jax.experimental import pallas as pl
from jax.experimental.pallas import tpu as pltpu

D_MODEL = 32
N_HEADS = 4
D_HEAD = D_MODEL // N_HEADS
D_FF = 64
N_LAYERS = 2
LN_EPS = 1e-5
LANE = 128
NEG_INF = -1e9


def _round_up(n, m):
    return ((n + m - 1) // m) * m


# ------------------------- in-kernel building blocks -------------------------

def _mm(a_f32, w_bf16):
    """MXU matmul: f32 activation cast to bf16, bf16 weight, f32 accumulation."""
    return jnp.dot(a_f32.astype(jnp.bfloat16), w_bf16,
                   preferred_element_type=jnp.float32)


def _layernorm(x, g, b):
    """x: [S, D] f32; g/b: [1, D] f32.  Two-pass (numerically safe) variance."""
    mu = jnp.mean(x, axis=-1, keepdims=True)
    d = x - mu
    var = jnp.mean(d * d, axis=-1, keepdims=True)
    return d * lax.rsqrt(var + LN_EPS) * g + b


def _mha(q, k, v, bias, wo, bo):
    """Multi-head attention, per-head W_O accumulation (no concat, no .T).

    q: [Sq, D] f32, k/v: [Sk, D] f32, bias: f32 broadcastable to [Sq, Sk]
    (0 where attend, -1e9 where masked), wo: [H, Dh, D] bf16, bo: [1, D] f32.
    Returns [Sq, D] f32.
    """
    scale = 1.0 / math.sqrt(D_HEAD)
    acc = None
    for h in range(N_HEADS):
        sl = slice(h * D_HEAD, (h + 1) * D_HEAD)
        q_h = q[:, sl].astype(jnp.bfloat16)              # [Sq, Dh]
        k_h = k[:, sl].astype(jnp.bfloat16)              # [Sk, Dh]
        v_h = v[:, sl].astype(jnp.bfloat16)              # [Sk, Dh]
        # Contract over D_HEAD -> no explicit XLU transpose of K.
        s = lax.dot_general(q_h, k_h, (((1,), (1,)), ((), ())),
                            preferred_element_type=jnp.float32) * scale
        s = s + bias
        s = s - jnp.max(s, axis=-1, keepdims=True)
        p = jnp.exp(s)
        p = p * pl.reciprocal(jnp.sum(p, axis=-1, keepdims=True), approx=True)
        head = jnp.dot(p.astype(jnp.bfloat16), v_h,
                       preferred_element_type=jnp.float32)       # [Sq, Dh]
        contrib = _mm(head, wo[h])                               # [Sq, D]
        acc = contrib if acc is None else acc + contrib
    return acc + bo


# ------------------------------ fused kernel --------------------------------

def _encdec_kernel(xs_ref, xt_ref, srow_ref, tmask_ref,
                   # encoder (stacked over layers)
                   e_wqkv, e_bqkv, e_wo, e_bo,
                   e_ln1g, e_ln1b, e_ln2g, e_ln2b,
                   e_w1, e_b1, e_w2, e_b2,
                   # decoder (stacked over layers)
                   d_swqkv, d_sbqkv, d_swo, d_sbo,
                   d_cwq, d_cbq, d_cwkv, d_cbkv, d_cwo, d_cbo,
                   d_ln1g, d_ln1b, d_ln2g, d_ln2b, d_ln3g, d_ln3b,
                   d_w1, d_b1, d_w2, d_b2,
                   # final projection (lane-dense padded vocab)
                   pw, pb,
                   o_ref):
    """One batch element: full encoder stack + full decoder stack + projection."""
    # Additive attention biases, computed once per batch element.
    src_bias = jnp.where(srow_ref[0] > 0.0, 0.0, NEG_INF)    # [1, Ss]
    tgt_bias = jnp.where(tmask_ref[0] > 0.0, 0.0, NEG_INF)   # [St, St]

    # --------------------------- encoder stack ---------------------------
    x = xs_ref[0]                                             # [Ss, D] f32
    for l in range(N_LAYERS):
        qkv = _mm(x, e_wqkv[l]) + e_bqkv[l]                   # [Ss, 3D]
        attn = _mha(qkv[:, :D_MODEL],
                    qkv[:, D_MODEL:2 * D_MODEL],
                    qkv[:, 2 * D_MODEL:],
                    src_bias, e_wo[l], e_bo[l])
        x = _layernorm(x + attn, e_ln1g[l], e_ln1b[l])
        h = jnp.maximum(_mm(x, e_w1[l]) + e_b1[l], 0.0)
        f = _mm(h, e_w2[l]) + e_b2[l]
        x = _layernorm(x + f, e_ln2g[l], e_ln2b[l])
    enc = x                                                   # stays on-chip

    # --------------------------- decoder stack ---------------------------
    y = xt_ref[0]                                             # [St, D] f32
    for l in range(N_LAYERS):
        # masked self-attention
        qkv = _mm(y, d_swqkv[l]) + d_sbqkv[l]                 # [St, 3D]
        attn = _mha(qkv[:, :D_MODEL],
                    qkv[:, D_MODEL:2 * D_MODEL],
                    qkv[:, 2 * D_MODEL:],
                    tgt_bias, d_swo[l], d_sbo[l])
        y = _layernorm(y + attn, d_ln1g[l], d_ln1b[l])
        # cross-attention over the (VMEM-resident) encoder output
        q = _mm(y, d_cwq[l]) + d_cbq[l]                       # [St, D]
        kv = _mm(enc, d_cwkv[l]) + d_cbkv[l]                  # [Ss, 2D]
        attn = _mha(q, kv[:, :D_MODEL], kv[:, D_MODEL:],
                    src_bias, d_cwo[l], d_cbo[l])
        y = _layernorm(y + attn, d_ln2g[l], d_ln2b[l])
        # FFN
        h = jnp.maximum(_mm(y, d_w1[l]) + d_b1[l], 0.0)
        f = _mm(h, d_w2[l]) + d_b2[l]
        y = _layernorm(y + f, d_ln3g[l], d_ln3b[l])

    # -------- final projection to (padded, lane-dense) vocab --------
    o_ref[0] = _mm(y, pw[...]) + pb[...]


# ------------------------------ pallas wrapper ------------------------------

def _rep_spec(arr):
    """Full-array block replicated across the batch grid axis."""
    nd = arr.ndim
    return pl.BlockSpec(arr.shape, lambda b, _nd=nd: (0,) * _nd)


def run_encdec(xs, xt, srow, tmask, enc_packed, dec_packed, v_pad):
    B, Ss, D = xs.shape
    St = xt.shape[1]
    packed = tuple(enc_packed) + tuple(dec_packed)
    in_specs = [
        pl.BlockSpec((1, Ss, D), lambda b: (b, 0, 0)),
        pl.BlockSpec((1, St, D), lambda b: (b, 0, 0)),
        pl.BlockSpec((1, 1, Ss), lambda b: (b, 0, 0)),
        pl.BlockSpec((1, St, St), lambda b: (b, 0, 0)),
    ] + [_rep_spec(a) for a in packed]
    return pl.pallas_call(
        _encdec_kernel,
        out_shape=jax.ShapeDtypeStruct((B, St, v_pad), jnp.float32),
        grid=(B,),
        in_specs=in_specs,
        out_specs=pl.BlockSpec((1, St, v_pad), lambda b: (b, 0, 0)),
        compiler_params=pltpu.CompilerParams(
            dimension_semantics=("parallel",)),
    )(xs, xt, srow, tmask, *packed)


# ----------------------------- weight packing --------------------------------

def _qkv_w(a):
    return jnp.concatenate([a["wq"], a["wk"], a["wv"]], axis=1)


def _qkv_b(a):
    return jnp.concatenate([a["bq"], a["bk"], a["bv"]])[None, :]


def _kv_w(a):
    return jnp.concatenate([a["wk"], a["wv"]], axis=1)


def _kv_b(a):
    return jnp.concatenate([a["bk"], a["bv"]])[None, :]


def _wo_heads(w):
    # [D, D] -> [H, Dh, D] so the kernel indexes per-head output slices.
    return w.reshape(N_HEADS, D_HEAD, D_MODEL)


def pack_encoder_params(enc):
    L = enc["layers"]
    wqkv = jnp.stack([_qkv_w(lp["attn"]) for lp in L]).astype(jnp.bfloat16)
    bqkv = jnp.stack([_qkv_b(lp["attn"]) for lp in L])
    wo = jnp.stack([_wo_heads(lp["attn"]["wo"]) for lp in L]).astype(jnp.bfloat16)
    bo = jnp.stack([lp["attn"]["bo"][None, :] for lp in L])
    ln1g = jnp.stack([lp["ln1_g"][None, :] for lp in L])
    ln1b = jnp.stack([lp["ln1_b"][None, :] for lp in L])
    ln2g = jnp.stack([lp["ln2_g"][None, :] for lp in L])
    ln2b = jnp.stack([lp["ln2_b"][None, :] for lp in L])
    w1 = jnp.stack([lp["w1"] for lp in L]).astype(jnp.bfloat16)
    b1 = jnp.stack([lp["b1"][None, :] for lp in L])
    w2 = jnp.stack([lp["w2"] for lp in L]).astype(jnp.bfloat16)
    b2 = jnp.stack([lp["b2"][None, :] for lp in L])
    return (wqkv, bqkv, wo, bo, ln1g, ln1b, ln2g, ln2b, w1, b1, w2, b2)


def pack_decoder_params(dec, v_pad):
    L = dec["layers"]
    swqkv = jnp.stack([_qkv_w(lp["self_attn"]) for lp in L]).astype(jnp.bfloat16)
    sbqkv = jnp.stack([_qkv_b(lp["self_attn"]) for lp in L])
    swo = jnp.stack([_wo_heads(lp["self_attn"]["wo"]) for lp in L]).astype(jnp.bfloat16)
    sbo = jnp.stack([lp["self_attn"]["bo"][None, :] for lp in L])

    cwq = jnp.stack([lp["cross_attn"]["wq"] for lp in L]).astype(jnp.bfloat16)
    cbq = jnp.stack([lp["cross_attn"]["bq"][None, :] for lp in L])
    cwkv = jnp.stack([_kv_w(lp["cross_attn"]) for lp in L]).astype(jnp.bfloat16)
    cbkv = jnp.stack([_kv_b(lp["cross_attn"]) for lp in L])
    cwo = jnp.stack([_wo_heads(lp["cross_attn"]["wo"]) for lp in L]).astype(jnp.bfloat16)
    cbo = jnp.stack([lp["cross_attn"]["bo"][None, :] for lp in L])

    ln1g = jnp.stack([lp["ln1_g"][None, :] for lp in L])
    ln1b = jnp.stack([lp["ln1_b"][None, :] for lp in L])
    ln2g = jnp.stack([lp["ln2_g"][None, :] for lp in L])
    ln2b = jnp.stack([lp["ln2_b"][None, :] for lp in L])
    ln3g = jnp.stack([lp["ln3_g"][None, :] for lp in L])
    ln3b = jnp.stack([lp["ln3_b"][None, :] for lp in L])

    w1 = jnp.stack([lp["w1"] for lp in L]).astype(jnp.bfloat16)
    b1 = jnp.stack([lp["b1"][None, :] for lp in L])
    w2 = jnp.stack([lp["w2"] for lp in L]).astype(jnp.bfloat16)
    b2 = jnp.stack([lp["b2"][None, :] for lp in L])

    V = dec["proj_w"].shape[1]
    pw = jnp.pad(dec["proj_w"], ((0, 0), (0, v_pad - V))).astype(jnp.bfloat16)
    pb = jnp.pad(dec["proj_b"], (0, v_pad - V))[None, :]

    return (swqkv, sbqkv, swo, sbo, cwq, cbq, cwkv, cbkv, cwo, cbo,
            ln1g, ln1b, ln2g, ln2b, ln3g, ln3b, w1, b1, w2, b2, pw, pb)


# ---------------------------- model (JAX glue) -------------------------------

def positional_encoding(seq_len, d_model):
    # Scatter-free interleave of sin/cos (constant-folded under jit).
    pos = jnp.arange(seq_len, dtype=jnp.float32)[:, None]
    i = jnp.arange(d_model // 2, dtype=jnp.float32)[None, :]
    angle = pos / jnp.power(10000.0, 2.0 * i / d_model)
    pe = jnp.stack([jnp.sin(angle), jnp.cos(angle)], axis=-1)  # [S, D/2, 2]
    return pe.reshape(seq_len, d_model)


def embed(emb_table, tokens):
    # TODO(synk): could fold this gather + PE add into the fused kernel via a
    # VMEM-resident table + jnp.take; kept as host-side glue for robustness.
    B, S = tokens.shape
    x = jnp.take(emb_table, tokens, axis=0) * math.sqrt(D_MODEL)
    return x + positional_encoding(S, D_MODEL)[None, :, :]


def transformer_encoder_decoder(params, src, tgt, src_msk, tgt_msk):
    enc_p = params["encoder"]
    dec_p = params["decoder"]
    B, Ss = src.shape
    _, St = tgt.shape

    x_src = embed(enc_p["emb"], src)                       # [B, Ss, D]
    x_tgt = embed(dec_p["emb"], tgt)                       # [B, St, D]

    # Compact masks: src padding mask as a single per-key row, tgt mask full.
    src_row = src_msk.astype(jnp.float32).reshape(B, 1, Ss)            # [B,1,Ss]
    tgt_mask = jnp.broadcast_to(tgt_msk.astype(jnp.float32)[:, 0],
                                (B, St, St))                            # [B,St,St]

    tgt_vocab = dec_p["proj_w"].shape[1]
    v_pad = _round_up(tgt_vocab, LANE)

    logits = run_encdec(x_src, x_tgt, src_row, tgt_mask,
                        pack_encoder_params(enc_p),
                        pack_decoder_params(dec_p, v_pad),
                        v_pad)
    return logits[:, :, :tgt_vocab]


# ------------------------------ init params ----------------------------------

def _dense(key, d_in, d_out):
    return (0.02 * jax.random.normal(key, (d_in, d_out), jnp.float32),
            jnp.zeros((d_out,), jnp.float32))


def _attn_params(key):
    ks = jax.random.split(key, 4)
    wq, bq = _dense(ks[0], D_MODEL, D_MODEL)
    wk, bk = _dense(ks[1], D_MODEL, D_MODEL)
    wv, bv = _dense(ks[2], D_MODEL, D_MODEL)
    wo, bo = _dense(ks[3], D_MODEL, D_MODEL)
    return dict(wq=wq, bq=bq, wk=wk, bk=bk, wv=wv, bv=bv, wo=wo, bo=bo)


def _enc_layer_params(key):
    ks = jax.random.split(key, 3)
    w1, b1 = _dense(ks[1], D_MODEL, D_FF)
    w2, b2 = _dense(ks[2], D_FF, D_MODEL)
    return dict(attn=_attn_params(ks[0]),
                ln1_g=jnp.ones((D_MODEL,)), ln1_b=jnp.zeros((D_MODEL,)),
                ln2_g=jnp.ones((D_MODEL,)), ln2_b=jnp.zeros((D_MODEL,)),
                w1=w1, b1=b1, w2=w2, b2=b2)


def _dec_layer_params(key):
    ks = jax.random.split(key, 4)
    w1, b1 = _dense(ks[2], D_MODEL, D_FF)
    w2, b2 = _dense(ks[3], D_FF, D_MODEL)
    return dict(self_attn=_attn_params(ks[0]), cross_attn=_attn_params(ks[1]),
                ln1_g=jnp.ones((D_MODEL,)), ln1_b=jnp.zeros((D_MODEL,)),
                ln2_g=jnp.ones((D_MODEL,)), ln2_b=jnp.zeros((D_MODEL,)),
                ln3_g=jnp.ones((D_MODEL,)), ln3_b=jnp.zeros((D_MODEL,)),
                w1=w1, b1=b1, w2=w2, b2=b2)


def init_params(key, src_vocab, tgt_vocab):
    ks = jax.random.split(key, 6)
    enc = dict(
        emb=0.02 * jax.random.normal(ks[0], (src_vocab, D_MODEL), jnp.float32),
        layers=[_enc_layer_params(k) for k in jax.random.split(ks[1], N_LAYERS)],
    )
    proj_w, proj_b = _dense(ks[4], D_MODEL, tgt_vocab)
    dec = dict(
        emb=0.02 * jax.random.normal(ks[2], (tgt_vocab, D_MODEL), jnp.float32),
        layers=[_dec_layer_params(k) for k in jax.random.split(ks[3], N_LAYERS)],
        proj_w=proj_w, proj_b=proj_b,
    )
    return dict(encoder=enc, decoder=dec)


# --------------------------------- main ---------------------------------------

if __name__ == "__main__":
    SRC_VOCAB, TGT_VOCAB = 50, 60
    B, S_SRC, S_TGT = 2, 8, 8

    key = jax.random.PRNGKey(0)
    k_p, k_src, k_tgt = jax.random.split(key, 3)

    params = init_params(k_p, SRC_VOCAB, TGT_VOCAB)

    src = jax.random.randint(k_src, (B, S_SRC), 0, SRC_VOCAB, dtype=jnp.int32)
    tgt = jax.random.randint(k_tgt, (B, S_TGT), 0, TGT_VOCAB, dtype=jnp.int32)
    # src padding mask (all valid here) and causal target mask.
    src_msk = jnp.ones((B, 1, 1, S_SRC), jnp.float32)
    tgt_msk = jnp.broadcast_to(
        jnp.tril(jnp.ones((S_TGT, S_TGT), jnp.float32))[None, None],
        (B, 1, S_TGT, S_TGT))

    fwd = jax.jit(transformer_encoder_decoder)
    out = fwd(params, src, tgt, src_msk, tgt_msk)
    out = jax.block_until_ready(out)

    assert out.shape == (B, S_TGT, TGT_VOCAB)
    assert jnp.all(jnp.isfinite(out))
    print("KERNEL_OK")
</pallas_src>

<mosaic_0001>
module attributes {stable_mosaic.version = 11 : i64} {
  func.func @_encdec_kernel(%arg0: i32, %arg1: memref<1x8x32xf32, #tpu.memory_space<vmem>>, %arg2: memref<1x8x32xf32, #tpu.memory_space<vmem>>, %arg3: memref<1x1x8xf32, #tpu.memory_space<vmem>>, %arg4: memref<1x8x8xf32, #tpu.memory_space<vmem>>, %arg5: memref<2x32x96xbf16, #tpu.memory_space<vmem>>, %arg6: memref<2x1x96xf32, #tpu.memory_space<vmem>>, %arg7: memref<2x4x8x32xbf16, #tpu.memory_space<vmem>>, %arg8: memref<2x1x32xf32, #tpu.memory_space<vmem>>, %arg9: memref<2x1x32xf32, #tpu.memory_space<vmem>>, %arg10: memref<2x1x32xf32, #tpu.memory_space<vmem>>, %arg11: memref<2x1x32xf32, #tpu.memory_space<vmem>>, %arg12: memref<2x1x32xf32, #tpu.memory_space<vmem>>, %arg13: memref<2x32x64xbf16, #tpu.memory_space<vmem>>, %arg14: memref<2x1x64xf32, #tpu.memory_space<vmem>>, %arg15: memref<2x64x32xbf16, #tpu.memory_space<vmem>>, %arg16: memref<2x1x32xf32, #tpu.memory_space<vmem>>, %arg17: memref<2x32x96xbf16, #tpu.memory_space<vmem>>, %arg18: memref<2x1x96xf32, #tpu.memory_space<vmem>>, %arg19: memref<2x4x8x32xbf16, #tpu.memory_space<vmem>>, %arg20: memref<2x1x32xf32, #tpu.memory_space<vmem>>, %arg21: memref<2x32x32xbf16, #tpu.memory_space<vmem>>, %arg22: memref<2x1x32xf32, #tpu.memory_space<vmem>>, %arg23: memref<2x32x64xbf16, #tpu.memory_space<vmem>>, %arg24: memref<2x1x64xf32, #tpu.memory_space<vmem>>, %arg25: memref<2x4x8x32xbf16, #tpu.memory_space<vmem>>, %arg26: memref<2x1x32xf32, #tpu.memory_space<vmem>>, %arg27: memref<2x1x32xf32, #tpu.memory_space<vmem>>, %arg28: memref<2x1x32xf32, #tpu.memory_space<vmem>>, %arg29: memref<2x1x32xf32, #tpu.memory_space<vmem>>, %arg30: memref<2x1x32xf32, #tpu.memory_space<vmem>>, %arg31: memref<2x1x32xf32, #tpu.memory_space<vmem>>, %arg32: memref<2x1x32xf32, #tpu.memory_space<vmem>>, %arg33: memref<2x32x64xbf16, #tpu.memory_space<vmem>>, %arg34: memref<2x1x64xf32, #tpu.memory_space<vmem>>, %arg35: memref<2x64x32xbf16, #tpu.memory_space<vmem>>, %arg36: memref<2x1x32xf32, #tpu.memory_space<vmem>>, %arg37: memref<32x128xbf16, #tpu.memory_space<vmem>>, %arg38: memref<1x128xf32, #tpu.memory_space<vmem>>, %arg39: memref<1x8x128xf32, #tpu.memory_space<vmem>>) attributes {dimension_semantics = [#tpu.dimension_semantics<parallel>], iteration_bounds = array<i64: 2>, scalar_prefetch = 0 : i64, scratch_operands = 0 : i64, tpu.core_type = #tpu.core_type<tc>, window_params = [{transform_indices = @transform_0, window_bounds = array<i64: 1, 8, 32>}, {transform_indices = @transform_1, window_bounds = array<i64: 1, 8, 32>}, {transform_indices = @transform_2, window_bounds = array<i64: 1, 1, 8>}, {transform_indices = @transform_3, window_bounds = array<i64: 1, 8, 8>}, {pipeline_mode = #tpu.pipeline_mode<synchronous>, transform_indices = @transform_4, window_bounds = array<i64: 2, 32, 96>}, {pipeline_mode = #tpu.pipeline_mode<synchronous>, transform_indices = @transform_5, window_bounds = array<i64: 2, 1, 96>}, {pipeline_mode = #tpu.pipeline_mode<synchronous>, transform_indices = @transform_6, window_bounds = array<i64: 2, 4, 8, 32>}, {pipeline_mode = #tpu.pipeline_mode<synchronous>, transform_indices = @transform_7, window_bounds = array<i64: 2, 1, 32>}, {pipeline_mode = #tpu.pipeline_mode<synchronous>, transform_indices = @transform_8, window_bounds = array<i64: 2, 1, 32>}, {pipeline_mode = #tpu.pipeline_mode<synchronous>, transform_indices = @transform_9, window_bounds = array<i64: 2, 1, 32>}, {pipeline_mode = #tpu.pipeline_mode<synchronous>, transform_indices = @transform_10, window_bounds = array<i64: 2, 1, 32>}, {pipeline_mode = #tpu.pipeline_mode<synchronous>, transform_indices = @transform_11, window_bounds = array<i64: 2, 1, 32>}, {pipeline_mode = #tpu.pipeline_mode<synchronous>, transform_indices = @transform_12, window_bounds = array<i64: 2, 32, 64>}, {pipeline_mode = #tpu.pipeline_mode<synchronous>, transform_indices = @transform_13, window_bounds = array<i64: 2, 1, 64>}, {pipeline_mode = #tpu.pipeline_mode<synchronous>, transform_indices = @transform_14, window_bounds = array<i64: 2, 64, 32>}, {pipeline_mode = #tpu.pipeline_mode<synchronous>, transform_indices = @transform_15, window_bounds = array<i64: 2, 1, 32>}, {pipeline_mode = #tpu.pipeline_mode<synchronous>, transform_indices = @transform_16, window_bounds = array<i64: 2, 32, 96>}, {pipeline_mode = #tpu.pipeline_mode<synchronous>, transform_indices = @transform_17, window_bounds = array<i64: 2, 1, 96>}, {pipeline_mode = #tpu.pipeline_mode<synchronous>, transform_indices = @transform_18, window_bounds = array<i64: 2, 4, 8, 32>}, {pipeline_mode = #tpu.pipeline_mode<synchronous>, transform_indices = @transform_19, window_bounds = array<i64: 2, 1, 32>}, {pipeline_mode = #tpu.pipeline_mode<synchronous>, transform_indices = @transform_20, window_bounds = array<i64: 2, 32, 32>}, {pipeline_mode = #tpu.pipeline_mode<synchronous>, transform_indices = @transform_21, window_bounds = array<i64: 2, 1, 32>}, {pipeline_mode = #tpu.pipeline_mode<synchronous>, transform_indices = @transform_22, window_bounds = array<i64: 2, 32, 64>}, {pipeline_mode = #tpu.pipeline_mode<synchronous>, transform_indices = @transform_23, window_bounds = array<i64: 2, 1, 64>}, {pipeline_mode = #tpu.pipeline_mode<synchronous>, transform_indices = @transform_24, window_bounds = array<i64: 2, 4, 8, 32>}, {pipeline_mode = #tpu.pipeline_mode<synchronous>, transform_indices = @transform_25, window_bounds = array<i64: 2, 1, 32>}, {pipeline_mode = #tpu.pipeline_mode<synchronous>, transform_indices = @transform_26, window_bounds = array<i64: 2, 1, 32>}, {pipeline_mode = #tpu.pipeline_mode<synchronous>, transform_indices = @transform_27, window_bounds = array<i64: 2, 1, 32>}, {pipeline_mode = #tpu.pipeline_mode<synchronous>, transform_indices = @transform_28, window_bounds = array<i64: 2, 1, 32>}, {pipeline_mode = #tpu.pipeline_mode<synchronous>, transform_indices = @transform_29, window_bounds = array<i64: 2, 1, 32>}, {pipeline_mode = #tpu.pipeline_mode<synchronous>, transform_indices = @transform_30, window_bounds = array<i64: 2, 1, 32>}, {pipeline_mode = #tpu.pipeline_mode<synchronous>, transform_indices = @transform_31, window_bounds = array<i64: 2, 1, 32>}, {pipeline_mode = #tpu.pipeline_mode<synchronous>, transform_indices = @transform_32, window_bounds = array<i64: 2, 32, 64>}, {pipeline_mode = #tpu.pipeline_mode<synchronous>, transform_indices = @transform_33, window_bounds = array<i64: 2, 1, 64>}, {pipeline_mode = #tpu.pipeline_mode<synchronous>, transform_indices = @transform_34, window_bounds = array<i64: 2, 64, 32>}, {pipeline_mode = #tpu.pipeline_mode<synchronous>, transform_indices = @transform_35, window_bounds = array<i64: 2, 1, 32>}, {pipeline_mode = #tpu.pipeline_mode<synchronous>, transform_indices = @transform_36, window_bounds = array<i64: 32, 128>}, {pipeline_mode = #tpu.pipeline_mode<synchronous>, transform_indices = @transform_37, window_bounds = array<i64: 1, 128>}, {transform_indices = @transform_38, window_bounds = array<i64: 1, 8, 128>}]} {
    %c0 = arith.constant 0 : index
    %c0_0 = arith.constant 0 : index
    %c0_1 = arith.constant 0 : index
    %0 = vector.load %arg3[%c0, %c0_0, %c0_1] : memref<1x1x8xf32, #tpu.memory_space<vmem>>, vector<1x1x8xf32>
    %1 = vector.shape_cast %0 : vector<1x1x8xf32> to vector<1x8xf32>
    %cst = arith.constant 0.000000e+00 : f32
    %2 = vector.broadcast %cst : f32 to vector<1x8xf32>
    %3 = arith.cmpf ogt, %1, %2 : vector<1x8xf32>
    %cst_2 = arith.constant 0.000000e+00 : f32
    %cst_3 = arith.constant -1.000000e+09 : f32
    %4 = vector.broadcast %cst_2 : f32 to vector<1x8xf32>
    %5 = vector.broadcast %cst_3 : f32 to vector<1x8xf32>
    %6 = arith.select %3, %4, %5 : vector<1x8xi1>, vector<1x8xf32>
    %c0_4 = arith.constant 0 : index
    %c0_5 = arith.constant 0 : index
    %c0_6 = arith.constant 0 : index
    %7 = vector.load %arg4[%c0_4, %c0_5, %c0_6] : memref<1x8x8xf32, #tpu.memory_space<vmem>>, vector<1x8x8xf32>
    %8 = vector.shape_cast %7 : vector<1x8x8xf32> to vector<8x8xf32>
    %cst_7 = arith.constant 0.000000e+00 : f32
    %9 = vector.broadcast %cst_7 : f32 to vector<8x8xf32>
    %10 = arith.cmpf ogt, %8, %9 : vector<8x8xf32>
    %cst_8 = arith.constant 0.000000e+00 : f32
    %cst_9 = arith.constant -1.000000e+09 : f32
    %11 = vector.broadcast %cst_8 : f32 to vector<8x8xf32>
    %12 = vector.broadcast %cst_9 : f32 to vector<8x8xf32>
    %13 = arith.select %10, %11, %12 : vector<8x8xi1>, vector<8x8xf32>
    %c0_10 = arith.constant 0 : index
    %c0_11 = arith.constant 0 : index
    %c0_12 = arith.constant 0 : index
    %14 = vector.load %arg1[%c0_10, %c0_11, %c0_12] : memref<1x8x32xf32, #tpu.memory_space<vmem>>, vector<1x8x32xf32>
    %15 = vector.shape_cast %14 : vector<1x8x32xf32> to vector<8x32xf32>
    %c0_13 = arith.constant 0 : index
    %c0_14 = arith.constant 0 : index
    %c0_15 = arith.constant 0 : index
    %16 = vector.load %arg5[%c0_13, %c0_14, %c0_15] : memref<2x32x96xbf16, #tpu.memory_space<vmem>>, vector<1x32x96xbf16>
    %17 = vector.shape_cast %16 : vector<1x32x96xbf16> to vector<32x96xbf16>
    %18 = arith.truncf %15 : vector<8x32xf32> to vector<8x32xbf16>
    %cst_16 = arith.constant dense<0.000000e+00> : vector<8x96xf32>
    %19 = tpu.matmul %18, %17, %cst_16 {dimension_numbers = #tpu.dot_dimension_numbers<[1], [0], [0], [1], [0, 0, 1, 1], [], []>} : vector<8x32xbf16>, vector<32x96xbf16>, vector<8x96xf32> -> vector<8x96xf32>
    %c0_17 = arith.constant 0 : index
    %c0_18 = arith.constant 0 : index
    %c0_19 = arith.constant 0 : index
    %20 = vector.load %arg6[%c0_17, %c0_18, %c0_19] : memref<2x1x96xf32, #tpu.memory_space<vmem>>, vector<1x1x96xf32>
    %21 = vector.shape_cast %20 : vector<1x1x96xf32> to vector<1x96xf32>
    %22 = vector.broadcast %21 : vector<1x96xf32> to vector<8x96xf32>
    %23 = arith.addf %19, %22 : vector<8x96xf32>
    %24 = vector.extract_strided_slice %23 {offsets = [0, 0], sizes = [8, 32], strides = [1, 1]} : vector<8x96xf32> to vector<8x32xf32>
    %25 = vector.extract_strided_slice %23 {offsets = [0, 32], sizes = [8, 32], strides = [1, 1]} : vector<8x96xf32> to vector<8x32xf32>
    %26 = vector.extract_strided_slice %23 {offsets = [0, 64], sizes = [8, 32], strides = [1, 1]} : vector<8x96xf32> to vector<8x32xf32>
    %c0_20 = arith.constant 0 : index
    %c0_21 = arith.constant 0 : index
    %c0_22 = arith.constant 0 : index
    %c0_23 = arith.constant 0 : index
    %27 = vector.load %arg7[%c0_20, %c0_21, %c0_22, %c0_23] : memref<2x4x8x32xbf16, #tpu.memory_space<vmem>>, vector<1x4x8x32xbf16>
    %28 = vector.shape_cast %27 : vector<1x4x8x32xbf16> to vector<4x8x32xbf16>
    %c0_24 = arith.constant 0 : index
    %c0_25 = arith.constant 0 : index
    %c0_26 = arith.constant 0 : index
    %29 = vector.load %arg8[%c0_24, %c0_25, %c0_26] : memref<2x1x32xf32, #tpu.memory_space<vmem>>, vector<1x1x32xf32>
    %30 = vector.shape_cast %29 : vector<1x1x32xf32> to vector<1x32xf32>
    %31 = vector.extract_strided_slice %24 {offsets = [0, 0], sizes = [8, 8], strides = [1, 1]} : vector<8x32xf32> to vector<8x8xf32>
    %32 = arith.truncf %31 : vector<8x8xf32> to vector<8x8xbf16>
    %33 = vector.extract_strided_slice %25 {offsets = [0, 0], sizes = [8, 8], strides = [1, 1]} : vector<8x32xf32> to vector<8x8xf32>
    %34 = arith.truncf %33 : vector<8x8xf32> to vector<8x8xbf16>
    %35 = vector.extract_strided_slice %26 {offsets = [0, 0], sizes = [8, 8], strides = [1, 1]} : vector<8x32xf32> to vector<8x8xf32>
    %36 = arith.truncf %35 : vector<8x8xf32> to vector<8x8xbf16>
    %cst_27 = arith.constant dense<0.000000e+00> : vector<8x8xf32>
    %37 = tpu.matmul %32, %34, %cst_27 {dimension_numbers = #tpu.dot_dimension_numbers<[1], [1], [0], [0], [0, 0, 1, 0], [], []>} : vector<8x8xbf16>, vector<8x8xbf16>, vector<8x8xf32> -> vector<8x8xf32>
    %cst_28 = arith.constant 0.353553385 : f32
    %38 = vector.broadcast %cst_28 : f32 to vector<8x8xf32>
    %39 = arith.mulf %37, %38 : vector<8x8xf32>
    %40 = vector.broadcast %6 : vector<1x8xf32> to vector<8x8xf32>
    %41 = arith.addf %39, %40 : vector<8x8xf32>
    %cst_29 = arith.constant dense<0xFF800000> : vector<8xf32>
    %42 = vector.multi_reduction <maximumf>, %41, %cst_29 [1] : vector<8x8xf32> to vector<8xf32>
    %43 = vector.shape_cast %42 : vector<8xf32> to vector<8x1xf32>
    %44 = vector.broadcast %43 : vector<8x1xf32> to vector<8x8xf32>
    %45 = arith.subf %41, %44 : vector<8x8xf32>
    %46 = math.exp %45 : vector<8x8xf32>
    %cst_30 = arith.constant dense<0.000000e+00> : vector<8xf32>
    %47 = vector.multi_reduction <add>, %46, %cst_30 [1] : vector<8x8xf32> to vector<8xf32>
    %48 = vector.shape_cast %47 : vector<8xf32> to vector<8x1xf32>
    %49 = tpu.reciprocal %48 {approx = true} : vector<8x1xf32> -> vector<8x1xf32>
    %50 = vector.broadcast %49 : vector<8x1xf32> to vector<8x8xf32>
    %51 = arith.mulf %46, %50 : vector<8x8xf32>
    %52 = arith.truncf %51 : vector<8x8xf32> to vector<8x8xbf16>
    %cst_31 = arith.constant dense<0.000000e+00> : vector<8x8xf32>
    %53 = tpu.matmul %52, %36, %cst_31 {dimension_numbers = #tpu.dot_dimension_numbers<[1], [0], [0], [1], [0, 0, 1, 1], [], []>} : vector<8x8xbf16>, vector<8x8xbf16>, vector<8x8xf32> -> vector<8x8xf32>
    %54 = vector.extract_strided_slice %28 {offsets = [0, 0, 0], sizes = [1, 8, 32], strides = [1, 1, 1]} : vector<4x8x32xbf16> to vector<1x8x32xbf16>
    %55 = vector.shape_cast %54 : vector<1x8x32xbf16> to vector<8x32xbf16>
    %56 = arith.truncf %53 : vector<8x8xf32> to vector<8x8xbf16>
    %cst_32 = arith.constant dense<0.000000e+00> : vector<8x32xf32>
    %57 = tpu.matmul %56, %55, %cst_32 {dimension_numbers = #tpu.dot_dimension_numbers<[1], [0], [0], [1], [0, 0, 1, 1], [], []>} : vector<8x8xbf16>, vector<8x32xbf16>, vector<8x32xf32> -> vector<8x32xf32>
    %58 = vector.extract_strided_slice %24 {offsets = [0, 8], sizes = [8, 8], strides = [1, 1]} : vector<8x32xf32> to vector<8x8xf32>
    %59 = arith.truncf %58 : vector<8x8xf32> to vector<8x8xbf16>
    %60 = vector.extract_strided_slice %25 {offsets = [0, 8], sizes = [8, 8], strides = [1, 1]} : vector<8x32xf32> to vector<8x8xf32>
    %61 = arith.truncf %60 : vector<8x8xf32> to vector<8x8xbf16>
    %62 = vector.extract_strided_slice %26 {offsets = [0, 8], sizes = [8, 8], strides = [1, 1]} : vector<8x32xf32> to vector<8x8xf32>
    %63 = arith.truncf %62 : vector<8x8xf32> to vector<8x8xbf16>
    %cst_33 = arith.constant dense<0.000000e+00> : vector<8x8xf32>
    %64 = tpu.matmul %59, %61, %cst_33 {dimension_numbers = #tpu.dot_dimension_numbers<[1], [1], [0], [0], [0, 0, 1, 0], [], []>} : vector<8x8xbf16>, vector<8x8xbf16>, vector<8x8xf32> -> vector<8x8xf32>
    %cst_34 = arith.constant 0.353553385 : f32
    %65 = vector.broadcast %cst_34 : f32 to vector<8x8xf32>
    %66 = arith.mulf %64, %65 : vector<8x8xf32>
    %67 = vector.broadcast %6 : vector<1x8xf32> to vector<8x8xf32>
    %68 = arith.addf %66, %67 : vector<8x8xf32>
    %cst_35 = arith.constant dense<0xFF800000> : vector<8xf32>
    %69 = vector.multi_reduction <maximumf>, %68, %cst_35 [1] : vector<8x8xf32> to vector<8xf32>
    %70 = vector.shape_cast %69 : vector<8xf32> to vector<8x1xf32>
    %71 = vector.broadcast %70 : vector<8x1xf32> to vector<8x8xf32>
    %72 = arith.subf %68, %71 : vector<8x8xf32>
    %73 = math.exp %72 : vector<8x8xf32>
    %cst_36 = arith.constant dense<0.000000e+00> : vector<8xf32>
    %74 = vector.multi_reduction <add>, %73, %cst_36 [1] : vector<8x8xf32> to vector<8xf32>
    %75 = vector.shape_cast %74 : vector<8xf32> to vector<8x1xf32>
    %76 = tpu.reciprocal %75 {approx = true} : vector<8x1xf32> -> vector<8x1xf32>
    %77 = vector.broadcast %76 : vector<8x1xf32> to vector<8x8xf32>
    %78 = arith.mulf %73, %77 : vector<8x8xf32>
    %79 = arith.truncf %78 : vector<8x8xf32> to vector<8x8xbf16>
    %cst_37 = arith.constant dense<0.000000e+00> : vector<8x8xf32>
    %80 = tpu.matmul %79, %63, %cst_37 {dimension_numbers = #tpu.dot_dimension_numbers<[1], [0], [0], [1], [0, 0, 1, 1], [], []>} : vector<8x8xbf16>, vector<8x8xbf16>, vector<8x8xf32> -> vector<8x8xf32>
    %81 = vector.extract_strided_slice %28 {offsets = [1, 0, 0], sizes = [1, 8, 32], strides = [1, 1, 1]} : vector<4x8x32xbf16> to vector<1x8x32xbf16>
    %82 = vector.shape_cast %81 : vector<1x8x32xbf16> to vector<8x32xbf16>
    %83 = arith.truncf %80 : vector<8x8xf32> to vector<8x8xbf16>
    %cst_38 = arith.constant dense<0.000000e+00> : vector<8x32xf32>
    %84 = tpu.matmul %83, %82, %cst_38 {dimension_numbers = #tpu.dot_dimension_numbers<[1], [0], [0], [1], [0, 0, 1, 1], [], []>} : vector<8x8xbf16>, vector<8x32xbf16>, vector<8x32xf32> -> vector<8x32xf32>
    %85 = arith.addf %57, %84 : vector<8x32xf32>
    %86 = vector.extract_strided_slice %24 {offsets = [0, 16], sizes = [8, 8], strides = [1, 1]} : vector<8x32xf32> to vector<8x8xf32>
    %87 = arith.truncf %86 : vector<8x8xf32> to vector<8x8xbf16>
    %88 = vector.extract_strided_slice %25 {offsets = [0, 16], sizes = [8, 8], strides = [1, 1]} : vector<8x32xf32> to vector<8x8xf32>
    %89 = arith.truncf %88 : vector<8x8xf32> to vector<8x8xbf16>
    %90 = vector.extract_strided_slice %26 {offsets = [0, 16], sizes = [8, 8], strides = [1, 1]} : vector<8x32xf32> to vector<8x8xf32>
    %91 = arith.truncf %90 : vector<8x8xf32> to vector<8x8xbf16>
    %cst_39 = arith.constant dense<0.000000e+00> : vector<8x8xf32>
    %92 = tpu.matmul %87, %89, %cst_39 {dimension_numbers = #tpu.dot_dimension_numbers<[1], [1], [0], [0], [0, 0, 1, 0], [], []>} : vector<8x8xbf16>, vector<8x8xbf16>, vector<8x8xf32> -> vector<8x8xf32>
    %cst_40 = arith.constant 0.353553385 : f32
    %93 = vector.broadcast %cst_40 : f32 to vector<8x8xf32>
    %94 = arith.mulf %92, %93 : vector<8x8xf32>
    %95 = vector.broadcast %6 : vector<1x8xf32> to vector<8x8xf32>
    %96 = arith.addf %94, %95 : vector<8x8xf32>
    %cst_41 = arith.constant dense<0xFF800000> : vector<8xf32>
    %97 = vector.multi_reduction <maximumf>, %96, %cst_41 [1] : vector<8x8xf32> to vector<8xf32>
    %98 = vector.shape_cast %97 : vector<8xf32> to vector<8x1xf32>
    %99 = vector.broadcast %98 : vector<8x1xf32> to vector<8x8xf32>
    %100 = arith.subf %96, %99 : vector<8x8xf32>
    %101 = math.exp %100 : vector<8x8xf32>
    %cst_42 = arith.constant dense<0.000000e+00> : vector<8xf32>
    %102 = vector.multi_reduction <add>, %101, %cst_42 [1] : vector<8x8xf32> to vector<8xf32>
    %103 = vector.shape_cast %102 : vector<8xf32> to vector<8x1xf32>
    %104 = tpu.reciprocal %103 {approx = true} : vector<8x1xf32> -> vector<8x1xf32>
    %105 = vector.broadcast %104 : vector<8x1xf32> to vector<8x8xf32>
    %106 = arith.mulf %101, %105 : vector<8x8xf32>
    %107 = arith.truncf %106 : vector<8x8xf32> to vector<8x8xbf16>
    %cst_43 = arith.constant dense<0.000000e+00> : vector<8x8xf32>
    %108 = tpu.matmul %107, %91, %cst_43 {dimension_numbers = #tpu.dot_dimension_numbers<[1], [0], [0], [1], [0, 0, 1, 1], [], []>} : vector<8x8xbf16>, vector<8x8xbf16>, vector<8x8xf32> -> vector<8x8xf32>
    %109 = vector.extract_strided_slice %28 {offsets = [2, 0, 0], sizes = [1, 8, 32], strides = [1, 1, 1]} : vector<4x8x32xbf16> to vector<1x8x32xbf16>
    %110 = vector.shape_cast %109 : vector<1x8x32xbf16> to vector<8x32xbf16>
    %111 = arith.truncf %108 : vector<8x8xf32> to vector<8x8xbf16>
    %cst_44 = arith.constant dense<0.000000e+00> : vector<8x32xf32>
    %112 = tpu.matmul %111, %110, %cst_44 {dimension_numbers = #tpu.dot_dimension_numbers<[1], [0], [0], [1], [0, 0, 1, 1], [], []>} : vector<8x8xbf16>, vector<8x32xbf16>, vector<8x32xf32> -> vector<8x32xf32>
    %113 = arith.addf %85, %112 : vector<8x32xf32>
    %114 = vector.extract_strided_slice %24 {offsets = [0, 24], sizes = [8, 8], strides = [1, 1]} : vector<8x32xf32> to vector<8x8xf32>
    %115 = arith.truncf %114 : vector<8x8xf32> to vector<8x8xbf16>
    %116 = vector.extract_strided_slice %25 {offsets = [0, 24], sizes = [8, 8], strides = [1, 1]} : vector<8x32xf32> to vector<8x8xf32>
    %117 = arith.truncf %116 : vector<8x8xf32> to vector<8x8xbf16>
    %118 = vector.extract_strided_slice %26 {offsets = [0, 24], sizes = [8, 8], strides = [1, 1]} : vector<8x32xf32> to vector<8x8xf32>
    %119 = arith.truncf %118 : vector<8x8xf32> to vector<8x8xbf16>
    %cst_45 = arith.constant dense<0.000000e+00> : vector<8x8xf32>
    %120 = tpu.matmul %115, %117, %cst_45 {dimension_numbers = #tpu.dot_dimension_numbers<[1], [1], [0], [0], [0, 0, 1, 0], [], []>} : vector<8x8xbf16>, vector<8x8xbf16>, vector<8x8xf32> -> vector<8x8xf32>
    %cst_46 = arith.constant 0.353553385 : f32
    %121 = vector.broadcast %cst_46 : f32 to vector<8x8xf32>
    %122 = arith.mulf %120, %121 : vector<8x8xf32>
    %123 = vector.broadcast %6 : vector<1x8xf32> to vector<8x8xf32>
    %124 = arith.addf %122, %123 : vector<8x8xf32>
    %cst_47 = arith.constant dense<0xFF800000> : vector<8xf32>
    %125 = vector.multi_reduction <maximumf>, %124, %cst_47 [1] : vector<8x8xf32> to vector<8xf32>
    %126 = vector.shape_cast %125 : vector<8xf32> to vector<8x1xf32>
    %127 = vector.broadcast %126 : vector<8x1xf32> to vector<8x8xf32>
    %128 = arith.subf %124, %127 : vector<8x8xf32>
    %129 = math.exp %128 : vector<8x8xf32>
    %cst_48 = arith.constant dense<0.000000e+00> : vector<8xf32>
    %130 = vector.multi_reduction <add>, %129, %cst_48 [1] : vector<8x8xf32> to vector<8xf32>
    %131 = vector.shape_cast %130 : vector<8xf32> to vector<8x1xf32>
    %132 = tpu.reciprocal %131 {approx = true} : vector<8x1xf32> -> vector<8x1xf32>
    %133 = vector.broadcast %132 : vector<8x1xf32> to vector<8x8xf32>
    %134 = arith.mulf %129, %133 : vector<8x8xf32>
    %135 = arith.truncf %134 : vector<8x8xf32> to vector<8x8xbf16>
    %cst_49 = arith.constant dense<0.000000e+00> : vector<8x8xf32>
    %136 = tpu.matmul %135, %119, %cst_49 {dimension_numbers = #tpu.dot_dimension_numbers<[1], [0], [0], [1], [0, 0, 1, 1], [], []>} : vector<8x8xbf16>, vector<8x8xbf16>, vector<8x8xf32> -> vector<8x8xf32>
    %137 = vector.extract_strided_slice %28 {offsets = [3, 0, 0], sizes = [1, 8, 32], strides = [1, 1, 1]} : vector<4x8x32xbf16> to vector<1x8x32xbf16>
    %138 = vector.shape_cast %137 : vector<1x8x32xbf16> to vector<8x32xbf16>
    %139 = arith.truncf %136 : vector<8x8xf32> to vector<8x8xbf16>
    %cst_50 = arith.constant dense<0.000000e+00> : vector<8x32xf32>
    %140 = tpu.matmul %139, %138, %cst_50 {dimension_numbers = #tpu.dot_dimension_numbers<[1], [0], [0], [1], [0, 0, 1, 1], [], []>} : vector<8x8xbf16>, vector<8x32xbf16>, vector<8x32xf32> -> vector<8x32xf32>
    %141 = arith.addf %113, %140 : vector<8x32xf32>
    %142 = vector.broadcast %30 : vector<1x32xf32> to vector<8x32xf32>
    %143 = arith.addf %141, %142 : vector<8x32xf32>
    %144 = arith.addf %15, %143 : vector<8x32xf32>
    %c0_51 = arith.constant 0 : index
    %c0_52 = arith.constant 0 : index
    %c0_53 = arith.constant 0 : index
    %145 = vector.load %arg9[%c0_51, %c0_52, %c0_53] : memref<2x1x32xf32, #tpu.memory_space<vmem>>, vector<1x1x32xf32>
    %146 = vector.shape_cast %145 : vector<1x1x32xf32> to vector<1x32xf32>
    %c0_54 = arith.constant 0 : index
    %c0_55 = arith.constant 0 : index
    %c0_56 = arith.constant 0 : index
    %147 = vector.load %arg10[%c0_54, %c0_55, %c0_56] : memref<2x1x32xf32, #tpu.memory_space<vmem>>, vector<1x1x32xf32>
    %148 = vector.shape_cast %147 : vector<1x1x32xf32> to vector<1x32xf32>
    %cst_57 = arith.constant dense<0.000000e+00> : vector<8xf32>
    %149 = vector.multi_reduction <add>, %144, %cst_57 [1] : vector<8x32xf32> to vector<8xf32>
    %150 = vector.shape_cast %149 : vector<8xf32> to vector<8x1xf32>
    %cst_58 = arith.constant 3.200000e+01 : f32
    %151 = vector.broadcast %cst_58 : f32 to vector<8x1xf32>
    %152 = arith.divf %150, %151 : vector<8x1xf32>
    %153 = vector.broadcast %152 : vector<8x1xf32> to vector<8x32xf32>
    %154 = arith.subf %144, %153 : vector<8x32xf32>
    %155 = arith.mulf %154, %154 : vector<8x32xf32>
    %cst_59 = arith.constant dense<0.000000e+00> : vector<8xf32>
    %156 = vector.multi_reduction <add>, %155, %cst_59 [1] : vector<8x32xf32> to vector<8xf32>
    %157 = vector.shape_cast %156 : vector<8xf32> to vector<8x1xf32>
    %cst_60 = arith.constant 3.200000e+01 : f32
    %158 = vector.broadcast %cst_60 : f32 to vector<8x1xf32>
    %159 = arith.divf %157, %158 : vector<8x1xf32>
    %cst_61 = arith.constant 9.99999974E-6 : f32
    %160 = vector.broadcast %cst_61 : f32 to vector<8x1xf32>
    %161 = arith.addf %159, %160 : vector<8x1xf32>
    %162 = math.rsqrt %161 : vector<8x1xf32>
    %163 = vector.broadcast %162 : vector<8x1xf32> to vector<8x32xf32>
    %164 = arith.mulf %154, %163 : vector<8x32xf32>
    %165 = vector.broadcast %146 : vector<1x32xf32> to vector<8x32xf32>
    %166 = arith.mulf %164, %165 : vector<8x32xf32>
    %167 = vector.broadcast %148 : vector<1x32xf32> to vector<8x32xf32>
    %168 = arith.addf %166, %167 : vector<8x32xf32>
    %c0_62 = arith.constant 0 : index
    %c0_63 = arith.constant 0 : index
    %c0_64 = arith.constant 0 : index
    %169 = vector.load %arg13[%c0_62, %c0_63, %c0_64] : memref<2x32x64xbf16, #tpu.memory_space<vmem>>, vector<1x32x64xbf16>
    %170 = vector.shape_cast %169 : vector<1x32x64xbf16> to vector<32x64xbf16>
    %171 = arith.truncf %168 : vector<8x32xf32> to vector<8x32xbf16>
    %cst_65 = arith.constant dense<0.000000e+00> : vector<8x64xf32>
    %172 = tpu.matmul %171, %170, %cst_65 {dimension_numbers = #tpu.dot_dimension_numbers<[1], [0], [0], [1], [0, 0, 1, 1], [], []>} : vector<8x32xbf16>, vector<32x64xbf16>, vector<8x64xf32> -> vector<8x64xf32>
    %c0_66 = arith.constant 0 : index
    %c0_67 = arith.constant 0 : index
    %c0_68 = arith.constant 0 : index
    %173 = vector.load %arg14[%c0_66, %c0_67, %c0_68] : memref<2x1x64xf32, #tpu.memory_space<vmem>>, vector<1x1x64xf32>
    %174 = vector.shape_cast %173 : vector<1x1x64xf32> to vector<1x64xf32>
    %175 = vector.broadcast %174 : vector<1x64xf32> to vector<8x64xf32>
    %176 = arith.addf %172, %175 : vector<8x64xf32>
    %cst_69 = arith.constant 0.000000e+00 : f32
    %177 = vector.broadcast %cst_69 : f32 to vector<8x64xf32>
    %178 = arith.maximumf %176, %177 : vector<8x64xf32>
    %c0_70 = arith.constant 0 : index
    %c0_71 = arith.constant 0 : index
    %c0_72 = arith.constant 0 : index
    %179 = vector.load %arg15[%c0_70, %c0_71, %c0_72] : memref<2x64x32xbf16, #tpu.memory_space<vmem>>, vector<1x64x32xbf16>
    %180 = vector.shape_cast %179 : vector<1x64x32xbf16> to vector<64x32xbf16>
    %181 = arith.truncf %178 : vector<8x64xf32> to vector<8x64xbf16>
    %cst_73 = arith.constant dense<0.000000e+00> : vector<8x32xf32>
    %182 = tpu.matmul %181, %180, %cst_73 {dimension_numbers = #tpu.dot_dimension_numbers<[1], [0], [0], [1], [0, 0, 1, 1], [], []>} : vector<8x64xbf16>, vector<64x32xbf16>, vector<8x32xf32> -> vector<8x32xf32>
    %c0_74 = arith.constant 0 : index
    %c0_75 = arith.constant 0 : index
    %c0_76 = arith.constant 0 : index
    %183 = vector.load %arg16[%c0_74, %c0_75, %c0_76] : memref<2x1x32xf32, #tpu.memory_space<vmem>>, vector<1x1x32xf32>
    %184 = vector.shape_cast %183 : vector<1x1x32xf32> to vector<1x32xf32>
    %185 = vector.broadcast %184 : vector<1x32xf32> to vector<8x32xf32>
    %186 = arith.addf %182, %185 : vector<8x32xf32>
    %187 = arith.addf %168, %186 : vector<8x32xf32>
    %c0_77 = arith.constant 0 : index
    %c0_78 = arith.constant 0 : index
    %c0_79 = arith.constant 0 : index
    %188 = vector.load %arg11[%c0_77, %c0_78, %c0_79] : memref<2x1x32xf32, #tpu.memory_space<vmem>>, vector<1x1x32xf32>
    %189 = vector.shape_cast %188 : vector<1x1x32xf32> to vector<1x32xf32>
    %c0_80 = arith.constant 0 : index
    %c0_81 = arith.constant 0 : index
    %c0_82 = arith.constant 0 : index
    %190 = vector.load %arg12[%c0_80, %c0_81, %c0_82] : memref<2x1x32xf32, #tpu.memory_space<vmem>>, vector<1x1x32xf32>
    %191 = vector.shape_cast %190 : vector<1x1x32xf32> to vector<1x32xf32>
    %cst_83 = arith.constant dense<0.000000e+00> : vector<8xf32>
    %192 = vector.multi_reduction <add>, %187, %cst_83 [1] : vector<8x32xf32> to vector<8xf32>
    %193 = vector.shape_cast %192 : vector<8xf32> to vector<8x1xf32>
    %cst_84 = arith.constant 3.200000e+01 : f32
    %194 = vector.broadcast %cst_84 : f32 to vector<8x1xf32>
    %195 = arith.divf %193, %194 : vector<8x1xf32>
    %196 = vector.broadcast %195 : vector<8x1xf32> to vector<8x32xf32>
    %197 = arith.subf %187, %196 : vector<8x32xf32>
    %198 = arith.mulf %197, %197 : vector<8x32xf32>
    %cst_85 = arith.constant dense<0.000000e+00> : vector<8xf32>
    %199 = vector.multi_reduction <add>, %198, %cst_85 [1] : vector<8x32xf32> to vector<8xf32>
    %200 = vector.shape_cast %199 : vector<8xf32> to vector<8x1xf32>
    %cst_86 = arith.constant 3.200000e+01 : f32
    %201 = vector.broadcast %cst_86 : f32 to vector<8x1xf32>
    %202 = arith.divf %200, %201 : vector<8x1xf32>
    %cst_87 = arith.constant 9.99999974E-6 : f32
    %203 = vector.broadcast %cst_87 : f32 to vector<8x1xf32>
    %204 = arith.addf %202, %203 : vector<8x1xf32>
    %205 = math.rsqrt %204 : vector<8x1xf32>
    %206 = vector.broadcast %205 : vector<8x1xf32> to vector<8x32xf32>
    %207 = arith.mulf %197, %206 : vector<8x32xf32>
    %208 = vector.broadcast %189 : vector<1x32xf32> to vector<8x32xf32>
    %209 = arith.mulf %207, %208 : vector<8x32xf32>
    %210 = vector.broadcast %191 : vector<1x32xf32> to vector<8x32xf32>
    %211 = arith.addf %209, %210 : vector<8x32xf32>
    %c1 = arith.constant 1 : index
    %c0_88 = arith.constant 0 : index
    %c0_89 = arith.constant 0 : index
    %212 = vector.load %arg5[%c1, %c0_88, %c0_89] : memref<2x32x96xbf16, #tpu.memory_space<vmem>>, vector<1x32x96xbf16>
    %213 = vector.shape_cast %212 : vector<1x32x96xbf16> to vector<32x96xbf16>
    %214 = arith.truncf %211 : vector<8x32xf32> to vector<8x32xbf16>
    %cst_90 = arith.constant dense<0.000000e+00> : vector<8x96xf32>
    %215 = tpu.matmul %214, %213, %cst_90 {dimension_numbers = #tpu.dot_dimension_numbers<[1], [0], [0], [1], [0, 0, 1, 1], [], []>} : vector<8x32xbf16>, vector<32x96xbf16>, vector<8x96xf32> -> vector<8x96xf32>
    %c1_91 = arith.constant 1 : index
    %c0_92 = arith.constant 0 : index
    %c0_93 = arith.constant 0 : index
    %216 = vector.load %arg6[%c1_91, %c0_92, %c0_93] : memref<2x1x96xf32, #tpu.memory_space<vmem>>, vector<1x1x96xf32>
    %217 = vector.shape_cast %216 : vector<1x1x96xf32> to vector<1x96xf32>
    %218 = vector.broadcast %217 : vector<1x96xf32> to vector<8x96xf32>
    %219 = arith.addf %215, %218 : vector<8x96xf32>
    %220 = vector.extract_strided_slice %219 {offsets = [0, 0], sizes = [8, 32], strides = [1, 1]} : vector<8x96xf32> to vector<8x32xf32>
    %221 = vector.extract_strided_slice %219 {offsets = [0, 32], sizes = [8, 32], strides = [1, 1]} : vector<8x96xf32> to vector<8x32xf32>
    %222 = vector.extract_strided_slice %219 {offsets = [0, 64], sizes = [8, 32], strides = [1, 1]} : vector<8x96xf32> to vector<8x32xf32>
    %c1_94 = arith.constant 1 : index
    %c0_95 = arith.constant 0 : index
    %c0_96 = arith.constant 0 : index
    %c0_97 = arith.constant 0 : index
    %223 = vector.load %arg7[%c1_94, %c0_95, %c0_96, %c0_97] : memref<2x4x8x32xbf16, #tpu.memory_space<vmem>>, vector<1x4x8x32xbf16>
    %224 = vector.shape_cast %223 : vector<1x4x8x32xbf16> to vector<4x8x32xbf16>
    %c1_98 = arith.constant 1 : index
    %c0_99 = arith.constant 0 : index
    %c0_100 = arith.constant 0 : index
    %225 = vector.load %arg8[%c1_98, %c0_99, %c0_100] : memref<2x1x32xf32, #tpu.memory_space<vmem>>, vector<1x1x32xf32>
    %226 = vector.shape_cast %225 : vector<1x1x32xf32> to vector<1x32xf32>
    %227 = vector.extract_strided_slice %220 {offsets = [0, 0], sizes = [8, 8], strides = [1, 1]} : vector<8x32xf32> to vector<8x8xf32>
    %228 = arith.truncf %227 : vector<8x8xf32> to vector<8x8xbf16>
    %229 = vector.extract_strided_slice %221 {offsets = [0, 0], sizes = [8, 8], strides = [1, 1]} : vector<8x32xf32> to vector<8x8xf32>
    %230 = arith.truncf %229 : vector<8x8xf32> to vector<8x8xbf16>
    %231 = vector.extract_strided_slice %222 {offsets = [0, 0], sizes = [8, 8], strides = [1, 1]} : vector<8x32xf32> to vector<8x8xf32>
    %232 = arith.truncf %231 : vector<8x8xf32> to vector<8x8xbf16>
    %cst_101 = arith.constant dense<0.000000e+00> : vector<8x8xf32>
    %233 = tpu.matmul %228, %230, %cst_101 {dimension_numbers = #tpu.dot_dimension_numbers<[1], [1], [0], [0], [0, 0, 1, 0], [], []>} : vector<8x8xbf16>, vector<8x8xbf16>, vector<8x8xf32> -> vector<8x8xf32>
    %cst_102 = arith.constant 0.353553385 : f32
    %234 = vector.broadcast %cst_102 : f32 to vector<8x8xf32>
    %235 = arith.mulf %233, %234 : vector<8x8xf32>
    %236 = vector.broadcast %6 : vector<1x8xf32> to vector<8x8xf32>
    %237 = arith.addf %235, %236 : vector<8x8xf32>
    %cst_103 = arith.constant dense<0xFF800000> : vector<8xf32>
    %238 = vector.multi_reduction <maximumf>, %237, %cst_103 [1] : vector<8x8xf32> to vector<8xf32>
    %239 = vector.shape_cast %238 : vector<8xf32> to vector<8x1xf32>
    %240 = vector.broadcast %239 : vector<8x1xf32> to vector<8x8xf32>
    %241 = arith.subf %237, %240 : vector<8x8xf32>
    %242 = math.exp %241 : vector<8x8xf32>
    %cst_104 = arith.constant dense<0.000000e+00> : vector<8xf32>
    %243 = vector.multi_reduction <add>, %242, %cst_104 [1] : vector<8x8xf32> to vector<8xf32>
    %244 = vector.shape_cast %243 : vector<8xf32> to vector<8x1xf32>
    %245 = tpu.reciprocal %244 {approx = true} : vector<8x1xf32> -> vector<8x1xf32>
    %246 = vector.broadcast %245 : vector<8x1xf32> to vector<8x8xf32>
    %247 = arith.mulf %242, %246 : vector<8x8xf32>
    %248 = arith.truncf %247 : vector<8x8xf32> to vector<8x8xbf16>
    %cst_105 = arith.constant dense<0.000000e+00> : vector<8x8xf32>
    %249 = tpu.matmul %248, %232, %cst_105 {dimension_numbers = #tpu.dot_dimension_numbers<[1], [0], [0], [1], [0, 0, 1, 1], [], []>} : vector<8x8xbf16>, vector<8x8xbf16>, vector<8x8xf32> -> vector<8x8xf32>
    %250 = vector.extract_strided_slice %224 {offsets = [0, 0, 0], sizes = [1, 8, 32], strides = [1, 1, 1]} : vector<4x8x32xbf16> to vector<1x8x32xbf16>
    %251 = vector.shape_cast %250 : vector<1x8x32xbf16> to vector<8x32xbf16>
    %252 = arith.truncf %249 : vector<8x8xf32> to vector<8x8xbf16>
    %cst_106 = arith.constant dense<0.000000e+00> : vector<8x32xf32>
    %253 = tpu.matmul %252, %251, %cst_106 {dimension_numbers = #tpu.dot_dimension_numbers<[1], [0], [0], [1], [0, 0, 1, 1], [], []>} : vector<8x8xbf16>, vector<8x32xbf16>, vector<8x32xf32> -> vector<8x32xf32>
    %254 = vector.extract_strided_slice %220 {offsets = [0, 8], sizes = [8, 8], strides = [1, 1]} : vector<8x32xf32> to vector<8x8xf32>
    %255 = arith.truncf %254 : vector<8x8xf32> to vector<8x8xbf16>
    %256 = vector.extract_strided_slice %221 {offsets = [0, 8], sizes = [8, 8], strides = [1, 1]} : vector<8x32xf32> to vector<8x8xf32>
    %257 = arith.truncf %256 : vector<8x8xf32> to vector<8x8xbf16>
    %258 = vector.extract_strided_slice %222 {offsets = [0, 8], sizes = [8, 8], strides = [1, 1]} : vector<8x32xf32> to vector<8x8xf32>
    %259 = arith.truncf %258 : vector<8x8xf32> to vector<8x8xbf16>
    %cst_107 = arith.constant dense<0.000000e+00> : vector<8x8xf32>
    %260 = tpu.matmul %255, %257, %cst_107 {dimension_numbers = #tpu.dot_dimension_numbers<[1], [1], [0], [0], [0, 0, 1, 0], [], []>} : vector<8x8xbf16>, vector<8x8xbf16>, vector<8x8xf32> -> vector<8x8xf32>
    %cst_108 = arith.constant 0.353553385 : f32
    %261 = vector.broadcast %cst_108 : f32 to vector<8x8xf32>
    %262 = arith.mulf %260, %261 : vector<8x8xf32>
    %263 = vector.broadcast %6 : vector<1x8xf32> to vector<8x8xf32>
    %264 = arith.addf %262, %263 : vector<8x8xf32>
    %cst_109 = arith.constant dense<0xFF800000> : vector<8xf32>
    %265 = vector.multi_reduction <maximumf>, %264, %cst_109 [1] : vector<8x8xf32> to vector<8xf32>
    %266 = vector.shape_cast %265 : vector<8xf32> to vector<8x1xf32>
    %267 = vector.broadcast %266 : vector<8x1xf32> to vector<8x8xf32>
    %268 = arith.subf %264, %267 : vector<8x8xf32>
    %269 = math.exp %268 : vector<8x8xf32>
    %cst_110 = arith.constant dense<0.000000e+00> : vector<8xf32>
    %270 = vector.multi_reduction <add>, %269, %cst_110 [1] : vector<8x8xf32> to vector<8xf32>
    %271 = vector.shape_cast %270 : vector<8xf32> to vector<8x1xf32>
    %272 = tpu.reciprocal %271 {approx = true} : vector<8x1xf32> -> vector<8x1xf32>
    %273 = vector.broadcast %272 : vector<8x1xf32> to vector<8x8xf32>
    %274 = arith.mulf %269, %273 : vector<8x8xf32>
    %275 = arith.truncf %274 : vector<8x8xf32> to vector<8x8xbf16>
    %cst_111 = arith.constant dense<0.000000e+00> : vector<8x8xf32>
    %276 = tpu.matmul %275, %259, %cst_111 {dimension_numbers = #tpu.dot_dimension_numbers<[1], [0], [0], [1], [0, 0, 1, 1], [], []>} : vector<8x8xbf16>, vector<8x8xbf16>, vector<8x8xf32> -> vector<8x8xf32>
    %277 = vector.extract_strided_slice %224 {offsets = [1, 0, 0], sizes = [1, 8, 32], strides = [1, 1, 1]} : vector<4x8x32xbf16> to vector<1x8x32xbf16>
    %278 = vector.shape_cast %277 : vector<1x8x32xbf16> to vector<8x32xbf16>
    %279 = arith.truncf %276 : vector<8x8xf32> to vector<8x8xbf16>
    %cst_112 = arith.constant dense<0.000000e+00> : vector<8x32xf32>
    %280 = tpu.matmul %279, %278, %cst_112 {dimension_numbers = #tpu.dot_dimension_numbers<[1], [0], [0], [1], [0, 0, 1, 1], [], []>} : vector<8x8xbf16>, vector<8x32xbf16>, vector<8x32xf32> -> vector<8x32xf32>
    %281 = arith.addf %253, %280 : vector<8x32xf32>
    %282 = vector.extract_strided_slice %220 {offsets = [0, 16], sizes = [8, 8], strides = [1, 1]} : vector<8x32xf32> to vector<8x8xf32>
    %283 = arith.truncf %282 : vector<8x8xf32> to vector<8x8xbf16>
    %284 = vector.extract_strided_slice %221 {offsets = [0, 16], sizes = [8, 8], strides = [1, 1]} : vector<8x32xf32> to vector<8x8xf32>
    %285 = arith.truncf %284 : vector<8x8xf32> to vector<8x8xbf16>
    %286 = vector.extract_strided_slice %222 {offsets = [0, 16], sizes = [8, 8], strides = [1, 1]} : vector<8x32xf32> to vector<8x8xf32>
    %287 = arith.truncf %286 : vector<8x8xf32> to vector<8x8xbf16>
    %cst_113 = arith.constant dense<0.000000e+00> : vector<8x8xf32>
    %288 = tpu.matmul %283, %285, %cst_113 {dimension_numbers = #tpu.dot_dimension_numbers<[1], [1], [0], [0], [0, 0, 1, 0], [], []>} : vector<8x8xbf16>, vector<8x8xbf16>, vector<8x8xf32> -> vector<8x8xf32>
    %cst_114 = arith.constant 0.353553385 : f32
    %289 = vector.broadcast %cst_114 : f32 to vector<8x8xf32>
    %290 = arith.mulf %288, %289 : vector<8x8xf32>
    %291 = vector.broadcast %6 : vector<1x8xf32> to vector<8x8xf32>
    %292 = arith.addf %290, %291 : vector<8x8xf32>
    %cst_115 = arith.constant dense<0xFF800000> : vector<8xf32>
    %293 = vector.multi_reduction <maximumf>, %292, %cst_115 [1] : vector<8x8xf32> to vector<8xf32>
    %294 = vector.shape_cast %293 : vector<8xf32> to vector<8x1xf32>
    %295 = vector.broadcast %294 : vector<8x1xf32> to vector<8x8xf32>
    %296 = arith.subf %292, %295 : vector<8x8xf32>
    %297 = math.exp %296 : vector<8x8xf32>
    %cst_116 = arith.constant dense<0.000000e+00> : vector<8xf32>
    %298 = vector.multi_reduction <add>, %297, %cst_116 [1] : vector<8x8xf32> to vector<8xf32>
    %299 = vector.shape_cast %298 : vector<8xf32> to vector<8x1xf32>
    %300 = tpu.reciprocal %299 {approx = true} : vector<8x1xf32> -> vector<8x1xf32>
    %301 = vector.broadcast %300 : vector<8x1xf32> to vector<8x8xf32>
    %302 = arith.mulf %297, %301 : vector<8x8xf32>
    %303 = arith.truncf %302 : vector<8x8xf32> to vector<8x8xbf16>
    %cst_117 = arith.constant dense<0.000000e+00> : vector<8x8xf32>
    %304 = tpu.matmul %303, %287, %cst_117 {dimension_numbers = #tpu.dot_dimension_numbers<[1], [0], [0], [1], [0, 0, 1, 1], [], []>} : vector<8x8xbf16>, vector<8x8xbf16>, vector<8x8xf32> -> vector<8x8xf32>
    %305 = vector.extract_strided_slice %224 {offsets = [2, 0, 0], sizes = [1, 8, 32], strides = [1, 1, 1]} : vector<4x8x32xbf16> to vector<1x8x32xbf16>
    %306 = vector.shape_cast %305 : vector<1x8x32xbf16> to vector<8x32xbf16>
    %307 = arith.truncf %304 : vector<8x8xf32> to vector<8x8xbf16>
    %cst_118 = arith.constant dense<0.000000e+00> : vector<8x32xf32>
    %308 = tpu.matmul %307, %306, %cst_118 {dimension_numbers = #tpu.dot_dimension_numbers<[1], [0], [0], [1], [0, 0, 1, 1], [], []>} : vector<8x8xbf16>, vector<8x32xbf16>, vector<8x32xf32> -> vector<8x32xf32>
    %309 = arith.addf %281, %308 : vector<8x32xf32>
    %310 = vector.extract_strided_slice %220 {offsets = [0, 24], sizes = [8, 8], strides = [1, 1]} : vector<8x32xf32> to vector<8x8xf32>
    %311 = arith.truncf %310 : vector<8x8xf32> to vector<8x8xbf16>
    %312 = vector.extract_strided_slice %221 {offsets = [0, 24], sizes = [8, 8], strides = [1, 1]} : vector<8x32xf32> to vector<8x8xf32>
    %313 = arith.truncf %312 : vector<8x8xf32> to vector<8x8xbf16>
    %314 = vector.extract_strided_slice %222 {offsets = [0, 24], sizes = [8, 8], strides = [1, 1]} : vector<8x32xf32> to vector<8x8xf32>
    %315 = arith.truncf %314 : vector<8x8xf32> to vector<8x8xbf16>
    %cst_119 = arith.constant dense<0.000000e+00> : vector<8x8xf32>
    %316 = tpu.matmul %311, %313, %cst_119 {dimension_numbers = #tpu.dot_dimension_numbers<[1], [1], [0], [0], [0, 0, 1, 0], [], []>} : vector<8x8xbf16>, vector<8x8xbf16>, vector<8x8xf32> -> vector<8x8xf32>
    %cst_120 = arith.constant 0.353553385 : f32
    %317 = vector.broadcast %cst_120 : f32 to vector<8x8xf32>
    %318 = arith.mulf %316, %317 : vector<8x8xf32>
    %319 = vector.broadcast %6 : vector<1x8xf32> to vector<8x8xf32>
    %320 = arith.addf %318, %319 : vector<8x8xf32>
    %cst_121 = arith.constant dense<0xFF800000> : vector<8xf32>
    %321 = vector.multi_reduction <maximumf>, %320, %cst_121 [1] : vector<8x8xf32> to vector<8xf32>
    %322 = vector.shape_cast %321 : vector<8xf32> to vector<8x1xf32>
    %323 = vector.broadcast %322 : vector<8x1xf32> to vector<8x8xf32>
    %324 = arith.subf %320, %323 : vector<8x8xf32>
    %325 = math.exp %324 : vector<8x8xf32>
    %cst_122 = arith.constant dense<0.000000e+00> : vector<8xf32>
    %326 = vector.multi_reduction <add>, %325, %cst_122 [1] : vector<8x8xf32> to vector<8xf32>
    %327 = vector.shape_cast %326 : vector<8xf32> to vector<8x1xf32>
    %328 = tpu.reciprocal %327 {approx = true} : vector<8x1xf32> -> vector<8x1xf32>
    %329 = vector.broadcast %328 : vector<8x1xf32> to vector<8x8xf32>
    %330 = arith.mulf %325, %329 : vector<8x8xf32>
    %331 = arith.truncf %330 : vector<8x8xf32> to vector<8x8xbf16>
    %cst_123 = arith.constant dense<0.000000e+00> : vector<8x8xf32>
    %332 = tpu.matmul %331, %315, %cst_123 {dimension_numbers = #tpu.dot_dimension_numbers<[1], [0], [0], [1], [0, 0, 1, 1], [], []>} : vector<8x8xbf16>, vector<8x8xbf16>, vector<8x8xf32> -> vector<8x8xf32>
    %333 = vector.extract_strided_slice %224 {offsets = [3, 0, 0], sizes = [1, 8, 32], strides = [1, 1, 1]} : vector<4x8x32xbf16> to vector<1x8x32xbf16>
    %334 = vector.shape_cast %333 : vector<1x8x32xbf16> to vector<8x32xbf16>
    %335 = arith.truncf %332 : vector<8x8xf32> to vector<8x8xbf16>
    %cst_124 = arith.constant dense<0.000000e+00> : vector<8x32xf32>
    %336 = tpu.matmul %335, %334, %cst_124 {dimension_numbers = #tpu.dot_dimension_numbers<[1], [0], [0], [1], [0, 0, 1, 1], [], []>} : vector<8x8xbf16>, vector<8x32xbf16>, vector<8x32xf32> -> vector<8x32xf32>
    %337 = arith.addf %309, %336 : vector<8x32xf32>
    %338 = vector.broadcast %226 : vector<1x32xf32> to vector<8x32xf32>
    %339 = arith.addf %337, %338 : vector<8x32xf32>
    %340 = arith.addf %211, %339 : vector<8x32xf32>
    %c1_125 = arith.constant 1 : index
    %c0_126 = arith.constant 0 : index
    %c0_127 = arith.constant 0 : index
    %341 = vector.load %arg9[%c1_125, %c0_126, %c0_127] : memref<2x1x32xf32, #tpu.memory_space<vmem>>, vector<1x1x32xf32>
    %342 = vector.shape_cast %341 : vector<1x1x32xf32> to vector<1x32xf32>
    %c1_128 = arith.constant 1 : index
    %c0_129 = arith.constant 0 : index
    %c0_130 = arith.constant 0 : index
    %343 = vector.load %arg10[%c1_128, %c0_129, %c0_130] : memref<2x1x32xf32, #tpu.memory_space<vmem>>, vector<1x1x32xf32>
    %344 = vector.shape_cast %343 : vector<1x1x32xf32> to vector<1x32xf32>
    %cst_131 = arith.constant dense<0.000000e+00> : vector<8xf32>
    %345 = vector.multi_reduction <add>, %340, %cst_131 [1] : vector<8x32xf32> to vector<8xf32>
    %346 = vector.shape_cast %345 : vector<8xf32> to vector<8x1xf32>
    %cst_132 = arith.constant 3.200000e+01 : f32
    %347 = vector.broadcast %cst_132 : f32 to vector<8x1xf32>
    %348 = arith.divf %346, %347 : vector<8x1xf32>
    %349 = vector.broadcast %348 : vector<8x1xf32> to vector<8x32xf32>
    %350 = arith.subf %340, %349 : vector<8x32xf32>
    %351 = arith.mulf %350, %350 : vector<8x32xf32>
    %cst_133 = arith.constant dense<0.000000e+00> : vector<8xf32>
    %352 = vector.multi_reduction <add>, %351, %cst_133 [1] : vector<8x32xf32> to vector<8xf32>
    %353 = vector.shape_cast %352 : vector<8xf32> to vector<8x1xf32>
    %cst_134 = arith.constant 3.200000e+01 : f32
    %354 = vector.broadcast %cst_134 : f32 to vector<8x1xf32>
    %355 = arith.divf %353, %354 : vector<8x1xf32>
    %cst_135 = arith.constant 9.99999974E-6 : f32
    %356 = vector.broadcast %cst_135 : f32 to vector<8x1xf32>
    %357 = arith.addf %355, %356 : vector<8x1xf32>
    %358 = math.rsqrt %357 : vector<8x1xf32>
    %359 = vector.broadcast %358 : vector<8x1xf32> to vector<8x32xf32>
    %360 = arith.mulf %350, %359 : vector<8x32xf32>
    %361 = vector.broadcast %342 : vector<1x32xf32> to vector<8x32xf32>
    %362 = arith.mulf %360, %361 : vector<8x32xf32>
    %363 = vector.broadcast %344 : vector<1x32xf32> to vector<8x32xf32>
    %364 = arith.addf %362, %363 : vector<8x32xf32>
    %c1_136 = arith.constant 1 : index
    %c0_137 = arith.constant 0 : index
    %c0_138 = arith.constant 0 : index
    %365 = vector.load %arg13[%c1_136, %c0_137, %c0_138] : memref<2x32x64xbf16, #tpu.memory_space<vmem>>, vector<1x32x64xbf16>
    %366 = vector.shape_cast %365 : vector<1x32x64xbf16> to vector<32x64xbf16>
    %367 = arith.truncf %364 : vector<8x32xf32> to vector<8x32xbf16>
    %cst_139 = arith.constant dense<0.000000e+00> : vector<8x64xf32>
    %368 = tpu.matmul %367, %366, %cst_139 {dimension_numbers = #tpu.dot_dimension_numbers<[1], [0], [0], [1], [0, 0, 1, 1], [], []>} : vector<8x32xbf16>, vector<32x64xbf16>, vector<8x64xf32> -> vector<8x64xf32>
    %c1_140 = arith.constant 1 : index
    %c0_141 = arith.constant 0 : index
    %c0_142 = arith.constant 0 : index
    %369 = vector.load %arg14[%c1_140, %c0_141, %c0_142] : memref<2x1x64xf32, #tpu.memory_space<vmem>>, vector<1x1x64xf32>
    %370 = vector.shape_cast %369 : vector<1x1x64xf32> to vector<1x64xf32>
    %371 = vector.broadcast %370 : vector<1x64xf32> to vector<8x64xf32>
    %372 = arith.addf %368, %371 : vector<8x64xf32>
    %cst_143 = arith.constant 0.000000e+00 : f32
    %373 = vector.broadcast %cst_143 : f32 to vector<8x64xf32>
    %374 = arith.maximumf %372, %373 : vector<8x64xf32>
    %c1_144 = arith.constant 1 : index
    %c0_145 = arith.constant 0 : index
    %c0_146 = arith.constant 0 : index
    %375 = vector.load %arg15[%c1_144, %c0_145, %c0_146] : memref<2x64x32xbf16, #tpu.memory_space<vmem>>, vector<1x64x32xbf16>
    %376 = vector.shape_cast %375 : vector<1x64x32xbf16> to vector<64x32xbf16>
    %377 = arith.truncf %374 : vector<8x64xf32> to vector<8x64xbf16>
    %cst_147 = arith.constant dense<0.000000e+00> : vector<8x32xf32>
    %378 = tpu.matmul %377, %376, %cst_147 {dimension_numbers = #tpu.dot_dimension_numbers<[1], [0], [0], [1], [0, 0, 1, 1], [], []>} : vector<8x64xbf16>, vector<64x32xbf16>, vector<8x32xf32> -> vector<8x32xf32>
    %c1_148 = arith.constant 1 : index
    %c0_149 = arith.constant 0 : index
    %c0_150 = arith.constant 0 : index
    %379 = vector.load %arg16[%c1_148, %c0_149, %c0_150] : memref<2x1x32xf32, #tpu.memory_space<vmem>>, vector<1x1x32xf32>
    %380 = vector.shape_cast %379 : vector<1x1x32xf32> to vector<1x32xf32>
    %381 = vector.broadcast %380 : vector<1x32xf32> to vector<8x32xf32>
    %382 = arith.addf %378, %381 : vector<8x32xf32>
    %383 = arith.addf %364, %382 : vector<8x32xf32>
    %c1_151 = arith.constant 1 : index
    %c0_152 = arith.constant 0 : index
    %c0_153 = arith.constant 0 : index
    %384 = vector.load %arg11[%c1_151, %c0_152, %c0_153] : memref<2x1x32xf32, #tpu.memory_space<vmem>>, vector<1x1x32xf32>
    %385 = vector.shape_cast %384 : vector<1x1x32xf32> to vector<1x32xf32>
    %c1_154 = arith.constant 1 : index
    %c0_155 = arith.constant 0 : index
    %c0_156 = arith.constant 0 : index
    %386 = vector.load %arg12[%c1_154, %c0_155, %c0_156] : memref<2x1x32xf32, #tpu.memory_space<vmem>>, vector<1x1x32xf32>
    %387 = vector.shape_cast %386 : vector<1x1x32xf32> to vector<1x32xf32>
    %cst_157 = arith.constant dense<0.000000e+00> : vector<8xf32>
    %388 = vector.multi_reduction <add>, %383, %cst_157 [1] : vector<8x32xf32> to vector<8xf32>
    %389 = vector.shape_cast %388 : vector<8xf32> to vector<8x1xf32>
    %cst_158 = arith.constant 3.200000e+01 : f32
    %390 = vector.broadcast %cst_158 : f32 to vector<8x1xf32>
    %391 = arith.divf %389, %390 : vector<8x1xf32>
    %392 = vector.broadcast %391 : vector<8x1xf32> to vector<8x32xf32>
    %393 = arith.subf %383, %392 : vector<8x32xf32>
    %394 = arith.mulf %393, %393 : vector<8x32xf32>
    %cst_159 = arith.constant dense<0.000000e+00> : vector<8xf32>
    %395 = vector.multi_reduction <add>, %394, %cst_159 [1] : vector<8x32xf32> to vector<8xf32>
    %396 = vector.shape_cast %395 : vector<8xf32> to vector<8x1xf32>
    %cst_160 = arith.constant 3.200000e+01 : f32
    %397 = vector.broadcast %cst_160 : f32 to vector<8x1xf32>
    %398 = arith.divf %396, %397 : vector<8x1xf32>
    %cst_161 = arith.constant 9.99999974E-6 : f32
    %399 = vector.broadcast %cst_161 : f32 to vector<8x1xf32>
    %400 = arith.addf %398, %399 : vector<8x1xf32>
    %401 = math.rsqrt %400 : vector<8x1xf32>
    %402 = vector.broadcast %401 : vector<8x1xf32> to vector<8x32xf32>
    %403 = arith.mulf %393, %402 : vector<8x32xf32>
    %404 = vector.broadcast %385 : vector<1x32xf32> to vector<8x32xf32>
    %405 = arith.mulf %403, %404 : vector<8x32xf32>
    %406 = vector.broadcast %387 : vector<1x32xf32> to vector<8x32xf32>
    %407 = arith.addf %405, %406 : vector<8x32xf32>
    %c0_162 = arith.constant 0 : index
    %c0_163 = arith.constant 0 : index
    %c0_164 = arith.constant 0 : index
    %408 = vector.load %arg2[%c0_162, %c0_163, %c0_164] : memref<1x8x32xf32, #tpu.memory_space<vmem>>, vector<1x8x32xf32>
    %409 = vector.shape_cast %408 : vector<1x8x32xf32> to vector<8x32xf32>
    %c0_165 = arith.constant 0 : index
    %c0_166 = arith.constant 0 : index
    %c0_167 = arith.constant 0 : index
    %410 = vector.load %arg17[%c0_165, %c0_166, %c0_167] : memref<2x32x96xbf16, #tpu.memory_space<vmem>>, vector<1x32x96xbf16>
    %411 = vector.shape_cast %410 : vector<1x32x96xbf16> to vector<32x96xbf16>
    %412 = arith.truncf %409 : vector<8x32xf32> to vector<8x32xbf16>
    %cst_168 = arith.constant dense<0.000000e+00> : vector<8x96xf32>
    %413 = tpu.matmul %412, %411, %cst_168 {dimension_numbers = #tpu.dot_dimension_numbers<[1], [0], [0], [1], [0, 0, 1, 1], [], []>} : vector<8x32xbf16>, vector<32x96xbf16>, vector<8x96xf32> -> vector<8x96xf32>
    %c0_169 = arith.constant 0 : index
    %c0_170 = arith.constant 0 : index
    %c0_171 = arith.constant 0 : index
    %414 = vector.load %arg18[%c0_169, %c0_170, %c0_171] : memref<2x1x96xf32, #tpu.memory_space<vmem>>, vector<1x1x96xf32>
    %415 = vector.shape_cast %414 : vector<1x1x96xf32> to vector<1x96xf32>
    %416 = vector.broadcast %415 : vector<1x96xf32> to vector<8x96xf32>
    %417 = arith.addf %413, %416 : vector<8x96xf32>
    %418 = vector.extract_strided_slice %417 {offsets = [0, 0], sizes = [8, 32], strides = [1, 1]} : vector<8x96xf32> to vector<8x32xf32>
    %419 = vector.extract_strided_slice %417 {offsets = [0, 32], sizes = [8, 32], strides = [1, 1]} : vector<8x96xf32> to vector<8x32xf32>
    %420 = vector.extract_strided_slice %417 {offsets = [0, 64], sizes = [8, 32], strides = [1, 1]} : vector<8x96xf32> to vector<8x32xf32>
    %c0_172 = arith.constant 0 : index
    %c0_173 = arith.constant 0 : index
    %c0_174 = arith.constant 0 : index
    %c0_175 = arith.constant 0 : index
    %421 = vector.load %arg19[%c0_172, %c0_173, %c0_174, %c0_175] : memref<2x4x8x32xbf16, #tpu.memory_space<vmem>>, vector<1x4x8x32xbf16>
    %422 = vector.shape_cast %421 : vector<1x4x8x32xbf16> to vector<4x8x32xbf16>
    %c0_176 = arith.constant 0 : index
    %c0_177 = arith.constant 0 : index
    %c0_178 = arith.constant 0 : index
    %423 = vector.load %arg20[%c0_176, %c0_177, %c0_178] : memref<2x1x32xf32, #tpu.memory_space<vmem>>, vector<1x1x32xf32>
    %424 = vector.shape_cast %423 : vector<1x1x32xf32> to vector<1x32xf32>
    %425 = vector.extract_strided_slice %418 {offsets = [0, 0], sizes = [8, 8], strides = [1, 1]} : vector<8x32xf32> to vector<8x8xf32>
    %426 = arith.truncf %425 : vector<8x8xf32> to vector<8x8xbf16>
    %427 = vector.extract_strided_slice %419 {offsets = [0, 0], sizes = [8, 8], strides = [1, 1]} : vector<8x32xf32> to vector<8x8xf32>
    %428 = arith.truncf %427 : vector<8x8xf32> to vector<8x8xbf16>
    %429 = vector.extract_strided_slice %420 {offsets = [0, 0], sizes = [8, 8], strides = [1, 1]} : vector<8x32xf32> to vector<8x8xf32>
    %430 = arith.truncf %429 : vector<8x8xf32> to vector<8x8xbf16>
    %cst_179 = arith.constant dense<0.000000e+00> : vector<8x8xf32>
    %431 = tpu.matmul %426, %428, %cst_179 {dimension_numbers = #tpu.dot_dimension_numbers<[1], [1], [0], [0], [0, 0, 1, 0], [], []>} : vector<8x8xbf16>, vector<8x8xbf16>, vector<8x8xf32> -> vector<8x8xf32>
    %cst_180 = arith.constant 0.353553385 : f32
    %432 = vector.broadcast %cst_180 : f32 to vector<8x8xf32>
    %433 = arith.mulf %431, %432 : vector<8x8xf32>
    %434 = arith.addf %433, %13 : vector<8x8xf32>
    %cst_181 = arith.constant dense<0xFF800000> : vector<8xf32>
    %435 = vector.multi_reduction <maximumf>, %434, %cst_181 [1] : vector<8x8xf32> to vector<8xf32>
    %436 = vector.shape_cast %435 : vector<8xf32> to vector<8x1xf32>
    %437 = vector.broadcast %436 : vector<8x1xf32> to vector<8x8xf32>
    %438 = arith.subf %434, %437 : vector<8x8xf32>
    %439 = math.exp %438 : vector<8x8xf32>
    %cst_182 = arith.constant dense<0.000000e+00> : vector<8xf32>
    %440 = vector.multi_reduction <add>, %439, %cst_182 [1] : vector<8x8xf32> to vector<8xf32>
    %441 = vector.shape_cast %440 : vector<8xf32> to vector<8x1xf32>
    %442 = tpu.reciprocal %441 {approx = true} : vector<8x1xf32> -> vector<8x1xf32>
    %443 = vector.broadcast %442 : vector<8x1xf32> to vector<8x8xf32>
    %444 = arith.mulf %439, %443 : vector<8x8xf32>
    %445 = arith.truncf %444 : vector<8x8xf32> to vector<8x8xbf16>
    %cst_183 = arith.constant dense<0.000000e+00> : vector<8x8xf32>
    %446 = tpu.matmul %445, %430, %cst_183 {dimension_numbers = #tpu.dot_dimension_numbers<[1], [0], [0], [1], [0, 0, 1, 1], [], []>} : vector<8x8xbf16>, vector<8x8xbf16>, vector<8x8xf32> -> vector<8x8xf32>
    %447 = vector.extract_strided_slice %422 {offsets = [0, 0, 0], sizes = [1, 8, 32], strides = [1, 1, 1]} : vector<4x8x32xbf16> to vector<1x8x32xbf16>
    %448 = vector.shape_cast %447 : vector<1x8x32xbf16> to vector<8x32xbf16>
    %449 = arith.truncf %446 : vector<8x8xf32> to vector<8x8xbf16>
    %cst_184 = arith.constant dense<0.000000e+00> : vector<8x32xf32>
    %450 = tpu.matmul %449, %448, %cst_184 {dimension_numbers = #tpu.dot_dimension_numbers<[1], [0], [0], [1], [0, 0, 1, 1], [], []>} : vector<8x8xbf16>, vector<8x32xbf16>, vector<8x32xf32> -> vector<8x32xf32>
    %451 = vector.extract_strided_slice %418 {offsets = [0, 8], sizes = [8, 8], strides = [1, 1]} : vector<8x32xf32> to vector<8x8xf32>
    %452 = arith.truncf %451 : vector<8x8xf32> to vector<8x8xbf16>
    %453 = vector.extract_strided_slice %419 {offsets = [0, 8], sizes = [8, 8], strides = [1, 1]} : vector<8x32xf32> to vector<8x8xf32>
    %454 = arith.truncf %453 : vector<8x8xf32> to vector<8x8xbf16>
    %455 = vector.extract_strided_slice %420 {offsets = [0, 8], sizes = [8, 8], strides = [1, 1]} : vector<8x32xf32> to vector<8x8xf32>
    %456 = arith.truncf %455 : vector<8x8xf32> to vector<8x8xbf16>
    %cst_185 = arith.constant dense<0.000000e+00> : vector<8x8xf32>
    %457 = tpu.matmul %452, %454, %cst_185 {dimension_numbers = #tpu.dot_dimension_numbers<[1], [1], [0], [0], [0, 0, 1, 0], [], []>} : vector<8x8xbf16>, vector<8x8xbf16>, vector<8x8xf32> -> vector<8x8xf32>
    %cst_186 = arith.constant 0.353553385 : f32
    %458 = vector.broadcast %cst_186 : f32 to vector<8x8xf32>
    %459 = arith.mulf %457, %458 : vector<8x8xf32>
    %460 = arith.addf %459, %13 : vector<8x8xf32>
    %cst_187 = arith.constant dense<0xFF800000> : vector<8xf32>
    %461 = vector.multi_reduction <maximumf>, %460, %cst_187 [1] : vector<8x8xf32> to vector<8xf32>
    %462 = vector.shape_cast %461 : vector<8xf32> to vector<8x1xf32>
    %463 = vector.broadcast %462 : vector<8x1xf32> to vector<8x8xf32>
    %464 = arith.subf %460, %463 : vector<8x8xf32>
    %465 = math.exp %464 : vector<8x8xf32>
    %cst_188 = arith.constant dense<0.000000e+00> : vector<8xf32>
    %466 = vector.multi_reduction <add>, %465, %cst_188 [1] : vector<8x8xf32> to vector<8xf32>
    %467 = vector.shape_cast %466 : vector<8xf32> to vector<8x1xf32>
    %468 = tpu.reciprocal %467 {approx = true} : vector<8x1xf32> -> vector<8x1xf32>
    %469 = vector.broadcast %468 : vector<8x1xf32> to vector<8x8xf32>
    %470 = arith.mulf %465, %469 : vector<8x8xf32>
    %471 = arith.truncf %470 : vector<8x8xf32> to vector<8x8xbf16>
    %cst_189 = arith.constant dense<0.000000e+00> : vector<8x8xf32>
    %472 = tpu.matmul %471, %456, %cst_189 {dimension_numbers = #tpu.dot_dimension_numbers<[1], [0], [0], [1], [0, 0, 1, 1], [], []>} : vector<8x8xbf16>, vector<8x8xbf16>, vector<8x8xf32> -> vector<8x8xf32>
    %473 = vector.extract_strided_slice %422 {offsets = [1, 0, 0], sizes = [1, 8, 32], strides = [1, 1, 1]} : vector<4x8x32xbf16> to vector<1x8x32xbf16>
    %474 = vector.shape_cast %473 : vector<1x8x32xbf16> to vector<8x32xbf16>
    %475 = arith.truncf %472 : vector<8x8xf32> to vector<8x8xbf16>
    %cst_190 = arith.constant dense<0.000000e+00> : vector<8x32xf32>
    %476 = tpu.matmul %475, %474, %cst_190 {dimension_numbers = #tpu.dot_dimension_numbers<[1], [0], [0], [1], [0, 0, 1, 1], [], []>} : vector<8x8xbf16>, vector<8x32xbf16>, vector<8x32xf32> -> vector<8x32xf32>
    %477 = arith.addf %450, %476 : vector<8x32xf32>
    %478 = vector.extract_strided_slice %418 {offsets = [0, 16], sizes = [8, 8], strides = [1, 1]} : vector<8x32xf32> to vector<8x8xf32>
    %479 = arith.truncf %478 : vector<8x8xf32> to vector<8x8xbf16>
    %480 = vector.extract_strided_slice %419 {offsets = [0, 16], sizes = [8, 8], strides = [1, 1]} : vector<8x32xf32> to vector<8x8xf32>
    %481 = arith.truncf %480 : vector<8x8xf32> to vector<8x8xbf16>
    %482 = vector.extract_strided_slice %420 {offsets = [0, 16], sizes = [8, 8], strides = [1, 1]} : vector<8x32xf32> to vector<8x8xf32>
    %483 = arith.truncf %482 : vector<8x8xf32> to vector<8x8xbf16>
    %cst_191 = arith.constant dense<0.000000e+00> : vector<8x8xf32>
    %484 = tpu.matmul %479, %481, %cst_191 {dimension_numbers = #tpu.dot_dimension_numbers<[1], [1], [0], [0], [0, 0, 1, 0], [], []>} : vector<8x8xbf16>, vector<8x8xbf16>, vector<8x8xf32> -> vector<8x8xf32>
    %cst_192 = arith.constant 0.353553385 : f32
    %485 = vector.broadcast %cst_192 : f32 to vector<8x8xf32>
    %486 = arith.mulf %484, %485 : vector<8x8xf32>
    %487 = arith.addf %486, %13 : vector<8x8xf32>
    %cst_193 = arith.constant dense<0xFF800000> : vector<8xf32>
    %488 = vector.multi_reduction <maximumf>, %487, %cst_193 [1] : vector<8x8xf32> to vector<8xf32>
    %489 = vector.shape_cast %488 : vector<8xf32> to vector<8x1xf32>
    %490 = vector.broadcast %489 : vector<8x1xf32> to vector<8x8xf32>
    %491 = arith.subf %487, %490 : vector<8x8xf32>
    %492 = math.exp %491 : vector<8x8xf32>
    %cst_194 = arith.constant dense<0.000000e+00> : vector<8xf32>
    %493 = vector.multi_reduction <add>, %492, %cst_194 [1] : vector<8x8xf32> to vector<8xf32>
    %494 = vector.shape_cast %493 : vector<8xf32> to vector<8x1xf32>
    %495 = tpu.reciprocal %494 {approx = true} : vector<8x1xf32> -> vector<8x1xf32>
    %496 = vector.broadcast %495 : vector<8x1xf32> to vector<8x8xf32>
    %497 = arith.mulf %492, %496 : vector<8x8xf32>
    %498 = arith.truncf %497 : vector<8x8xf32> to vector<8x8xbf16>
    %cst_195 = arith.constant dense<0.000000e+00> : vector<8x8xf32>
    %499 = tpu.matmul %498, %483, %cst_195 {dimension_numbers = #tpu.dot_dimension_numbers<[1], [0], [0], [1], [0, 0, 1, 1], [], []>} : vector<8x8xbf16>, vector<8x8xbf16>, vector<8x8xf32> -> vector<8x8xf32>
    %500 = vector.extract_strided_slice %422 {offsets = [2, 0, 0], sizes = [1, 8, 32], strides = [1, 1, 1]} : vector<4x8x32xbf16> to vector<1x8x32xbf16>
    %501 = vector.shape_cast %500 : vector<1x8x32xbf16> to vector<8x32xbf16>
    %502 = arith.truncf %499 : vector<8x8xf32> to vector<8x8xbf16>
    %cst_196 = arith.constant dense<0.000000e+00> : vector<8x32xf32>
    %503 = tpu.matmul %502, %501, %cst_196 {dimension_numbers = #tpu.dot_dimension_numbers<[1], [0], [0], [1], [0, 0, 1, 1], [], []>} : vector<8x8xbf16>, vector<8x32xbf16>, vector<8x32xf32> -> vector<8x32xf32>
    %504 = arith.addf %477, %503 : vector<8x32xf32>
    %505 = vector.extract_strided_slice %418 {offsets = [0, 24], sizes = [8, 8], strides = [1, 1]} : vector<8x32xf32> to vector<8x8xf32>
    %506 = arith.truncf %505 : vector<8x8xf32> to vector<8x8xbf16>
    %507 = vector.extract_strided_slice %419 {offsets = [0, 24], sizes = [8, 8], strides = [1, 1]} : vector<8x32xf32> to vector<8x8xf32>
    %508 = arith.truncf %507 : vector<8x8xf32> to vector<8x8xbf16>
    %509 = vector.extract_strided_slice %420 {offsets = [0, 24], sizes = [8, 8], strides = [1, 1]} : vector<8x32xf32> to vector<8x8xf32>
    %510 = arith.truncf %509 : vector<8x8xf32> to vector<8x8xbf16>
    %cst_197 = arith.constant dense<0.000000e+00> : vector<8x8xf32>
    %511 = tpu.matmul %506, %508, %cst_197 {dimension_numbers = #tpu.dot_dimension_numbers<[1], [1], [0], [0], [0, 0, 1, 0], [], []>} : vector<8x8xbf16>, vector<8x8xbf16>, vector<8x8xf32> -> vector<8x8xf32>
    %cst_198 = arith.constant 0.353553385 : f32
    %512 = vector.broadcast %cst_198 : f32 to vector<8x8xf32>
    %513 = arith.mulf %511, %512 : vector<8x8xf32>
    %514 = arith.addf %513, %13 : vector<8x8xf32>
    %cst_199 = arith.constant dense<0xFF800000> : vector<8xf32>
    %515 = vector.multi_reduction <maximumf>, %514, %cst_199 [1] : vector<8x8xf32> to vector<8xf32>
    %516 = vector.shape_cast %515 : vector<8xf32> to vector<8x1xf32>
    %517 = vector.broadcast %516 : vector<8x1xf32> to vector<8x8xf32>
    %518 = arith.subf %514, %517 : vector<8x8xf32>
    %519 = math.exp %518 : vector<8x8xf32>
    %cst_200 = arith.constant dense<0.000000e+00> : vector<8xf32>
    %520 = vector.multi_reduction <add>, %519, %cst_200 [1] : vector<8x8xf32> to vector<8xf32>
    %521 = vector.shape_cast %520 : vector<8xf32> to vector<8x1xf32>
    %522 = tpu.reciprocal %521 {approx = true} : vector<8x1xf32> -> vector<8x1xf32>
    %523 = vector.broadcast %522 : vector<8x1xf32> to vector<8x8xf32>
    %524 = arith.mulf %519, %523 : vector<8x8xf32>
    %525 = arith.truncf %524 : vector<8x8xf32> to vector<8x8xbf16>
    %cst_201 = arith.constant dense<0.000000e+00> : vector<8x8xf32>
    %526 = tpu.matmul %525, %510, %cst_201 {dimension_numbers = #tpu.dot_dimension_numbers<[1], [0], [0], [1], [0, 0, 1, 1], [], []>} : vector<8x8xbf16>, vector<8x8xbf16>, vector<8x8xf32> -> vector<8x8xf32>
    %527 = vector.extract_strided_slice %422 {offsets = [3, 0, 0], sizes = [1, 8, 32], strides = [1, 1, 1]} : vector<4x8x32xbf16> to vector<1x8x32xbf16>
    %528 = vector.shape_cast %527 : vector<1x8x32xbf16> to vector<8x32xbf16>
    %529 = arith.truncf %526 : vector<8x8xf32> to vector<8x8xbf16>
    %cst_202 = arith.constant dense<0.000000e+00> : vector<8x32xf32>
    %530 = tpu.matmul %529, %528, %cst_202 {dimension_numbers = #tpu.dot_dimension_numbers<[1], [0], [0], [1], [0, 0, 1, 1], [], []>} : vector<8x8xbf16>, vector<8x32xbf16>, vector<8x32xf32> -> vector<8x32xf32>
    %531 = arith.addf %504, %530 : vector<8x32xf32>
    %532 = vector.broadcast %424 : vector<1x32xf32> to vector<8x32xf32>
    %533 = arith.addf %531, %532 : vector<8x32xf32>
    %534 = arith.addf %409, %533 : vector<8x32xf32>
    %c0_203 = arith.constant 0 : index
    %c0_204 = arith.constant 0 : index
    %c0_205 = arith.constant 0 : index
    %535 = vector.load %arg27[%c0_203, %c0_204, %c0_205] : memref<2x1x32xf32, #tpu.memory_space<vmem>>, vector<1x1x32xf32>
    %536 = vector.shape_cast %535 : vector<1x1x32xf32> to vector<1x32xf32>
    %c0_206 = arith.constant 0 : index
    %c0_207 = arith.constant 0 : index
    %c0_208 = arith.constant 0 : index
    %537 = vector.load %arg28[%c0_206, %c0_207, %c0_208] : memref<2x1x32xf32, #tpu.memory_space<vmem>>, vector<1x1x32xf32>
    %538 = vector.shape_cast %537 : vector<1x1x32xf32> to vector<1x32xf32>
    %cst_209 = arith.constant dense<0.000000e+00> : vector<8xf32>
    %539 = vector.multi_reduction <add>, %534, %cst_209 [1] : vector<8x32xf32> to vector<8xf32>
    %540 = vector.shape_cast %539 : vector<8xf32> to vector<8x1xf32>
    %cst_210 = arith.constant 3.200000e+01 : f32
    %541 = vector.broadcast %cst_210 : f32 to vector<8x1xf32>
    %542 = arith.divf %540, %541 : vector<8x1xf32>
    %543 = vector.broadcast %542 : vector<8x1xf32> to vector<8x32xf32>
    %544 = arith.subf %534, %543 : vector<8x32xf32>
    %545 = arith.mulf %544, %544 : vector<8x32xf32>
    %cst_211 = arith.constant dense<0.000000e+00> : vector<8xf32>
    %546 = vector.multi_reduction <add>, %545, %cst_211 [1] : vector<8x32xf32> to vector<8xf32>
    %547 = vector.shape_cast %546 : vector<8xf32> to vector<8x1xf32>
    %cst_212 = arith.constant 3.200000e+01 : f32
    %548 = vector.broadcast %cst_212 : f32 to vector<8x1xf32>
    %549 = arith.divf %547, %548 : vector<8x1xf32>
    %cst_213 = arith.constant 9.99999974E-6 : f32
    %550 = vector.broadcast %cst_213 : f32 to vector<8x1xf32>
    %551 = arith.addf %549, %550 : vector<8x1xf32>
    %552 = math.rsqrt %551 : vector<8x1xf32>
    %553 = vector.broadcast %552 : vector<8x1xf32> to vector<8x32xf32>
    %554 = arith.mulf %544, %553 : vector<8x32xf32>
    %555 = vector.broadcast %536 : vector<1x32xf32> to vector<8x32xf32>
    %556 = arith.mulf %554, %555 : vector<8x32xf32>
    %557 = vector.broadcast %538 : vector<1x32xf32> to vector<8x32xf32>
    %558 = arith.addf %556, %557 : vector<8x32xf32>
    %c0_214 = arith.constant 0 : index
    %c0_215 = arith.constant 0 : index
    %c0_216 = arith.constant 0 : index
    %559 = vector.load %arg21[%c0_214, %c0_215, %c0_216] : memref<2x32x32xbf16, #tpu.memory_space<vmem>>, vector<1x32x32xbf16>
    %560 = vector.shape_cast %559 : vector<1x32x32xbf16> to vector<32x32xbf16>
    %561 = arith.truncf %558 : vector<8x32xf32> to vector<8x32xbf16>
    %cst_217 = arith.constant dense<0.000000e+00> : vector<8x32xf32>
    %562 = tpu.matmul %561, %560, %cst_217 {dimension_numbers = #tpu.dot_dimension_numbers<[1], [0], [0], [1], [0, 0, 1, 1], [], []>} : vector<8x32xbf16>, vector<32x32xbf16>, vector<8x32xf32> -> vector<8x32xf32>
    %c0_218 = arith.constant 0 : index
    %c0_219 = arith.constant 0 : index
    %c0_220 = arith.constant 0 : index
    %563 = vector.load %arg22[%c0_218, %c0_219, %c0_220] : memref<2x1x32xf32, #tpu.memory_space<vmem>>, vector<1x1x32xf32>
    %564 = vector.shape_cast %563 : vector<1x1x32xf32> to vector<1x32xf32>
    %565 = vector.broadcast %564 : vector<1x32xf32> to vector<8x32xf32>
    %566 = arith.addf %562, %565 : vector<8x32xf32>
    %c0_221 = arith.constant 0 : index
    %c0_222 = arith.constant 0 : index
    %c0_223 = arith.constant 0 : index
    %567 = vector.load %arg23[%c0_221, %c0_222, %c0_223] : memref<2x32x64xbf16, #tpu.memory_space<vmem>>, vector<1x32x64xbf16>
    %568 = vector.shape_cast %567 : vector<1x32x64xbf16> to vector<32x64xbf16>
    %569 = arith.truncf %407 : vector<8x32xf32> to vector<8x32xbf16>
    %cst_224 = arith.constant dense<0.000000e+00> : vector<8x64xf32>
    %570 = tpu.matmul %569, %568, %cst_224 {dimension_numbers = #tpu.dot_dimension_numbers<[1], [0], [0], [1], [0, 0, 1, 1], [], []>} : vector<8x32xbf16>, vector<32x64xbf16>, vector<8x64xf32> -> vector<8x64xf32>
    %c0_225 = arith.constant 0 : index
    %c0_226 = arith.constant 0 : index
    %c0_227 = arith.constant 0 : index
    %571 = vector.load %arg24[%c0_225, %c0_226, %c0_227] : memref<2x1x64xf32, #tpu.memory_space<vmem>>, vector<1x1x64xf32>
    %572 = vector.shape_cast %571 : vector<1x1x64xf32> to vector<1x64xf32>
    %573 = vector.broadcast %572 : vector<1x64xf32> to vector<8x64xf32>
    %574 = arith.addf %570, %573 : vector<8x64xf32>
    %575 = vector.extract_strided_slice %574 {offsets = [0, 0], sizes = [8, 32], strides = [1, 1]} : vector<8x64xf32> to vector<8x32xf32>
    %576 = vector.extract_strided_slice %574 {offsets = [0, 32], sizes = [8, 32], strides = [1, 1]} : vector<8x64xf32> to vector<8x32xf32>
    %c0_228 = arith.constant 0 : index
    %c0_229 = arith.constant 0 : index
    %c0_230 = arith.constant 0 : index
    %c0_231 = arith.constant 0 : index
    %577 = vector.load %arg25[%c0_228, %c0_229, %c0_230, %c0_231] : memref<2x4x8x32xbf16, #tpu.memory_space<vmem>>, vector<1x4x8x32xbf16>
    %578 = vector.shape_cast %577 : vector<1x4x8x32xbf16> to vector<4x8x32xbf16>
    %c0_232 = arith.constant 0 : index
    %c0_233 = arith.constant 0 : index
    %c0_234 = arith.constant 0 : index
    %579 = vector.load %arg26[%c0_232, %c0_233, %c0_234] : memref<2x1x32xf32, #tpu.memory_space<vmem>>, vector<1x1x32xf32>
    %580 = vector.shape_cast %579 : vector<1x1x32xf32> to vector<1x32xf32>
    %581 = vector.extract_strided_slice %566 {offsets = [0, 0], sizes = [8, 8], strides = [1, 1]} : vector<8x32xf32> to vector<8x8xf32>
    %582 = arith.truncf %581 : vector<8x8xf32> to vector<8x8xbf16>
    %583 = vector.extract_strided_slice %575 {offsets = [0, 0], sizes = [8, 8], strides = [1, 1]} : vector<8x32xf32> to vector<8x8xf32>
    %584 = arith.truncf %583 : vector<8x8xf32> to vector<8x8xbf16>
    %585 = vector.extract_strided_slice %576 {offsets = [0, 0], sizes = [8, 8], strides = [1, 1]} : vector<8x32xf32> to vector<8x8xf32>
    %586 = arith.truncf %585 : vector<8x8xf32> to vector<8x8xbf16>
    %cst_235 = arith.constant dense<0.000000e+00> : vector<8x8xf32>
    %587 = tpu.matmul %582, %584, %cst_235 {dimension_numbers = #tpu.dot_dimension_numbers<[1], [1], [0], [0], [0, 0, 1, 0], [], []>} : vector<8x8xbf16>, vector<8x8xbf16>, vector<8x8xf32> -> vector<8x8xf32>
    %cst_236 = arith.constant 0.353553385 : f32
    %588 = vector.broadcast %cst_236 : f32 to vector<8x8xf32>
    %589 = arith.mulf %587, %588 : vector<8x8xf32>
    %590 = vector.broadcast %6 : vector<1x8xf32> to vector<8x8xf32>
    %591 = arith.addf %589, %590 : vector<8x8xf32>
    %cst_237 = arith.constant dense<0xFF800000> : vector<8xf32>
    %592 = vector.multi_reduction <maximumf>, %591, %cst_237 [1] : vector<8x8xf32> to vector<8xf32>
    %593 = vector.shape_cast %592 : vector<8xf32> to vector<8x1xf32>
    %594 = vector.broadcast %593 : vector<8x1xf32> to vector<8x8xf32>
    %595 = arith.subf %591, %594 : vector<8x8xf32>
    %596 = math.exp %595 : vector<8x8xf32>
    %cst_238 = arith.constant dense<0.000000e+00> : vector<8xf32>
    %597 = vector.multi_reduction <add>, %596, %cst_238 [1] : vector<8x8xf32> to vector<8xf32>
    %598 = vector.shape_cast %597 : vector<8xf32> to vector<8x1xf32>
    %599 = tpu.reciprocal %598 {approx = true} : vector<8x1xf32> -> vector<8x1xf32>
    %600 = vector.broadcast %599 : vector<8x1xf32> to vector<8x8xf32>
    %601 = arith.mulf %596, %600 : vector<8x8xf32>
    %602 = arith.truncf %601 : vector<8x8xf32> to vector<8x8xbf16>
    %cst_239 = arith.constant dense<0.000000e+00> : vector<8x8xf32>
    %603 = tpu.matmul %602, %586, %cst_239 {dimension_numbers = #tpu.dot_dimension_numbers<[1], [0], [0], [1], [0, 0, 1, 1], [], []>} : vector<8x8xbf16>, vector<8x8xbf16>, vector<8x8xf32> -> vector<8x8xf32>
    %604 = vector.extract_strided_slice %578 {offsets = [0, 0, 0], sizes = [1, 8, 32], strides = [1, 1, 1]} : vector<4x8x32xbf16> to vector<1x8x32xbf16>
    %605 = vector.shape_cast %604 : vector<1x8x32xbf16> to vector<8x32xbf16>
    %606 = arith.truncf %603 : vector<8x8xf32> to vector<8x8xbf16>
    %cst_240 = arith.constant dense<0.000000e+00> : vector<8x32xf32>
    %607 = tpu.matmul %606, %605, %cst_240 {dimension_numbers = #tpu.dot_dimension_numbers<[1], [0], [0], [1], [0, 0, 1, 1], [], []>} : vector<8x8xbf16>, vector<8x32xbf16>, vector<8x32xf32> -> vector<8x32xf32>
    %608 = vector.extract_strided_slice %566 {offsets = [0, 8], sizes = [8, 8], strides = [1, 1]} : vector<8x32xf32> to vector<8x8xf32>
    %609 = arith.truncf %608 : vector<8x8xf32> to vector<8x8xbf16>
    %610 = vector.extract_strided_slice %575 {offsets = [0, 8], sizes = [8, 8], strides = [1, 1]} : vector<8x32xf32> to vector<8x8xf32>
    %611 = arith.truncf %610 : vector<8x8xf32> to vector<8x8xbf16>
    %612 = vector.extract_strided_slice %576 {offsets = [0, 8], sizes = [8, 8], strides = [1, 1]} : vector<8x32xf32> to vector<8x8xf32>
    %613 = arith.truncf %612 : vector<8x8xf32> to vector<8x8xbf16>
    %cst_241 = arith.constant dense<0.000000e+00> : vector<8x8xf32>
    %614 = tpu.matmul %609, %611, %cst_241 {dimension_numbers = #tpu.dot_dimension_numbers<[1], [1], [0], [0], [0, 0, 1, 0], [], []>} : vector<8x8xbf16>, vector<8x8xbf16>, vector<8x8xf32> -> vector<8x8xf32>
    %cst_242 = arith.constant 0.353553385 : f32
    %615 = vector.broadcast %cst_242 : f32 to vector<8x8xf32>
    %616 = arith.mulf %614, %615 : vector<8x8xf32>
    %617 = vector.broadcast %6 : vector<1x8xf32> to vector<8x8xf32>
    %618 = arith.addf %616, %617 : vector<8x8xf32>
    %cst_243 = arith.constant dense<0xFF800000> : vector<8xf32>
    %619 = vector.multi_reduction <maximumf>, %618, %cst_243 [1] : vector<8x8xf32> to vector<8xf32>
    %620 = vector.shape_cast %619 : vector<8xf32> to vector<8x1xf32>
    %621 = vector.broadcast %620 : vector<8x1xf32> to vector<8x8xf32>
    %622 = arith.subf %618, %621 : vector<8x8xf32>
    %623 = math.exp %622 : vector<8x8xf32>
    %cst_244 = arith.constant dense<0.000000e+00> : vector<8xf32>
    %624 = vector.multi_reduction <add>, %623, %cst_244 [1] : vector<8x8xf32> to vector<8xf32>
    %625 = vector.shape_cast %624 : vector<8xf32> to vector<8x1xf32>
    %626 = tpu.reciprocal %625 {approx = true} : vector<8x1xf32> -> vector<8x1xf32>
    %627 = vector.broadcast %626 : vector<8x1xf32> to vector<8x8xf32>
    %628 = arith.mulf %623, %627 : vector<8x8xf32>
    %629 = arith.truncf %628 : vector<8x8xf32> to vector<8x8xbf16>
    %cst_245 = arith.constant dense<0.000000e+00> : vector<8x8xf32>
    %630 = tpu.matmul %629, %613, %cst_245 {dimension_numbers = #tpu.dot_dimension_numbers<[1], [0], [0], [1], [0, 0, 1, 1], [], []>} : vector<8x8xbf16>, vector<8x8xbf16>, vector<8x8xf32> -> vector<8x8xf32>
    %631 = vector.extract_strided_slice %578 {offsets = [1, 0, 0], sizes = [1, 8, 32], strides = [1, 1, 1]} : vector<4x8x32xbf16> to vector<1x8x32xbf16>
    %632 = vector.shape_cast %631 : vector<1x8x32xbf16> to vector<8x32xbf16>
    %633 = arith.truncf %630 : vector<8x8xf32> to vector<8x8xbf16>
    %cst_246 = arith.constant dense<0.000000e+00> : vector<8x32xf32>
    %634 = tpu.matmul %633, %632, %cst_246 {dimension_numbers = #tpu.dot_dimension_numbers<[1], [0], [0], [1], [0, 0, 1, 1], [], []>} : vector<8x8xbf16>, vector<8x32xbf16>, vector<8x32xf32> -> vector<8x32xf32>
    %635 = arith.addf %607, %634 : vector<8x32xf32>
    %636 = vector.extract_strided_slice %566 {offsets = [0, 16], sizes = [8, 8], strides = [1, 1]} : vector<8x32xf32> to vector<8x8xf32>
    %637 = arith.truncf %636 : vector<8x8xf32> to vector<8x8xbf16>
    %638 = vector.extract_strided_slice %575 {offsets = [0, 16], sizes = [8, 8], strides = [1, 1]} : vector<8x32xf32> to vector<8x8xf32>
    %639 = arith.truncf %638 : vector<8x8xf32> to vector<8x8xbf16>
    %640 = vector.extract_strided_slice %576 {offsets = [0, 16], sizes = [8, 8], strides = [1, 1]} : vector<8x32xf32> to vector<8x8xf32>
    %641 = arith.truncf %640 : vector<8x8xf32> to vector<8x8xbf16>
    %cst_247 = arith.constant dense<0.000000e+00> : vector<8x8xf32>
    %642 = tpu.matmul %637, %639, %cst_247 {dimension_numbers = #tpu.dot_dimension_numbers<[1], [1], [0], [0], [0, 0, 1, 0], [], []>} : vector<8x8xbf16>, vector<8x8xbf16>, vector<8x8xf32> -> vector<8x8xf32>
    %cst_248 = arith.constant 0.353553385 : f32
    %643 = vector.broadcast %cst_248 : f32 to vector<8x8xf32>
    %644 = arith.mulf %642, %643 : vector<8x8xf32>
    %645 = vector.broadcast %6 : vector<1x8xf32> to vector<8x8xf32>
    %646 = arith.addf %644, %645 : vector<8x8xf32>
    %cst_249 = arith.constant dense<0xFF800000> : vector<8xf32>
    %647 = vector.multi_reduction <maximumf>, %646, %cst_249 [1] : vector<8x8xf32> to vector<8xf32>
    %648 = vector.shape_cast %647 : vector<8xf32> to vector<8x1xf32>
    %649 = vector.broadcast %648 : vector<8x1xf32> to vector<8x8xf32>
    %650 = arith.subf %646, %649 : vector<8x8xf32>
    %651 = math.exp %650 : vector<8x8xf32>
    %cst_250 = arith.constant dense<0.000000e+00> : vector<8xf32>
    %652 = vector.multi_reduction <add>, %651, %cst_250 [1] : vector<8x8xf32> to vector<8xf32>
    %653 = vector.shape_cast %652 : vector<8xf32> to vector<8x1xf32>
    %654 = tpu.reciprocal %653 {approx = true} : vector<8x1xf32> -> vector<8x1xf32>
    %655 = vector.broadcast %654 : vector<8x1xf32> to vector<8x8xf32>
    %656 = arith.mulf %651, %655 : vector<8x8xf32>
    %657 = arith.truncf %656 : vector<8x8xf32> to vector<8x8xbf16>
    %cst_251 = arith.constant dense<0.000000e+00> : vector<8x8xf32>
    %658 = tpu.matmul %657, %641, %cst_251 {dimension_numbers = #tpu.dot_dimension_numbers<[1], [0], [0], [1], [0, 0, 1, 1], [], []>} : vector<8x8xbf16>, vector<8x8xbf16>, vector<8x8xf32> -> vector<8x8xf32>
    %659 = vector.extract_strided_slice %578 {offsets = [2, 0, 0], sizes = [1, 8, 32], strides = [1, 1, 1]} : vector<4x8x32xbf16> to vector<1x8x32xbf16>
    %660 = vector.shape_cast %659 : vector<1x8x32xbf16> to vector<8x32xbf16>
    %661 = arith.truncf %658 : vector<8x8xf32> to vector<8x8xbf16>
    %cst_252 = arith.constant dense<0.000000e+00> : vector<8x32xf32>
    %662 = tpu.matmul %661, %660, %cst_252 {dimension_numbers = #tpu.dot_dimension_numbers<[1], [0], [0], [1], [0, 0, 1, 1], [], []>} : vector<8x8xbf16>, vector<8x32xbf16>, vector<8x32xf32> -> vector<8x32xf32>
    %663 = arith.addf %635, %662 : vector<8x32xf32>
    %664 = vector.extract_strided_slice %566 {offsets = [0, 24], sizes = [8, 8], strides = [1, 1]} : vector<8x32xf32> to vector<8x8xf32>
    %665 = arith.truncf %664 : vector<8x8xf32> to vector<8x8xbf16>
    %666 = vector.extract_strided_slice %575 {offsets = [0, 24], sizes = [8, 8], strides = [1, 1]} : vector<8x32xf32> to vector<8x8xf32>
    %667 = arith.truncf %666 : vector<8x8xf32> to vector<8x8xbf16>
    %668 = vector.extract_strided_slice %576 {offsets = [0, 24], sizes = [8, 8], strides = [1, 1]} : vector<8x32xf32> to vector<8x8xf32>
    %669 = arith.truncf %668 : vector<8x8xf32> to vector<8x8xbf16>
    %cst_253 = arith.constant dense<0.000000e+00> : vector<8x8xf32>
    %670 = tpu.matmul %665, %667, %cst_253 {dimension_numbers = #tpu.dot_dimension_numbers<[1], [1], [0], [0], [0, 0, 1, 0], [], []>} : vector<8x8xbf16>, vector<8x8xbf16>, vector<8x8xf32> -> vector<8x8xf32>
    %cst_254 = arith.constant 0.353553385 : f32
    %671 = vector.broadcast %cst_254 : f32 to vector<8x8xf32>
    %672 = arith.mulf %670, %671 : vector<8x8xf32>
    %673 = vector.broadcast %6 : vector<1x8xf32> to vector<8x8xf32>
    %674 = arith.addf %672, %673 : vector<8x8xf32>
    %cst_255 = arith.constant dense<0xFF800000> : vector<8xf32>
    %675 = vector.multi_reduction <maximumf>, %674, %cst_255 [1] : vector<8x8xf32> to vector<8xf32>
    %676 = vector.shape_cast %675 : vector<8xf32> to vector<8x1xf32>
    %677 = vector.broadcast %676 : vector<8x1xf32> to vector<8x8xf32>
    %678 = arith.subf %674, %677 : vector<8x8xf32>
    %679 = math.exp %678 : vector<8x8xf32>
    %cst_256 = arith.constant dense<0.000000e+00> : vector<8xf32>
    %680 = vector.multi_reduction <add>, %679, %cst_256 [1] : vector<8x8xf32> to vector<8xf32>
    %681 = vector.shape_cast %680 : vector<8xf32> to vector<8x1xf32>
    %682 = tpu.reciprocal %681 {approx = true} : vector<8x1xf32> -> vector<8x1xf32>
    %683 = vector.broadcast %682 : vector<8x1xf32> to vector<8x8xf32>
    %684 = arith.mulf %679, %683 : vector<8x8xf32>
    %685 = arith.truncf %684 : vector<8x8xf32> to vector<8x8xbf16>
    %cst_257 = arith.constant dense<0.000000e+00> : vector<8x8xf32>
    %686 = tpu.matmul %685, %669, %cst_257 {dimension_numbers = #tpu.dot_dimension_numbers<[1], [0], [0], [1], [0, 0, 1, 1], [], []>} : vector<8x8xbf16>, vector<8x8xbf16>, vector<8x8xf32> -> vector<8x8xf32>
    %687 = vector.extract_strided_slice %578 {offsets = [3, 0, 0], sizes = [1, 8, 32], strides = [1, 1, 1]} : vector<4x8x32xbf16> to vector<1x8x32xbf16>
    %688 = vector.shape_cast %687 : vector<1x8x32xbf16> to vector<8x32xbf16>
    %689 = arith.truncf %686 : vector<8x8xf32> to vector<8x8xbf16>
    %cst_258 = arith.constant dense<0.000000e+00> : vector<8x32xf32>
    %690 = tpu.matmul %689, %688, %cst_258 {dimension_numbers = #tpu.dot_dimension_numbers<[1], [0], [0], [1], [0, 0, 1, 1], [], []>} : vector<8x8xbf16>, vector<8x32xbf16>, vector<8x32xf32> -> vector<8x32xf32>
    %691 = arith.addf %663, %690 : vector<8x32xf32>
    %692 = vector.broadcast %580 : vector<1x32xf32> to vector<8x32xf32>
    %693 = arith.addf %691, %692 : vector<8x32xf32>
    %694 = arith.addf %558, %693 : vector<8x32xf32>
    %c0_259 = arith.constant 0 : index
    %c0_260 = arith.constant 0 : index
    %c0_261 = arith.constant 0 : index
    %695 = vector.load %arg29[%c0_259, %c0_260, %c0_261] : memref<2x1x32xf32, #tpu.memory_space<vmem>>, vector<1x1x32xf32>
    %696 = vector.shape_cast %695 : vector<1x1x32xf32> to vector<1x32xf32>
    %c0_262 = arith.constant 0 : index
    %c0_263 = arith.constant 0 : index
    %c0_264 = arith.constant 0 : index
    %697 = vector.load %arg30[%c0_262, %c0_263, %c0_264] : memref<2x1x32xf32, #tpu.memory_space<vmem>>, vector<1x1x32xf32>
    %698 = vector.shape_cast %697 : vector<1x1x32xf32> to vector<1x32xf32>
    %cst_265 = arith.constant dense<0.000000e+00> : vector<8xf32>
    %699 = vector.multi_reduction <add>, %694, %cst_265 [1] : vector<8x32xf32> to vector<8xf32>
    %700 = vector.shape_cast %699 : vector<8xf32> to vector<8x1xf32>
    %cst_266 = arith.constant 3.200000e+01 : f32
    %701 = vector.broadcast %cst_266 : f32 to vector<8x1xf32>
    %702 = arith.divf %700, %701 : vector<8x1xf32>
    %703 = vector.broadcast %702 : vector<8x1xf32> to vector<8x32xf32>
    %704 = arith.subf %694, %703 : vector<8x32xf32>
    %705 = arith.mulf %704, %704 : vector<8x32xf32>
    %cst_267 = arith.constant dense<0.000000e+00> : vector<8xf32>
    %706 = vector.multi_reduction <add>, %705, %cst_267 [1] : vector<8x32xf32> to vector<8xf32>
    %707 = vector.shape_cast %706 : vector<8xf32> to vector<8x1xf32>
    %cst_268 = arith.constant 3.200000e+01 : f32
    %708 = vector.broadcast %cst_268 : f32 to vector<8x1xf32>
    %709 = arith.divf %707, %708 : vector<8x1xf32>
    %cst_269 = arith.constant 9.99999974E-6 : f32
    %710 = vector.broadcast %cst_269 : f32 to vector<8x1xf32>
    %711 = arith.addf %709, %710 : vector<8x1xf32>
    %712 = math.rsqrt %711 : vector<8x1xf32>
    %713 = vector.broadcast %712 : vector<8x1xf32> to vector<8x32xf32>
    %714 = arith.mulf %704, %713 : vector<8x32xf32>
    %715 = vector.broadcast %696 : vector<1x32xf32> to vector<8x32xf32>
    %716 = arith.mulf %714, %715 : vector<8x32xf32>
    %717 = vector.broadcast %698 : vector<1x32xf32> to vector<8x32xf32>
    %718 = arith.addf %716, %717 : vector<8x32xf32>
    %c0_270 = arith.constant 0 : index
    %c0_271 = arith.constant 0 : index
    %c0_272 = arith.constant 0 : index
    %719 = vector.load %arg33[%c0_270, %c0_271, %c0_272] : memref<2x32x64xbf16, #tpu.memory_space<vmem>>, vector<1x32x64xbf16>
    %720 = vector.shape_cast %719 : vector<1x32x64xbf16> to vector<32x64xbf16>
    %721 = arith.truncf %718 : vector<8x32xf32> to vector<8x32xbf16>
    %cst_273 = arith.constant dense<0.000000e+00> : vector<8x64xf32>
    %722 = tpu.matmul %721, %720, %cst_273 {dimension_numbers = #tpu.dot_dimension_numbers<[1], [0], [0], [1], [0, 0, 1, 1], [], []>} : vector<8x32xbf16>, vector<32x64xbf16>, vector<8x64xf32> -> vector<8x64xf32>
    %c0_274 = arith.constant 0 : index
    %c0_275 = arith.constant 0 : index
    %c0_276 = arith.constant 0 : index
    %723 = vector.load %arg34[%c0_274, %c0_275, %c0_276] : memref<2x1x64xf32, #tpu.memory_space<vmem>>, vector<1x1x64xf32>
    %724 = vector.shape_cast %723 : vector<1x1x64xf32> to vector<1x64xf32>
    %725 = vector.broadcast %724 : vector<1x64xf32> to vector<8x64xf32>
    %726 = arith.addf %722, %725 : vector<8x64xf32>
    %cst_277 = arith.constant 0.000000e+00 : f32
    %727 = vector.broadcast %cst_277 : f32 to vector<8x64xf32>
    %728 = arith.maximumf %726, %727 : vector<8x64xf32>
    %c0_278 = arith.constant 0 : index
    %c0_279 = arith.constant 0 : index
    %c0_280 = arith.constant 0 : index
    %729 = vector.load %arg35[%c0_278, %c0_279, %c0_280] : memref<2x64x32xbf16, #tpu.memory_space<vmem>>, vector<1x64x32xbf16>
    %730 = vector.shape_cast %729 : vector<1x64x32xbf16> to vector<64x32xbf16>
    %731 = arith.truncf %728 : vector<8x64xf32> to vector<8x64xbf16>
    %cst_281 = arith.constant dense<0.000000e+00> : vector<8x32xf32>
    %732 = tpu.matmul %731, %730, %cst_281 {dimension_numbers = #tpu.dot_dimension_numbers<[1], [0], [0], [1], [0, 0, 1, 1], [], []>} : vector<8x64xbf16>, vector<64x32xbf16>, vector<8x32xf32> -> vector<8x32xf32>
    %c0_282 = arith.constant 0 : index
    %c0_283 = arith.constant 0 : index
    %c0_284 = arith.constant 0 : index
    %733 = vector.load %arg36[%c0_282, %c0_283, %c0_284] : memref<2x1x32xf32, #tpu.memory_space<vmem>>, vector<1x1x32xf32>
    %734 = vector.shape_cast %733 : vector<1x1x32xf32> to vector<1x32xf32>
    %735 = vector.broadcast %734 : vector<1x32xf32> to vector<8x32xf32>
    %736 = arith.addf %732, %735 : vector<8x32xf32>
    %737 = arith.addf %718, %736 : vector<8x32xf32>
    %c0_285 = arith.constant 0 : index
    %c0_286 = arith.constant 0 : index
    %c0_287 = arith.constant 0 : index
    %738 = vector.load %arg31[%c0_285, %c0_286, %c0_287] : memref<2x1x32xf32, #tpu.memory_space<vmem>>, vector<1x1x32xf32>
    %739 = vector.shape_cast %738 : vector<1x1x32xf32> to vector<1x32xf32>
    %c0_288 = arith.constant 0 : index
    %c0_289 = arith.constant 0 : index
    %c0_290 = arith.constant 0 : index
    %740 = vector.load %arg32[%c0_288, %c0_289, %c0_290] : memref<2x1x32xf32, #tpu.memory_space<vmem>>, vector<1x1x32xf32>
    %741 = vector.shape_cast %740 : vector<1x1x32xf32> to vector<1x32xf32>
    %cst_291 = arith.constant dense<0.000000e+00> : vector<8xf32>
    %742 = vector.multi_reduction <add>, %737, %cst_291 [1] : vector<8x32xf32> to vector<8xf32>
    %743 = vector.shape_cast %742 : vector<8xf32> to vector<8x1xf32>
    %cst_292 = arith.constant 3.200000e+01 : f32
    %744 = vector.broadcast %cst_292 : f32 to vector<8x1xf32>
    %745 = arith.divf %743, %744 : vector<8x1xf32>
    %746 = vector.broadcast %745 : vector<8x1xf32> to vector<8x32xf32>
    %747 = arith.subf %737, %746 : vector<8x32xf32>
    %748 = arith.mulf %747, %747 : vector<8x32xf32>
    %cst_293 = arith.constant dense<0.000000e+00> : vector<8xf32>
    %749 = vector.multi_reduction <add>, %748, %cst_293 [1] : vector<8x32xf32> to vector<8xf32>
    %750 = vector.shape_cast %749 : vector<8xf32> to vector<8x1xf32>
    %cst_294 = arith.constant 3.200000e+01 : f32
    %751 = vector.broadcast %cst_294 : f32 to vector<8x1xf32>
    %752 = arith.divf %750, %751 : vector<8x1xf32>
    %cst_295 = arith.constant 9.99999974E-6 : f32
    %753 = vector.broadcast %cst_295 : f32 to vector<8x1xf32>
    %754 = arith.addf %752, %753 : vector<8x1xf32>
    %755 = math.rsqrt %754 : vector<8x1xf32>
    %756 = vector.broadcast %755 : vector<8x1xf32> to vector<8x32xf32>
    %757 = arith.mulf %747, %756 : vector<8x32xf32>
    %758 = vector.broadcast %739 : vector<1x32xf32> to vector<8x32xf32>
    %759 = arith.mulf %757, %758 : vector<8x32xf32>
    %760 = vector.broadcast %741 : vector<1x32xf32> to vector<8x32xf32>
    %761 = arith.addf %759, %760 : vector<8x32xf32>
    %c1_296 = arith.constant 1 : index
    %c0_297 = arith.constant 0 : index
    %c0_298 = arith.constant 0 : index
    %762 = vector.load %arg17[%c1_296, %c0_297, %c0_298] : memref<2x32x96xbf16, #tpu.memory_space<vmem>>, vector<1x32x96xbf16>
    %763 = vector.shape_cast %762 : vector<1x32x96xbf16> to vector<32x96xbf16>
    %764 = arith.truncf %761 : vector<8x32xf32> to vector<8x32xbf16>
    %cst_299 = arith.constant dense<0.000000e+00> : vector<8x96xf32>
    %765 = tpu.matmul %764, %763, %cst_299 {dimension_numbers = #tpu.dot_dimension_numbers<[1], [0], [0], [1], [0, 0, 1, 1], [], []>} : vector<8x32xbf16>, vector<32x96xbf16>, vector<8x96xf32> -> vector<8x96xf32>
    %c1_300 = arith.constant 1 : index
    %c0_301 = arith.constant 0 : index
    %c0_302 = arith.constant 0 : index
    %766 = vector.load %arg18[%c1_300, %c0_301, %c0_302] : memref<2x1x96xf32, #tpu.memory_space<vmem>>, vector<1x1x96xf32>
    %767 = vector.shape_cast %766 : vector<1x1x96xf32> to vector<1x96xf32>
    %768 = vector.broadcast %767 : vector<1x96xf32> to vector<8x96xf32>
    %769 = arith.addf %765, %768 : vector<8x96xf32>
    %770 = vector.extract_strided_slice %769 {offsets = [0, 0], sizes = [8, 32], strides = [1, 1]} : vector<8x96xf32> to vector<8x32xf32>
    %771 = vector.extract_strided_slice %769 {offsets = [0, 32], sizes = [8, 32], strides = [1, 1]} : vector<8x96xf32> to vector<8x32xf32>
    %772 = vector.extract_strided_slice %769 {offsets = [0, 64], sizes = [8, 32], strides = [1, 1]} : vector<8x96xf32> to vector<8x32xf32>
    %c1_303 = arith.constant 1 : index
    %c0_304 = arith.constant 0 : index
    %c0_305 = arith.constant 0 : index
    %c0_306 = arith.constant 0 : index
    %773 = vector.load %arg19[%c1_303, %c0_304, %c0_305, %c0_306] : memref<2x4x8x32xbf16, #tpu.memory_space<vmem>>, vector<1x4x8x32xbf16>
    %774 = vector.shape_cast %773 : vector<1x4x8x32xbf16> to vector<4x8x32xbf16>
    %c1_307 = arith.constant 1 : index
    %c0_308 = arith.constant 0 : index
    %c0_309 = arith.constant 0 : index
    %775 = vector.load %arg20[%c1_307, %c0_308, %c0_309] : memref<2x1x32xf32, #tpu.memory_space<vmem>>, vector<1x1x32xf32>
    %776 = vector.shape_cast %775 : vector<1x1x32xf32> to vector<1x32xf32>
    %777 = vector.extract_strided_slice %770 {offsets = [0, 0], sizes = [8, 8], strides = [1, 1]} : vector<8x32xf32> to vector<8x8xf32>
    %778 = arith.truncf %777 : vector<8x8xf32> to vector<8x8xbf16>
    %779 = vector.extract_strided_slice %771 {offsets = [0, 0], sizes = [8, 8], strides = [1, 1]} : vector<8x32xf32> to vector<8x8xf32>
    %780 = arith.truncf %779 : vector<8x8xf32> to vector<8x8xbf16>
    %781 = vector.extract_strided_slice %772 {offsets = [0, 0], sizes = [8, 8], strides = [1, 1]} : vector<8x32xf32> to vector<8x8xf32>
    %782 = arith.truncf %781 : vector<8x8xf32> to vector<8x8xbf16>
    %cst_310 = arith.constant dense<0.000000e+00> : vector<8x8xf32>
    %783 = tpu.matmul %778, %780, %cst_310 {dimension_numbers = #tpu.dot_dimension_numbers<[1], [1], [0], [0], [0, 0, 1, 0], [], []>} : vector<8x8xbf16>, vector<8x8xbf16>, vector<8x8xf32> -> vector<8x8xf32>
    %cst_311 = arith.constant 0.353553385 : f32
    %784 = vector.broadcast %cst_311 : f32 to vector<8x8xf32>
    %785 = arith.mulf %783, %784 : vector<8x8xf32>
    %786 = arith.addf %785, %13 : vector<8x8xf32>
    %cst_312 = arith.constant dense<0xFF800000> : vector<8xf32>
    %787 = vector.multi_reduction <maximumf>, %786, %cst_312 [1] : vector<8x8xf32> to vector<8xf32>
    %788 = vector.shape_cast %787 : vector<8xf32> to vector<8x1xf32>
    %789 = vector.broadcast %788 : vector<8x1xf32> to vector<8x8xf32>
    %790 = arith.subf %786, %789 : vector<8x8xf32>
    %791 = math.exp %790 : vector<8x8xf32>
    %cst_313 = arith.constant dense<0.000000e+00> : vector<8xf32>
    %792 = vector.multi_reduction <add>, %791, %cst_313 [1] : vector<8x8xf32> to vector<8xf32>
    %793 = vector.shape_cast %792 : vector<8xf32> to vector<8x1xf32>
    %794 = tpu.reciprocal %793 {approx = true} : vector<8x1xf32> -> vector<8x1xf32>
    %795 = vector.broadcast %794 : vector<8x1xf32> to vector<8x8xf32>
    %796 = arith.mulf %791, %795 : vector<8x8xf32>
    %797 = arith.truncf %796 : vector<8x8xf32> to vector<8x8xbf16>
    %cst_314 = arith.constant dense<0.000000e+00> : vector<8x8xf32>
    %798 = tpu.matmul %797, %782, %cst_314 {dimension_numbers = #tpu.dot_dimension_numbers<[1], [0], [0], [1], [0, 0, 1, 1], [], []>} : vector<8x8xbf16>, vector<8x8xbf16>, vector<8x8xf32> -> vector<8x8xf32>
    %799 = vector.extract_strided_slice %774 {offsets = [0, 0, 0], sizes = [1, 8, 32], strides = [1, 1, 1]} : vector<4x8x32xbf16> to vector<1x8x32xbf16>
    %800 = vector.shape_cast %799 : vector<1x8x32xbf16> to vector<8x32xbf16>
    %801 = arith.truncf %798 : vector<8x8xf32> to vector<8x8xbf16>
    %cst_315 = arith.constant dense<0.000000e+00> : vector<8x32xf32>
    %802 = tpu.matmul %801, %800, %cst_315 {dimension_numbers = #tpu.dot_dimension_numbers<[1], [0], [0], [1], [0, 0, 1, 1], [], []>} : vector<8x8xbf16>, vector<8x32xbf16>, vector<8x32xf32> -> vector<8x32xf32>
    %803 = vector.extract_strided_slice %770 {offsets = [0, 8], sizes = [8, 8], strides = [1, 1]} : vector<8x32xf32> to vector<8x8xf32>
    %804 = arith.truncf %803 : vector<8x8xf32> to vector<8x8xbf16>
    %805 = vector.extract_strided_slice %771 {offsets = [0, 8], sizes = [8, 8], strides = [1, 1]} : vector<8x32xf32> to vector<8x8xf32>
    %806 = arith.truncf %805 : vector<8x8xf32> to vector<8x8xbf16>
    %807 = vector.extract_strided_slice %772 {offsets = [0, 8], sizes = [8, 8], strides = [1, 1]} : vector<8x32xf32> to vector<8x8xf32>
    %808 = arith.truncf %807 : vector<8x8xf32> to vector<8x8xbf16>
    %cst_316 = arith.constant dense<0.000000e+00> : vector<8x8xf32>
    %809 = tpu.matmul %804, %806, %cst_316 {dimension_numbers = #tpu.dot_dimension_numbers<[1], [1], [0], [0], [0, 0, 1, 0], [], []>} : vector<8x8xbf16>, vector<8x8xbf16>, vector<8x8xf32> -> vector<8x8xf32>
    %cst_317 = arith.constant 0.353553385 : f32
    %810 = vector.broadcast %cst_317 : f32 to vector<8x8xf32>
    %811 = arith.mulf %809, %810 : vector<8x8xf32>
    %812 = arith.addf %811, %13 : vector<8x8xf32>
    %cst_318 = arith.constant dense<0xFF800000> : vector<8xf32>
    %813 = vector.multi_reduction <maximumf>, %812, %cst_318 [1] : vector<8x8xf32> to vector<8xf32>
    %814 = vector.shape_cast %813 : vector<8xf32> to vector<8x1xf32>
    %815 = vector.broadcast %814 : vector<8x1xf32> to vector<8x8xf32>
    %816 = arith.subf %812, %815 : vector<8x8xf32>
    %817 = math.exp %816 : vector<8x8xf32>
    %cst_319 = arith.constant dense<0.000000e+00> : vector<8xf32>
    %818 = vector.multi_reduction <add>, %817, %cst_319 [1] : vector<8x8xf32> to vector<8xf32>
    %819 = vector.shape_cast %818 : vector<8xf32> to vector<8x1xf32>
    %820 = tpu.reciprocal %819 {approx = true} : vector<8x1xf32> -> vector<8x1xf32>
    %821 = vector.broadcast %820 : vector<8x1xf32> to vector<8x8xf32>
    %822 = arith.mulf %817, %821 : vector<8x8xf32>
    %823 = arith.truncf %822 : vector<8x8xf32> to vector<8x8xbf16>
    %cst_320 = arith.constant dense<0.000000e+00> : vector<8x8xf32>
    %824 = tpu.matmul %823, %808, %cst_320 {dimension_numbers = #tpu.dot_dimension_numbers<[1], [0], [0], [1], [0, 0, 1, 1], [], []>} : vector<8x8xbf16>, vector<8x8xbf16>, vector<8x8xf32> -> vector<8x8xf32>
    %825 = vector.extract_strided_slice %774 {offsets = [1, 0, 0], sizes = [1, 8, 32], strides = [1, 1, 1]} : vector<4x8x32xbf16> to vector<1x8x32xbf16>
    %826 = vector.shape_cast %825 : vector<1x8x32xbf16> to vector<8x32xbf16>
    %827 = arith.truncf %824 : vector<8x8xf32> to vector<8x8xbf16>
    %cst_321 = arith.constant dense<0.000000e+00> : vector<8x32xf32>
    %828 = tpu.matmul %827, %826, %cst_321 {dimension_numbers = #tpu.dot_dimension_numbers<[1], [0], [0], [1], [0, 0, 1, 1], [], []>} : vector<8x8xbf16>, vector<8x32xbf16>, vector<8x32xf32> -> vector<8x32xf32>
    %829 = arith.addf %802, %828 : vector<8x32xf32>
    %830 = vector.extract_strided_slice %770 {offsets = [0, 16], sizes = [8, 8], strides = [1, 1]} : vector<8x32xf32> to vector<8x8xf32>
    %831 = arith.truncf %830 : vector<8x8xf32> to vector<8x8xbf16>
    %832 = vector.extract_strided_slice %771 {offsets = [0, 16], sizes = [8, 8], strides = [1, 1]} : vector<8x32xf32> to vector<8x8xf32>
    %833 = arith.truncf %832 : vector<8x8xf32> to vector<8x8xbf16>
    %834 = vector.extract_strided_slice %772 {offsets = [0, 16], sizes = [8, 8], strides = [1, 1]} : vector<8x32xf32> to vector<8x8xf32>
    %835 = arith.truncf %834 : vector<8x8xf32> to vector<8x8xbf16>
    %cst_322 = arith.constant dense<0.000000e+00> : vector<8x8xf32>
    %836 = tpu.matmul %831, %833, %cst_322 {dimension_numbers = #tpu.dot_dimension_numbers<[1], [1], [0], [0], [0, 0, 1, 0], [], []>} : vector<8x8xbf16>, vector<8x8xbf16>, vector<8x8xf32> -> vector<8x8xf32>
    %cst_323 = arith.constant 0.353553385 : f32
    %837 = vector.broadcast %cst_323 : f32 to vector<8x8xf32>
    %838 = arith.mulf %836, %837 : vector<8x8xf32>
    %839 = arith.addf %838, %13 : vector<8x8xf32>
    %cst_324 = arith.constant dense<0xFF800000> : vector<8xf32>
    %840 = vector.multi_reduction <maximumf>, %839, %cst_324 [1] : vector<8x8xf32> to vector<8xf32>
    %841 = vector.shape_cast %840 : vector<8xf32> to vector<8x1xf32>
    %842 = vector.broadcast %841 : vector<8x1xf32> to vector<8x8xf32>
    %843 = arith.subf %839, %842 : vector<8x8xf32>
    %844 = math.exp %843 : vector<8x8xf32>
    %cst_325 = arith.constant dense<0.000000e+00> : vector<8xf32>
    %845 = vector.multi_reduction <add>, %844, %cst_325 [1] : vector<8x8xf32> to vector<8xf32>
    %846 = vector.shape_cast %845 : vector<8xf32> to vector<8x1xf32>
    %847 = tpu.reciprocal %846 {approx = true} : vector<8x1xf32> -> vector<8x1xf32>
    %848 = vector.broadcast %847 : vector<8x1xf32> to vector<8x8xf32>
    %849 = arith.mulf %844, %848 : vector<8x8xf32>
    %850 = arith.truncf %849 : vector<8x8xf32> to vector<8x8xbf16>
    %cst_326 = arith.constant dense<0.000000e+00> : vector<8x8xf32>
    %851 = tpu.matmul %850, %835, %cst_326 {dimension_numbers = #tpu.dot_dimension_numbers<[1], [0], [0], [1], [0, 0, 1, 1], [], []>} : vector<8x8xbf16>, vector<8x8xbf16>, vector<8x8xf32> -> vector<8x8xf32>
    %852 = vector.extract_strided_slice %774 {offsets = [2, 0, 0], sizes = [1, 8, 32], strides = [1, 1, 1]} : vector<4x8x32xbf16> to vector<1x8x32xbf16>
    %853 = vector.shape_cast %852 : vector<1x8x32xbf16> to vector<8x32xbf16>
    %854 = arith.truncf %851 : vector<8x8xf32> to vector<8x8xbf16>
    %cst_327 = arith.constant dense<0.000000e+00> : vector<8x32xf32>
    %855 = tpu.matmul %854, %853, %cst_327 {dimension_numbers = #tpu.dot_dimension_numbers<[1], [0], [0], [1], [0, 0, 1, 1], [], []>} : vector<8x8xbf16>, vector<8x32xbf16>, vector<8x32xf32> -> vector<8x32xf32>
    %856 = arith.addf %829, %855 : vector<8x32xf32>
    %857 = vector.extract_strided_slice %770 {offsets = [0, 24], sizes = [8, 8], strides = [1, 1]} : vector<8x32xf32> to vector<8x8xf32>
    %858 = arith.truncf %857 : vector<8x8xf32> to vector<8x8xbf16>
    %859 = vector.extract_strided_slice %771 {offsets = [0, 24], sizes = [8, 8], strides = [1, 1]} : vector<8x32xf32> to vector<8x8xf32>
    %860 = arith.truncf %859 : vector<8x8xf32> to vector<8x8xbf16>
    %861 = vector.extract_strided_slice %772 {offsets = [0, 24], sizes = [8, 8], strides = [1, 1]} : vector<8x32xf32> to vector<8x8xf32>
    %862 = arith.truncf %861 : vector<8x8xf32> to vector<8x8xbf16>
    %cst_328 = arith.constant dense<0.000000e+00> : vector<8x8xf32>
    %863 = tpu.matmul %858, %860, %cst_328 {dimension_numbers = #tpu.dot_dimension_numbers<[1], [1], [0], [0], [0, 0, 1, 0], [], []>} : vector<8x8xbf16>, vector<8x8xbf16>, vector<8x8xf32> -> vector<8x8xf32>
    %cst_329 = arith.constant 0.353553385 : f32
    %864 = vector.broadcast %cst_329 : f32 to vector<8x8xf32>
    %865 = arith.mulf %863, %864 : vector<8x8xf32>
    %866 = arith.addf %865, %13 : vector<8x8xf32>
    %cst_330 = arith.constant dense<0xFF800000> : vector<8xf32>
    %867 = vector.multi_reduction <maximumf>, %866, %cst_330 [1] : vector<8x8xf32> to vector<8xf32>
    %868 = vector.shape_cast %867 : vector<8xf32> to vector<8x1xf32>
    %869 = vector.broadcast %868 : vector<8x1xf32> to vector<8x8xf32>
    %870 = arith.subf %866, %869 : vector<8x8xf32>
    %871 = math.exp %870 : vector<8x8xf32>
    %cst_331 = arith.constant dense<0.000000e+00> : vector<8xf32>
    %872 = vector.multi_reduction <add>, %871, %cst_331 [1] : vector<8x8xf32> to vector<8xf32>
    %873 = vector.shape_cast %872 : vector<8xf32> to vector<8x1xf32>
    %874 = tpu.reciprocal %873 {approx = true} : vector<8x1xf32> -> vector<8x1xf32>
    %875 = vector.broadcast %874 : vector<8x1xf32> to vector<8x8xf32>
    %876 = arith.mulf %871, %875 : vector<8x8xf32>
    %877 = arith.truncf %876 : vector<8x8xf32> to vector<8x8xbf16>
    %cst_332 = arith.constant dense<0.000000e+00> : vector<8x8xf32>
    %878 = tpu.matmul %877, %862, %cst_332 {dimension_numbers = #tpu.dot_dimension_numbers<[1], [0], [0], [1], [0, 0, 1, 1], [], []>} : vector<8x8xbf16>, vector<8x8xbf16>, vector<8x8xf32> -> vector<8x8xf32>
    %879 = vector.extract_strided_slice %774 {offsets = [3, 0, 0], sizes = [1, 8, 32], strides = [1, 1, 1]} : vector<4x8x32xbf16> to vector<1x8x32xbf16>
    %880 = vector.shape_cast %879 : vector<1x8x32xbf16> to vector<8x32xbf16>
    %881 = arith.truncf %878 : vector<8x8xf32> to vector<8x8xbf16>
    %cst_333 = arith.constant dense<0.000000e+00> : vector<8x32xf32>
    %882 = tpu.matmul %881, %880, %cst_333 {dimension_numbers = #tpu.dot_dimension_numbers<[1], [0], [0], [1], [0, 0, 1, 1], [], []>} : vector<8x8xbf16>, vector<8x32xbf16>, vector<8x32xf32> -> vector<8x32xf32>
    %883 = arith.addf %856, %882 : vector<8x32xf32>
    %884 = vector.broadcast %776 : vector<1x32xf32> to vector<8x32xf32>
    %885 = arith.addf %883, %884 : vector<8x32xf32>
    %886 = arith.addf %761, %885 : vector<8x32xf32>
    %c1_334 = arith.constant 1 : index
    %c0_335 = arith.constant 0 : index
    %c0_336 = arith.constant 0 : index
    %887 = vector.load %arg27[%c1_334, %c0_335, %c0_336] : memref<2x1x32xf32, #tpu.memory_space<vmem>>, vector<1x1x32xf32>
    %888 = vector.shape_cast %887 : vector<1x1x32xf32> to vector<1x32xf32>
    %c1_337 = arith.constant 1 : index
    %c0_338 = arith.constant 0 : index
    %c0_339 = arith.constant 0 : index
    %889 = vector.load %arg28[%c1_337, %c0_338, %c0_339] : memref<2x1x32xf32, #tpu.memory_space<vmem>>, vector<1x1x32xf32>
    %890 = vector.shape_cast %889 : vector<1x1x32xf32> to vector<1x32xf32>
    %cst_340 = arith.constant dense<0.000000e+00> : vector<8xf32>
    %891 = vector.multi_reduction <add>, %886, %cst_340 [1] : vector<8x32xf32> to vector<8xf32>
    %892 = vector.shape_cast %891 : vector<8xf32> to vector<8x1xf32>
    %cst_341 = arith.constant 3.200000e+01 : f32
    %893 = vector.broadcast %cst_341 : f32 to vector<8x1xf32>
    %894 = arith.divf %892, %893 : vector<8x1xf32>
    %895 = vector.broadcast %894 : vector<8x1xf32> to vector<8x32xf32>
    %896 = arith.subf %886, %895 : vector<8x32xf32>
    %897 = arith.mulf %896, %896 : vector<8x32xf32>
    %cst_342 = arith.constant dense<0.000000e+00> : vector<8xf32>
    %898 = vector.multi_reduction <add>, %897, %cst_342 [1] : vector<8x32xf32> to vector<8xf32>
    %899 = vector.shape_cast %898 : vector<8xf32> to vector<8x1xf32>
    %cst_343 = arith.constant 3.200000e+01 : f32
    %900 = vector.broadcast %cst_343 : f32 to vector<8x1xf32>
    %901 = arith.divf %899, %900 : vector<8x1xf32>
    %cst_344 = arith.constant 9.99999974E-6 : f32
    %902 = vector.broadcast %cst_344 : f32 to vector<8x1xf32>
    %903 = arith.addf %901, %902 : vector<8x1xf32>
    %904 = math.rsqrt %903 : vector<8x1xf32>
    %905 = vector.broadcast %904 : vector<8x1xf32> to vector<8x32xf32>
    %906 = arith.mulf %896, %905 : vector<8x32xf32>
    %907 = vector.broadcast %888 : vector<1x32xf32> to vector<8x32xf32>
    %908 = arith.mulf %906, %907 : vector<8x32xf32>
    %909 = vector.broadcast %890 : vector<1x32xf32> to vector<8x32xf32>
    %910 = arith.addf %908, %909 : vector<8x32xf32>
    %c1_345 = arith.constant 1 : index
    %c0_346 = arith.constant 0 : index
    %c0_347 = arith.constant 0 : index
    %911 = vector.load %arg21[%c1_345, %c0_346, %c0_347] : memref<2x32x32xbf16, #tpu.memory_space<vmem>>, vector<1x32x32xbf16>
    %912 = vector.shape_cast %911 : vector<1x32x32xbf16> to vector<32x32xbf16>
    %913 = arith.truncf %910 : vector<8x32xf32> to vector<8x32xbf16>
    %cst_348 = arith.constant dense<0.000000e+00> : vector<8x32xf32>
    %914 = tpu.matmul %913, %912, %cst_348 {dimension_numbers = #tpu.dot_dimension_numbers<[1], [0], [0], [1], [0, 0, 1, 1], [], []>} : vector<8x32xbf16>, vector<32x32xbf16>, vector<8x32xf32> -> vector<8x32xf32>
    %c1_349 = arith.constant 1 : index
    %c0_350 = arith.constant 0 : index
    %c0_351 = arith.constant 0 : index
    %915 = vector.load %arg22[%c1_349, %c0_350, %c0_351] : memref<2x1x32xf32, #tpu.memory_space<vmem>>, vector<1x1x32xf32>
    %916 = vector.shape_cast %915 : vector<1x1x32xf32> to vector<1x32xf32>
    %917 = vector.broadcast %916 : vector<1x32xf32> to vector<8x32xf32>
    %918 = arith.addf %914, %917 : vector<8x32xf32>
    %c1_352 = arith.constant 1 : index
    %c0_353 = arith.constant 0 : index
    %c0_354 = arith.constant 0 : index
    %919 = vector.load %arg23[%c1_352, %c0_353, %c0_354] : memref<2x32x64xbf16, #tpu.memory_space<vmem>>, vector<1x32x64xbf16>
    %920 = vector.shape_cast %919 : vector<1x32x64xbf16> to vector<32x64xbf16>
    %921 = arith.truncf %407 : vector<8x32xf32> to vector<8x32xbf16>
    %cst_355 = arith.constant dense<0.000000e+00> : vector<8x64xf32>
    %922 = tpu.matmul %921, %920, %cst_355 {dimension_numbers = #tpu.dot_dimension_numbers<[1], [0], [0], [1], [0, 0, 1, 1], [], []>} : vector<8x32xbf16>, vector<32x64xbf16>, vector<8x64xf32> -> vector<8x64xf32>
    %c1_356 = arith.constant 1 : index
    %c0_357 = arith.constant 0 : index
    %c0_358 = arith.constant 0 : index
    %923 = vector.load %arg24[%c1_356, %c0_357, %c0_358] : memref<2x1x64xf32, #tpu.memory_space<vmem>>, vector<1x1x64xf32>
    %924 = vector.shape_cast %923 : vector<1x1x64xf32> to vector<1x64xf32>
    %925 = vector.broadcast %924 : vector<1x64xf32> to vector<8x64xf32>
    %926 = arith.addf %922, %925 : vector<8x64xf32>
    %927 = vector.extract_strided_slice %926 {offsets = [0, 0], sizes = [8, 32], strides = [1, 1]} : vector<8x64xf32> to vector<8x32xf32>
    %928 = vector.extract_strided_slice %926 {offsets = [0, 32], sizes = [8, 32], strides = [1, 1]} : vector<8x64xf32> to vector<8x32xf32>
    %c1_359 = arith.constant 1 : index
    %c0_360 = arith.constant 0 : index
    %c0_361 = arith.constant 0 : index
    %c0_362 = arith.constant 0 : index
    %929 = vector.load %arg25[%c1_359, %c0_360, %c0_361, %c0_362] : memref<2x4x8x32xbf16, #tpu.memory_space<vmem>>, vector<1x4x8x32xbf16>
    %930 = vector.shape_cast %929 : vector<1x4x8x32xbf16> to vector<4x8x32xbf16>
    %c1_363 = arith.constant 1 : index
    %c0_364 = arith.constant 0 : index
    %c0_365 = arith.constant 0 : index
    %931 = vector.load %arg26[%c1_363, %c0_364, %c0_365] : memref<2x1x32xf32, #tpu.memory_space<vmem>>, vector<1x1x32xf32>
    %932 = vector.shape_cast %931 : vector<1x1x32xf32> to vector<1x32xf32>
    %933 = vector.extract_strided_slice %918 {offsets = [0, 0], sizes = [8, 8], strides = [1, 1]} : vector<8x32xf32> to vector<8x8xf32>
    %934 = arith.truncf %933 : vector<8x8xf32> to vector<8x8xbf16>
    %935 = vector.extract_strided_slice %927 {offsets = [0, 0], sizes = [8, 8], strides = [1, 1]} : vector<8x32xf32> to vector<8x8xf32>
    %936 = arith.truncf %935 : vector<8x8xf32> to vector<8x8xbf16>
    %937 = vector.extract_strided_slice %928 {offsets = [0, 0], sizes = [8, 8], strides = [1, 1]} : vector<8x32xf32> to vector<8x8xf32>
    %938 = arith.truncf %937 : vector<8x8xf32> to vector<8x8xbf16>
    %cst_366 = arith.constant dense<0.000000e+00> : vector<8x8xf32>
    %939 = tpu.matmul %934, %936, %cst_366 {dimension_numbers = #tpu.dot_dimension_numbers<[1], [1], [0], [0], [0, 0, 1, 0], [], []>} : vector<8x8xbf16>, vector<8x8xbf16>, vector<8x8xf32> -> vector<8x8xf32>
    %cst_367 = arith.constant 0.353553385 : f32
    %940 = vector.broadcast %cst_367 : f32 to vector<8x8xf32>
    %941 = arith.mulf %939, %940 : vector<8x8xf32>
    %942 = vector.broadcast %6 : vector<1x8xf32> to vector<8x8xf32>
    %943 = arith.addf %941, %942 : vector<8x8xf32>
    %cst_368 = arith.constant dense<0xFF800000> : vector<8xf32>
    %944 = vector.multi_reduction <maximumf>, %943, %cst_368 [1] : vector<8x8xf32> to vector<8xf32>
    %945 = vector.shape_cast %944 : vector<8xf32> to vector<8x1xf32>
    %946 = vector.broadcast %945 : vector<8x1xf32> to vector<8x8xf32>
    %947 = arith.subf %943, %946 : vector<8x8xf32>
    %948 = math.exp %947 : vector<8x8xf32>
    %cst_369 = arith.constant dense<0.000000e+00> : vector<8xf32>
    %949 = vector.multi_reduction <add>, %948, %cst_369 [1] : vector<8x8xf32> to vector<8xf32>
    %950 = vector.shape_cast %949 : vector<8xf32> to vector<8x1xf32>
    %951 = tpu.reciprocal %950 {approx = true} : vector<8x1xf32> -> vector<8x1xf32>
    %952 = vector.broadcast %951 : vector<8x1xf32> to vector<8x8xf32>
    %953 = arith.mulf %948, %952 : vector<8x8xf32>
    %954 = arith.truncf %953 : vector<8x8xf32> to vector<8x8xbf16>
    %cst_370 = arith.constant dense<0.000000e+00> : vector<8x8xf32>
    %955 = tpu.matmul %954, %938, %cst_370 {dimension_numbers = #tpu.dot_dimension_numbers<[1], [0], [0], [1], [0, 0, 1, 1], [], []>} : vector<8x8xbf16>, vector<8x8xbf16>, vector<8x8xf32> -> vector<8x8xf32>
    %956 = vector.extract_strided_slice %930 {offsets = [0, 0, 0], sizes = [1, 8, 32], strides = [1, 1, 1]} : vector<4x8x32xbf16> to vector<1x8x32xbf16>
    %957 = vector.shape_cast %956 : vector<1x8x32xbf16> to vector<8x32xbf16>
    %958 = arith.truncf %955 : vector<8x8xf32> to vector<8x8xbf16>
    %cst_371 = arith.constant dense<0.000000e+00> : vector<8x32xf32>
    %959 = tpu.matmul %958, %957, %cst_371 {dimension_numbers = #tpu.dot_dimension_numbers<[1], [0], [0], [1], [0, 0, 1, 1], [], []>} : vector<8x8xbf16>, vector<8x32xbf16>, vector<8x32xf32> -> vector<8x32xf32>
    %960 = vector.extract_strided_slice %918 {offsets = [0, 8], sizes = [8, 8], strides = [1, 1]} : vector<8x32xf32> to vector<8x8xf32>
    %961 = arith.truncf %960 : vector<8x8xf32> to vector<8x8xbf16>
    %962 = vector.extract_strided_slice %927 {offsets = [0, 8], sizes = [8, 8], strides = [1, 1]} : vector<8x32xf32> to vector<8x8xf32>
    %963 = arith.truncf %962 : vector<8x8xf32> to vector<8x8xbf16>
    %964 = vector.extract_strided_slice %928 {offsets = [0, 8], sizes = [8, 8], strides = [1, 1]} : vector<8x32xf32> to vector<8x8xf32>
    %965 = arith.truncf %964 : vector<8x8xf32> to vector<8x8xbf16>
    %cst_372 = arith.constant dense<0.000000e+00> : vector<8x8xf32>
    %966 = tpu.matmul %961, %963, %cst_372 {dimension_numbers = #tpu.dot_dimension_numbers<[1], [1], [0], [0], [0, 0, 1, 0], [], []>} : vector<8x8xbf16>, vector<8x8xbf16>, vector<8x8xf32> -> vector<8x8xf32>
    %cst_373 = arith.constant 0.353553385 : f32
    %967 = vector.broadcast %cst_373 : f32 to vector<8x8xf32>
    %968 = arith.mulf %966, %967 : vector<8x8xf32>
    %969 = vector.broadcast %6 : vector<1x8xf32> to vector<8x8xf32>
    %970 = arith.addf %968, %969 : vector<8x8xf32>
    %cst_374 = arith.constant dense<0xFF800000> : vector<8xf32>
    %971 = vector.multi_reduction <maximumf>, %970, %cst_374 [1] : vector<8x8xf32> to vector<8xf32>
    %972 = vector.shape_cast %971 : vector<8xf32> to vector<8x1xf32>
    %973 = vector.broadcast %972 : vector<8x1xf32> to vector<8x8xf32>
    %974 = arith.subf %970, %973 : vector<8x8xf32>
    %975 = math.exp %974 : vector<8x8xf32>
    %cst_375 = arith.constant dense<0.000000e+00> : vector<8xf32>
    %976 = vector.multi_reduction <add>, %975, %cst_375 [1] : vector<8x8xf32> to vector<8xf32>
    %977 = vector.shape_cast %976 : vector<8xf32> to vector<8x1xf32>
    %978 = tpu.reciprocal %977 {approx = true} : vector<8x1xf32> -> vector<8x1xf32>
    %979 = vector.broadcast %978 : vector<8x1xf32> to vector<8x8xf32>
    %980 = arith.mulf %975, %979 : vector<8x8xf32>
    %981 = arith.truncf %980 : vector<8x8xf32> to vector<8x8xbf16>
    %cst_376 = arith.constant dense<0.000000e+00> : vector<8x8xf32>
    %982 = tpu.matmul %981, %965, %cst_376 {dimension_numbers = #tpu.dot_dimension_numbers<[1], [0], [0], [1], [0, 0, 1, 1], [], []>} : vector<8x8xbf16>, vector<8x8xbf16>, vector<8x8xf32> -> vector<8x8xf32>
    %983 = vector.extract_strided_slice %930 {offsets = [1, 0, 0], sizes = [1, 8, 32], strides = [1, 1, 1]} : vector<4x8x32xbf16> to vector<1x8x32xbf16>
    %984 = vector.shape_cast %983 : vector<1x8x32xbf16> to vector<8x32xbf16>
    %985 = arith.truncf %982 : vector<8x8xf32> to vector<8x8xbf16>
    %cst_377 = arith.constant dense<0.000000e+00> : vector<8x32xf32>
    %986 = tpu.matmul %985, %984, %cst_377 {dimension_numbers = #tpu.dot_dimension_numbers<[1], [0], [0], [1], [0, 0, 1, 1], [], []>} : vector<8x8xbf16>, vector<8x32xbf16>, vector<8x32xf32> -> vector<8x32xf32>
    %987 = arith.addf %959, %986 : vector<8x32xf32>
    %988 = vector.extract_strided_slice %918 {offsets = [0, 16], sizes = [8, 8], strides = [1, 1]} : vector<8x32xf32> to vector<8x8xf32>
    %989 = arith.truncf %988 : vector<8x8xf32> to vector<8x8xbf16>
    %990 = vector.extract_strided_slice %927 {offsets = [0, 16], sizes = [8, 8], strides = [1, 1]} : vector<8x32xf32> to vector<8x8xf32>
    %991 = arith.truncf %990 : vector<8x8xf32> to vector<8x8xbf16>
    %992 = vector.extract_strided_slice %928 {offsets = [0, 16], sizes = [8, 8], strides = [1, 1]} : vector<8x32xf32> to vector<8x8xf32>
    %993 = arith.truncf %992 : vector<8x8xf32> to vector<8x8xbf16>
    %cst_378 = arith.constant dense<0.000000e+00> : vector<8x8xf32>
    %994 = tpu.matmul %989, %991, %cst_378 {dimension_numbers = #tpu.dot_dimension_numbers<[1], [1], [0], [0], [0, 0, 1, 0], [], []>} : vector<8x8xbf16>, vector<8x8xbf16>, vector<8x8xf32> -> vector<8x8xf32>
    %cst_379 = arith.constant 0.353553385 : f32
    %995 = vector.broadcast %cst_379 : f32 to vector<8x8xf32>
    %996 = arith.mulf %994, %995 : vector<8x8xf32>
    %997 = vector.broadcast %6 : vector<1x8xf32> to vector<8x8xf32>
    %998 = arith.addf %996, %997 : vector<8x8xf32>
    %cst_380 = arith.constant dense<0xFF800000> : vector<8xf32>
    %999 = vector.multi_reduction <maximumf>, %998, %cst_380 [1] : vector<8x8xf32> to vector<8xf32>
    %1000 = vector.shape_cast %999 : vector<8xf32> to vector<8x1xf32>
    %1001 = vector.broadcast %1000 : vector<8x1xf32> to vector<8x8xf32>
    %1002 = arith.subf %998, %1001 : vector<8x8xf32>
    %1003 = math.exp %1002 : vector<8x8xf32>
    %cst_381 = arith.constant dense<0.000000e+00> : vector<8xf32>
    %1004 = vector.multi_reduction <add>, %1003, %cst_381 [1] : vector<8x8xf32> to vector<8xf32>
    %1005 = vector.shape_cast %1004 : vector<8xf32> to vector<8x1xf32>
    %1006 = tpu.reciprocal %1005 {approx = true} : vector<8x1xf32> -> vector<8x1xf32>
    %1007 = vector.broadcast %1006 : vector<8x1xf32> to vector<8x8xf32>
    %1008 = arith.mulf %1003, %1007 : vector<8x8xf32>
    %1009 = arith.truncf %1008 : vector<8x8xf32> to vector<8x8xbf16>
    %cst_382 = arith.constant dense<0.000000e+00> : vector<8x8xf32>
    %1010 = tpu.matmul %1009, %993, %cst_382 {dimension_numbers = #tpu.dot_dimension_numbers<[1], [0], [0], [1], [0, 0, 1, 1], [], []>} : vector<8x8xbf16>, vector<8x8xbf16>, vector<8x8xf32> -> vector<8x8xf32>
    %1011 = vector.extract_strided_slice %930 {offsets = [2, 0, 0], sizes = [1, 8, 32], strides = [1, 1, 1]} : vector<4x8x32xbf16> to vector<1x8x32xbf16>
    %1012 = vector.shape_cast %1011 : vector<1x8x32xbf16> to vector<8x32xbf16>
    %1013 = arith.truncf %1010 : vector<8x8xf32> to vector<8x8xbf16>
    %cst_383 = arith.constant dense<0.000000e+00> : vector<8x32xf32>
    %1014 = tpu.matmul %1013, %1012, %cst_383 {dimension_numbers = #tpu.dot_dimension_numbers<[1], [0], [0], [1], [0, 0, 1, 1], [], []>} : vector<8x8xbf16>, vector<8x32xbf16>, vector<8x32xf32> -> vector<8x32xf32>
    %1015 = arith.addf %987, %1014 : vector<8x32xf32>
    %1016 = vector.extract_strided_slice %918 {offsets = [0, 24], sizes = [8, 8], strides = [1, 1]} : vector<8x32xf32> to vector<8x8xf32>
    %1017 = arith.truncf %1016 : vector<8x8xf32> to vector<8x8xbf16>
    %1018 = vector.extract_strided_slice %927 {offsets = [0, 24], sizes = [8, 8], strides = [1, 1]} : vector<8x32xf32> to vector<8x8xf32>
    %1019 = arith.truncf %1018 : vector<8x8xf32> to vector<8x8xbf16>
    %1020 = vector.extract_strided_slice %928 {offsets = [0, 24], sizes = [8, 8], strides = [1, 1]} : vector<8x32xf32> to vector<8x8xf32>
    %1021 = arith.truncf %1020 : vector<8x8xf32> to vector<8x8xbf16>
    %cst_384 = arith.constant dense<0.000000e+00> : vector<8x8xf32>
    %1022 = tpu.matmul %1017, %1019, %cst_384 {dimension_numbers = #tpu.dot_dimension_numbers<[1], [1], [0], [0], [0, 0, 1, 0], [], []>} : vector<8x8xbf16>, vector<8x8xbf16>, vector<8x8xf32> -> vector<8x8xf32>
    %cst_385 = arith.constant 0.353553385 : f32
    %1023 = vector.broadcast %cst_385 : f32 to vector<8x8xf32>
    %1024 = arith.mulf %1022, %1023 : vector<8x8xf32>
    %1025 = vector.broadcast %6 : vector<1x8xf32> to vector<8x8xf32>
    %1026 = arith.addf %1024, %1025 : vector<8x8xf32>
    %cst_386 = arith.constant dense<0xFF800000> : vector<8xf32>
    %1027 = vector.multi_reduction <maximumf>, %1026, %cst_386 [1] : vector<8x8xf32> to vector<8xf32>
    %1028 = vector.shape_cast %1027 : vector<8xf32> to vector<8x1xf32>
    %1029 = vector.broadcast %1028 : vector<8x1xf32> to vector<8x8xf32>
    %1030 = arith.subf %1026, %1029 : vector<8x8xf32>
    %1031 = math.exp %1030 : vector<8x8xf32>
    %cst_387 = arith.constant dense<0.000000e+00> : vector<8xf32>
    %1032 = vector.multi_reduction <add>, %1031, %cst_387 [1] : vector<8x8xf32> to vector<8xf32>
    %1033 = vector.shape_cast %1032 : vector<8xf32> to vector<8x1xf32>
    %1034 = tpu.reciprocal %1033 {approx = true} : vector<8x1xf32> -> vector<8x1xf32>
    %1035 = vector.broadcast %1034 : vector<8x1xf32> to vector<8x8xf32>
    %1036 = arith.mulf %1031, %1035 : vector<8x8xf32>
    %1037 = arith.truncf %1036 : vector<8x8xf32> to vector<8x8xbf16>
    %cst_388 = arith.constant dense<0.000000e+00> : vector<8x8xf32>
    %1038 = tpu.matmul %1037, %1021, %cst_388 {dimension_numbers = #tpu.dot_dimension_numbers<[1], [0], [0], [1], [0, 0, 1, 1], [], []>} : vector<8x8xbf16>, vector<8x8xbf16>, vector<8x8xf32> -> vector<8x8xf32>
    %1039 = vector.extract_strided_slice %930 {offsets = [3, 0, 0], sizes = [1, 8, 32], strides = [1, 1, 1]} : vector<4x8x32xbf16> to vector<1x8x32xbf16>
    %1040 = vector.shape_cast %1039 : vector<1x8x32xbf16> to vector<8x32xbf16>
    %1041 = arith.truncf %1038 : vector<8x8xf32> to vector<8x8xbf16>
    %cst_389 = arith.constant dense<0.000000e+00> : vector<8x32xf32>
    %1042 = tpu.matmul %1041, %1040, %cst_389 {dimension_numbers = #tpu.dot_dimension_numbers<[1], [0], [0], [1], [0, 0, 1, 1], [], []>} : vector<8x8xbf16>, vector<8x32xbf16>, vector<8x32xf32> -> vector<8x32xf32>
    %1043 = arith.addf %1015, %1042 : vector<8x32xf32>
    %1044 = vector.broadcast %932 : vector<1x32xf32> to vector<8x32xf32>
    %1045 = arith.addf %1043, %1044 : vector<8x32xf32>
    %1046 = arith.addf %910, %1045 : vector<8x32xf32>
    %c1_390 = arith.constant 1 : index
    %c0_391 = arith.constant 0 : index
    %c0_392 = arith.constant 0 : index
    %1047 = vector.load %arg29[%c1_390, %c0_391, %c0_392] : memref<2x1x32xf32, #tpu.memory_space<vmem>>, vector<1x1x32xf32>
    %1048 = vector.shape_cast %1047 : vector<1x1x32xf32> to vector<1x32xf32>
    %c1_393 = arith.constant 1 : index
    %c0_394 = arith.constant 0 : index
    %c0_395 = arith.constant 0 : index
    %1049 = vector.load %arg30[%c1_393, %c0_394, %c0_395] : memref<2x1x32xf32, #tpu.memory_space<vmem>>, vector<1x1x32xf32>
    %1050 = vector.shape_cast %1049 : vector<1x1x32xf32> to vector<1x32xf32>
    %cst_396 = arith.constant dense<0.000000e+00> : vector<8xf32>
    %1051 = vector.multi_reduction <add>, %1046, %cst_396 [1] : vector<8x32xf32> to vector<8xf32>
    %1052 = vector.shape_cast %1051 : vector<8xf32> to vector<8x1xf32>
    %cst_397 = arith.constant 3.200000e+01 : f32
    %1053 = vector.broadcast %cst_397 : f32 to vector<8x1xf32>
    %1054 = arith.divf %1052, %1053 : vector<8x1xf32>
    %1055 = vector.broadcast %1054 : vector<8x1xf32> to vector<8x32xf32>
    %1056 = arith.subf %1046, %1055 : vector<8x32xf32>
    %1057 = arith.mulf %1056, %1056 : vector<8x32xf32>
    %cst_398 = arith.constant dense<0.000000e+00> : vector<8xf32>
    %1058 = vector.multi_reduction <add>, %1057, %cst_398 [1] : vector<8x32xf32> to vector<8xf32>
    %1059 = vector.shape_cast %1058 : vector<8xf32> to vector<8x1xf32>
    %cst_399 = arith.constant 3.200000e+01 : f32
    %1060 = vector.broadcast %cst_399 : f32 to vector<8x1xf32>
    %1061 = arith.divf %1059, %1060 : vector<8x1xf32>
    %cst_400 = arith.constant 9.99999974E-6 : f32
    %1062 = vector.broadcast %cst_400 : f32 to vector<8x1xf32>
    %1063 = arith.addf %1061, %1062 : vector<8x1xf32>
    %1064 = math.rsqrt %1063 : vector<8x1xf32>
    %1065 = vector.broadcast %1064 : vector<8x1xf32> to vector<8x32xf32>
    %1066 = arith.mulf %1056, %1065 : vector<8x32xf32>
    %1067 = vector.broadcast %1048 : vector<1x32xf32> to vector<8x32xf32>
    %1068 = arith.mulf %1066, %1067 : vector<8x32xf32>
    %1069 = vector.broadcast %1050 : vector<1x32xf32> to vector<8x32xf32>
    %1070 = arith.addf %1068, %1069 : vector<8x32xf32>
    %c1_401 = arith.constant 1 : index
    %c0_402 = arith.constant 0 : index
    %c0_403 = arith.constant 0 : index
    %1071 = vector.load %arg33[%c1_401, %c0_402, %c0_403] : memref<2x32x64xbf16, #tpu.memory_space<vmem>>, vector<1x32x64xbf16>
    %1072 = vector.shape_cast %1071 : vector<1x32x64xbf16> to vector<32x64xbf16>
    %1073 = arith.truncf %1070 : vector<8x32xf32> to vector<8x32xbf16>
    %cst_404 = arith.constant dense<0.000000e+00> : vector<8x64xf32>
    %1074 = tpu.matmul %1073, %1072, %cst_404 {dimension_numbers = #tpu.dot_dimension_numbers<[1], [0], [0], [1], [0, 0, 1, 1], [], []>} : vector<8x32xbf16>, vector<32x64xbf16>, vector<8x64xf32> -> vector<8x64xf32>
    %c1_405 = arith.constant 1 : index
    %c0_406 = arith.constant 0 : index
    %c0_407 = arith.constant 0 : index
    %1075 = vector.load %arg34[%c1_405, %c0_406, %c0_407] : memref<2x1x64xf32, #tpu.memory_space<vmem>>, vector<1x1x64xf32>
    %1076 = vector.shape_cast %1075 : vector<1x1x64xf32> to vector<1x64xf32>
    %1077 = vector.broadcast %1076 : vector<1x64xf32> to vector<8x64xf32>
    %1078 = arith.addf %1074, %1077 : vector<8x64xf32>
    %cst_408 = arith.constant 0.000000e+00 : f32
    %1079 = vector.broadcast %cst_408 : f32 to vector<8x64xf32>
    %1080 = arith.maximumf %1078, %1079 : vector<8x64xf32>
    %c1_409 = arith.constant 1 : index
    %c0_410 = arith.constant 0 : index
    %c0_411 = arith.constant 0 : index
    %1081 = vector.load %arg35[%c1_409, %c0_410, %c0_411] : memref<2x64x32xbf16, #tpu.memory_space<vmem>>, vector<1x64x32xbf16>
    %1082 = vector.shape_cast %1081 : vector<1x64x32xbf16> to vector<64x32xbf16>
    %1083 = arith.truncf %1080 : vector<8x64xf32> to vector<8x64xbf16>
    %cst_412 = arith.constant dense<0.000000e+00> : vector<8x32xf32>
    %1084 = tpu.matmul %1083, %1082, %cst_412 {dimension_numbers = #tpu.dot_dimension_numbers<[1], [0], [0], [1], [0, 0, 1, 1], [], []>} : vector<8x64xbf16>, vector<64x32xbf16>, vector<8x32xf32> -> vector<8x32xf32>
    %c1_413 = arith.constant 1 : index
    %c0_414 = arith.constant 0 : index
    %c0_415 = arith.constant 0 : index
    %1085 = vector.load %arg36[%c1_413, %c0_414, %c0_415] : memref<2x1x32xf32, #tpu.memory_space<vmem>>, vector<1x1x32xf32>
    %1086 = vector.shape_cast %1085 : vector<1x1x32xf32> to vector<1x32xf32>
    %1087 = vector.broadcast %1086 : vector<1x32xf32> to vector<8x32xf32>
    %1088 = arith.addf %1084, %1087 : vector<8x32xf32>
    %1089 = arith.addf %1070, %1088 : vector<8x32xf32>
    %c1_416 = arith.constant 1 : index
    %c0_417 = arith.constant 0 : index
    %c0_418 = arith.constant 0 : index
    %1090 = vector.load %arg31[%c1_416, %c0_417, %c0_418] : memref<2x1x32xf32, #tpu.memory_space<vmem>>, vector<1x1x32xf32>
    %1091 = vector.shape_cast %1090 : vector<1x1x32xf32> to vector<1x32xf32>
    %c1_419 = arith.constant 1 : index
    %c0_420 = arith.constant 0 : index
    %c0_421 = arith.constant 0 : index
    %1092 = vector.load %arg32[%c1_419, %c0_420, %c0_421] : memref<2x1x32xf32, #tpu.memory_space<vmem>>, vector<1x1x32xf32>
    %1093 = vector.shape_cast %1092 : vector<1x1x32xf32> to vector<1x32xf32>
    %cst_422 = arith.constant dense<0.000000e+00> : vector<8xf32>
    %1094 = vector.multi_reduction <add>, %1089, %cst_422 [1] : vector<8x32xf32> to vector<8xf32>
    %1095 = vector.shape_cast %1094 : vector<8xf32> to vector<8x1xf32>
    %cst_423 = arith.constant 3.200000e+01 : f32
    %1096 = vector.broadcast %cst_423 : f32 to vector<8x1xf32>
    %1097 = arith.divf %1095, %1096 : vector<8x1xf32>
    %1098 = vector.broadcast %1097 : vector<8x1xf32> to vector<8x32xf32>
    %1099 = arith.subf %1089, %1098 : vector<8x32xf32>
    %1100 = arith.mulf %1099, %1099 : vector<8x32xf32>
    %cst_424 = arith.constant dense<0.000000e+00> : vector<8xf32>
    %1101 = vector.multi_reduction <add>, %1100, %cst_424 [1] : vector<8x32xf32> to vector<8xf32>
    %1102 = vector.shape_cast %1101 : vector<8xf32> to vector<8x1xf32>
    %cst_425 = arith.constant 3.200000e+01 : f32
    %1103 = vector.broadcast %cst_425 : f32 to vector<8x1xf32>
    %1104 = arith.divf %1102, %1103 : vector<8x1xf32>
    %cst_426 = arith.constant 9.99999974E-6 : f32
    %1105 = vector.broadcast %cst_426 : f32 to vector<8x1xf32>
    %1106 = arith.addf %1104, %1105 : vector<8x1xf32>
    %1107 = math.rsqrt %1106 : vector<8x1xf32>
    %1108 = vector.broadcast %1107 : vector<8x1xf32> to vector<8x32xf32>
    %1109 = arith.mulf %1099, %1108 : vector<8x32xf32>
    %1110 = vector.broadcast %1091 : vector<1x32xf32> to vector<8x32xf32>
    %1111 = arith.mulf %1109, %1110 : vector<8x32xf32>
    %1112 = vector.broadcast %1093 : vector<1x32xf32> to vector<8x32xf32>
    %1113 = arith.addf %1111, %1112 : vector<8x32xf32>
    %c0_427 = arith.constant 0 : index
    %c0_428 = arith.constant 0 : index
    %1114 = vector.load %arg37[%c0_427, %c0_428] : memref<32x128xbf16, #tpu.memory_space<vmem>>, vector<32x128xbf16>
    %1115 = arith.truncf %1113 : vector<8x32xf32> to vector<8x32xbf16>
    %cst_429 = arith.constant dense<0.000000e+00> : vector<8x128xf32>
    %1116 = tpu.matmul %1115, %1114, %cst_429 {dimension_numbers = #tpu.dot_dimension_numbers<[1], [0], [0], [1], [0, 0, 1, 1], [], []>} : vector<8x32xbf16>, vector<32x128xbf16>, vector<8x128xf32> -> vector<8x128xf32>
    %c0_430 = arith.constant 0 : index
    %c0_431 = arith.constant 0 : index
    %1117 = vector.load %arg38[%c0_430, %c0_431] : memref<1x128xf32, #tpu.memory_space<vmem>>, vector<1x128xf32>
    %1118 = vector.broadcast %1117 : vector<1x128xf32> to vector<8x128xf32>
    %1119 = arith.addf %1116, %1118 : vector<8x128xf32>
    %c0_432 = arith.constant 0 : index
    %c0_433 = arith.constant 0 : index
    %c0_434 = arith.constant 0 : index
    %1120 = vector.load %arg39[%c0_432, %c0_433, %c0_434] : memref<1x8x128xf32, #tpu.memory_space<vmem>>, vector<1x8x128xf32>
    %1121 = vector.shape_cast %1120 : vector<1x8x128xf32> to vector<8x128xf32>
    %1122 = vector.shape_cast %1119 : vector<8x128xf32> to vector<1x8x128xf32>
    tpu.vector_store %arg39[%c0_432, %c0_433, %c0_434], %1122 {strides = array<i32>} : memref<1x8x128xf32, #tpu.memory_space<vmem>>, vector<1x8x128xf32>,
    return
  }
  func.func @transform_0(%arg0: i32) -> (i32, i32, i32) {
    %c0_i32 = arith.constant 0 : i32
    %c0_i32_0 = arith.constant 0 : i32
    %c0_i32_1 = arith.constant 0 : i32
    return %arg0, %c0_i32, %c0_i32_0 : i32, i32, i32
  }
  func.func @transform_1(%arg0: i32) -> (i32, i32, i32) {
    %c0_i32 = arith.constant 0 : i32
    %c0_i32_0 = arith.constant 0 : i32
    %c0_i32_1 = arith.constant 0 : i32
    return %arg0, %c0_i32, %c0_i32_0 : i32, i32, i32
  }
  func.func @transform_2(%arg0: i32) -> (i32, i32, i32) {
    %c0_i32 = arith.constant 0 : i32
    %c0_i32_0 = arith.constant 0 : i32
    %c0_i32_1 = arith.constant 0 : i32
    return %arg0, %c0_i32, %c0_i32_0 : i32, i32, i32
  }
  func.func @transform_3(%arg0: i32) -> (i32, i32, i32) {
    %c0_i32 = arith.constant 0 : i32
    %c0_i32_0 = arith.constant 0 : i32
    %c0_i32_1 = arith.constant 0 : i32
    return %arg0, %c0_i32, %c0_i32_0 : i32, i32, i32
  }
  func.func @transform_4(%arg0: i32) -> (i32, i32, i32) {
    %c0_i32 = arith.constant 0 : i32
    %c0_i32_0 = arith.constant 0 : i32
    %c0_i32_1 = arith.constant 0 : i32
    %c0_i32_2 = arith.constant 0 : i32
    return %c0_i32, %c0_i32_0, %c0_i32_1 : i32, i32, i32
  }
  func.func @transform_5(%arg0: i32) -> (i32, i32, i32) {
    %c0_i32 = arith.constant 0 : i32
    %c0_i32_0 = arith.constant 0 : i32
    %c0_i32_1 = arith.constant 0 : i32
    %c0_i32_2 = arith.constant 0 : i32
    return %c0_i32, %c0_i32_0, %c0_i32_1 : i32, i32, i32
  }
  func.func @transform_6(%arg0: i32) -> (i32, i32, i32, i32) {
    %c0_i32 = arith.constant 0 : i32
    %c0_i32_0 = arith.constant 0 : i32
    %c0_i32_1 = arith.constant 0 : i32
    %c0_i32_2 = arith.constant 0 : i32
    %c0_i32_3 = arith.constant 0 : i32
    return %c0_i32, %c0_i32_0, %c0_i32_1, %c0_i32_2 : i32, i32, i32, i32
  }
  func.func @transform_7(%arg0: i32) -> (i32, i32, i32) {
    %c0_i32 = arith.constant 0 : i32
    %c0_i32_0 = arith.constant 0 : i32
    %c0_i32_1 = arith.constant 0 : i32
    %c0_i32_2 = arith.constant 0 : i32
    return %c0_i32, %c0_i32_0, %c0_i32_1 : i32, i32, i32
  }
  func.func @transform_8(%arg0: i32) -> (i32, i32, i32) {
    %c0_i32 = arith.constant 0 : i32
    %c0_i32_0 = arith.constant 0 : i32
    %c0_i32_1 = arith.constant 0 : i32
    %c0_i32_2 = arith.constant 0 : i32
    return %c0_i32, %c0_i32_0, %c0_i32_1 : i32, i32, i32
  }
  func.func @transform_9(%arg0: i32) -> (i32, i32, i32) {
    %c0_i32 = arith.constant 0 : i32
    %c0_i32_0 = arith.constant 0 : i32
    %c0_i32_1 = arith.constant 0 : i32
    %c0_i32_2 = arith.constant 0 : i32
    return %c0_i32, %c0_i32_0, %c0_i32_1 : i32, i32, i32
  }
  func.func @transform_10(%arg0: i32) -> (i32, i32, i32) {
    %c0_i32 = arith.constant 0 : i32
    %c0_i32_0 = arith.constant 0 : i32
    %c0_i32_1 = arith.constant 0 : i32
    %c0_i32_2 = arith.constant 0 : i32
    return %c0_i32, %c0_i32_0, %c0_i32_1 : i32, i32, i32
  }
  func.func @transform_11(%arg0: i32) -> (i32, i32, i32) {
    %c0_i32 = arith.constant 0 : i32
    %c0_i32_0 = arith.constant 0 : i32
    %c0_i32_1 = arith.constant 0 : i32
    %c0_i32_2 = arith.constant 0 : i32
    return %c0_i32, %c0_i32_0, %c0_i32_1 : i32, i32, i32
  }
  func.func @transform_12(%arg0: i32) -> (i32, i32, i32) {
    %c0_i32 = arith.constant 0 : i32
    %c0_i32_0 = arith.constant 0 : i32
    %c0_i32_1 = arith.constant 0 : i32
    %c0_i32_2 = arith.constant 0 : i32
    return %c0_i32, %c0_i32_0, %c0_i32_1 : i32, i32, i32
  }
  func.func @transform_13(%arg0: i32) -> (i32, i32, i32) {
    %c0_i32 = arith.constant 0 : i32
    %c0_i32_0 = arith.constant 0 : i32
    %c0_i32_1 = arith.constant 0 : i32
    %c0_i32_2 = arith.constant 0 : i32
    return %c0_i32, %c0_i32_0, %c0_i32_1 : i32, i32, i32
  }
  func.func @transform_14(%arg0: i32) -> (i32, i32, i32) {
    %c0_i32 = arith.constant 0 : i32
    %c0_i32_0 = arith.constant 0 : i32
    %c0_i32_1 = arith.constant 0 : i32
    %c0_i32_2 = arith.constant 0 : i32
    return %c0_i32, %c0_i32_0, %c0_i32_1 : i32, i32, i32
  }
  func.func @transform_15(%arg0: i32) -> (i32, i32, i32) {
    %c0_i32 = arith.constant 0 : i32
    %c0_i32_0 = arith.constant 0 : i32
    %c0_i32_1 = arith.constant 0 : i32
    %c0_i32_2 = arith.constant 0 : i32
    return %c0_i32, %c0_i32_0, %c0_i32_1 : i32, i32, i32
  }
  func.func @transform_16(%arg0: i32) -> (i32, i32, i32) {
    %c0_i32 = arith.constant 0 : i32
    %c0_i32_0 = arith.constant 0 : i32
    %c0_i32_1 = arith.constant 0 : i32
    %c0_i32_2 = arith.constant 0 : i32
    return %c0_i32, %c0_i32_0, %c0_i32_1 : i32, i32, i32
  }
  func.func @transform_17(%arg0: i32) -> (i32, i32, i32) {
    %c0_i32 = arith.constant 0 : i32
    %c0_i32_0 = arith.constant 0 : i32
    %c0_i32_1 = arith.constant 0 : i32
    %c0_i32_2 = arith.constant 0 : i32
    return %c0_i32, %c0_i32_0, %c0_i32_1 : i32, i32, i32
  }
  func.func @transform_18(%arg0: i32) -> (i32, i32, i32, i32) {
    %c0_i32 = arith.constant 0 : i32
    %c0_i32_0 = arith.constant 0 : i32
    %c0_i32_1 = arith.constant 0 : i32
    %c0_i32_2 = arith.constant 0 : i32
    %c0_i32_3 = arith.constant 0 : i32
    return %c0_i32, %c0_i32_0, %c0_i32_1, %c0_i32_2 : i32, i32, i32, i32
  }
  func.func @transform_19(%arg0: i32) -> (i32, i32, i32) {
    %c0_i32 = arith.constant 0 : i32
    %c0_i32_0 = arith.constant 0 : i32
    %c0_i32_1 = arith.constant 0 : i32
    %c0_i32_2 = arith.constant 0 : i32
    return %c0_i32, %c0_i32_0, %c0_i32_1 : i32, i32, i32
  }
  func.func @transform_20(%arg0: i32) -> (i32, i32, i32) {
    %c0_i32 = arith.constant 0 : i32
    %c0_i32_0 = arith.constant 0 : i32
    %c0_i32_1 = arith.constant 0 : i32
    %c0_i32_2 = arith.constant 0 : i32
    return %c0_i32, %c0_i32_0, %c0_i32_1 : i32, i32, i32
  }
  func.func @transform_21(%arg0: i32) -> (i32, i32, i32) {
    %c0_i32 = arith.constant 0 : i32
    %c0_i32_0 = arith.constant 0 : i32
    %c0_i32_1 = arith.constant 0 : i32
    %c0_i32_2 = arith.constant 0 : i32
    return %c0_i32, %c0_i32_0, %c0_i32_1 : i32, i32, i32
  }
  func.func @transform_22(%arg0: i32) -> (i32, i32, i32) {
    %c0_i32 = arith.constant 0 : i32
    %c0_i32_0 = arith.constant 0 : i32
    %c0_i32_1 = arith.constant 0 : i32
    %c0_i32_2 = arith.constant 0 : i32
    return %c0_i32, %c0_i32_0, %c0_i32_1 : i32, i32, i32
  }
  func.func @transform_23(%arg0: i32) -> (i32, i32, i32) {
    %c0_i32 = arith.constant 0 : i32
    %c0_i32_0 = arith.constant 0 : i32
    %c0_i32_1 = arith.constant 0 : i32
    %c0_i32_2 = arith.constant 0 : i32
    return %c0_i32, %c0_i32_0, %c0_i32_1 : i32, i32, i32
  }
  func.func @transform_24(%arg0: i32) -> (i32, i32, i32, i32) {
    %c0_i32 = arith.constant 0 : i32
    %c0_i32_0 = arith.constant 0 : i32
    %c0_i32_1 = arith.constant 0 : i32
    %c0_i32_2 = arith.constant 0 : i32
    %c0_i32_3 = arith.constant 0 : i32
    return %c0_i32, %c0_i32_0, %c0_i32_1, %c0_i32_2 : i32, i32, i32, i32
  }
  func.func @transform_25(%arg0: i32) -> (i32, i32, i32) {
    %c0_i32 = arith.constant 0 : i32
    %c0_i32_0 = arith.constant 0 : i32
    %c0_i32_1 = arith.constant 0 : i32
    %c0_i32_2 = arith.constant 0 : i32
    return %c0_i32, %c0_i32_0, %c0_i32_1 : i32, i32, i32
  }
  func.func @transform_26(%arg0: i32) -> (i32, i32, i32) {
    %c0_i32 = arith.constant 0 : i32
    %c0_i32_0 = arith.constant 0 : i32
    %c0_i32_1 = arith.constant 0 : i32
    %c0_i32_2 = arith.constant 0 : i32
    return %c0_i32, %c0_i32_0, %c0_i32_1 : i32, i32, i32
  }
  func.func @transform_27(%arg0: i32) -> (i32, i32, i32) {
    %c0_i32 = arith.constant 0 : i32
    %c0_i32_0 = arith.constant 0 : i32
    %c0_i32_1 = arith.constant 0 : i32
    %c0_i32_2 = arith.constant 0 : i32
    return %c0_i32, %c0_i32_0, %c0_i32_1 : i32, i32, i32
  }
  func.func @transform_28(%arg0: i32) -> (i32, i32, i32) {
    %c0_i32 = arith.constant 0 : i32
    %c0_i32_0 = arith.constant 0 : i32
    %c0_i32_1 = arith.constant 0 : i32
    %c0_i32_2 = arith.constant 0 : i32
    return %c0_i32, %c0_i32_0, %c0_i32_1 : i32, i32, i32
  }
  func.func @transform_29(%arg0: i32) -> (i32, i32, i32) {
    %c0_i32 = arith.constant 0 : i32
    %c0_i32_0 = arith.constant 0 : i32
    %c0_i32_1 = arith.constant 0 : i32
    %c0_i32_2 = arith.constant 0 : i32
    return %c0_i32, %c0_i32_0, %c0_i32_1 : i32, i32, i32
  }
  func.func @transform_30(%arg0: i32) -> (i32, i32, i32) {
    %c0_i32 = arith.constant 0 : i32
    %c0_i32_0 = arith.constant 0 : i32
    %c0_i32_1 = arith.constant 0 : i32
    %c0_i32_2 = arith.constant 0 : i32
    return %c0_i32, %c0_i32_0, %c0_i32_1 : i32, i32, i32
  }
  func.func @transform_31(%arg0: i32) -> (i32, i32, i32) {
    %c0_i32 = arith.constant 0 : i32
    %c0_i32_0 = arith.constant 0 : i32
    %c0_i32_1 = arith.constant 0 : i32
    %c0_i32_2 = arith.constant 0 : i32
    return %c0_i32, %c0_i32_0, %c0_i32_1 : i32, i32, i32
  }
  func.func @transform_32(%arg0: i32) -> (i32, i32, i32) {
    %c0_i32 = arith.constant 0 : i32
    %c0_i32_0 = arith.constant 0 : i32
    %c0_i32_1 = arith.constant 0 : i32
    %c0_i32_2 = arith.constant 0 : i32
    return %c0_i32, %c0_i32_0, %c0_i32_1 : i32, i32, i32
  }
  func.func @transform_33(%arg0: i32) -> (i32, i32, i32) {
    %c0_i32 = arith.constant 0 : i32
    %c0_i32_0 = arith.constant 0 : i32
    %c0_i32_1 = arith.constant 0 : i32
    %c0_i32_2 = arith.constant 0 : i32
    return %c0_i32, %c0_i32_0, %c0_i32_1 : i32, i32, i32
  }
  func.func @transform_34(%arg0: i32) -> (i32, i32, i32) {
    %c0_i32 = arith.constant 0 : i32
    %c0_i32_0 = arith.constant 0 : i32
    %c0_i32_1 = arith.constant 0 : i32
    %c0_i32_2 = arith.constant 0 : i32
    return %c0_i32, %c0_i32_0, %c0_i32_1 : i32, i32, i32
  }
  func.func @transform_35(%arg0: i32) -> (i32, i32, i32) {
    %c0_i32 = arith.constant 0 : i32
    %c0_i32_0 = arith.constant 0 : i32
    %c0_i32_1 = arith.constant 0 : i32
    %c0_i32_2 = arith.constant 0 : i32
    return %c0_i32, %c0_i32_0, %c0_i32_1 : i32, i32, i32
  }
  func.func @transform_36(%arg0: i32) -> (i32, i32) {
    %c0_i32 = arith.constant 0 : i32
    %c0_i32_0 = arith.constant 0 : i32
    %c0_i32_1 = arith.constant 0 : i32
    return %c0_i32, %c0_i32_0 : i32, i32
  }
  func.func @transform_37(%arg0: i32) -> (i32, i32) {
    %c0_i32 = arith.constant 0 : i32
    %c0_i32_0 = arith.constant 0 : i32
    %c0_i32_1 = arith.constant 0 : i32
    return %c0_i32, %c0_i32_0 : i32, i32
  }
  func.func @transform_38(%arg0: i32) -> (i32, i32, i32) {
    %c0_i32 = arith.constant 0 : i32
    %c0_i32_0 = arith.constant 0 : i32
    %c0_i32_1 = arith.constant 0 : i32
    return %arg0, %c0_i32, %c0_i32_0 : i32, i32, i32
  }
}

</mosaic_0001>

<bundles_post_ra>
// kernel: transformer_encoder_decoder.1
= control target key start
LH: loop header
LB: loop body
LE: loop exit
PB: predicated region body
PF: predicated region fallthrough
CT: control target
= control target key end

     0   :  { %s8155_s6 = smov 1   ;;  %s8156_s10 = smov 2   ;;  %s9386_s0 = inlined_call_operand.smem [shape: u32[39], index: -1, kind: input, shape index: {}] }
   0x1   :  { %s8216_s5 = sld [smem:[%s9386_s0]]   ;;  %s8157_s14 = smov 3  }
   0x2   :  { %s8221_s9 = sld [smem:[%s9386_s0 + %s8155_s6]]   ;;  %s8158_s18 = smov 4  }
   0x3   :  { %s8226_s13 = sld [smem:[%s9386_s0 + %s8156_s10]]   ;;  %s8159_s22 = smov 5  }
   0x4   :  { %s8231_s17 = sld [smem:[%s9386_s0 + %s8157_s14]]   ;;  %s8160_s26 = smov 6  }
   0x5   :  { %s8236_s21 = sld [smem:[%s9386_s0 + %s8158_s18]]   ;;  %s8161_s30 = smov 7  }
   0x6   :  { %s8241_s25 = sld [smem:[%s9386_s0 + %s8159_s22]]   ;;  %s8162_s4 = smov 8  }
   0x7   :  { %9452 = sst [smem:[#allocation5_spill]] %s8216_s5  ;;  %s8163_s10 = smov 9  }
   0x8   :  { %9453 = sst [smem:[#allocation6_spill]] %s8221_s9  ;;  %s8164_s15 = smov 10  }
   0x9   :  { %9454 = sst [smem:[#allocation7_spill]] %s8226_s13  ;;  %s8165_s20 = smov 11  }
   0xa   :  { %9455 = sst [smem:[#allocation8_spill]] %s8231_s17  ;;  %s8167_s1 = smov 13  }
   0xb   :  { %9456 = sst [smem:[#allocation9_spill]] %s8236_s21  ;;  %s8168_s7 = smov 14  }
   0xc   :  { %9457 = sst [smem:[#allocation10_spill]] %s8241_s25  ;;  %s8170_s22 = smov 16  }
   0xd   :  { %s8246_s29 = sld [smem:[%s9386_s0 + %s8160_s26]]   ;;  %s8166_s26 = smov 12  }
   0xe   :  { %s8251_s3 = sld [smem:[%s9386_s0 + %s8161_s30]]   ;;  %s8171_s28 = smov 17  }
   0xf   :  { %s8256_s8 = sld [smem:[%s9386_s0 + %s8162_s4]]  }
  0x10   :  { %s8261_s14 = sld [smem:[%s9386_s0 + %s8163_s10]]  }
  0x11   :  { %s8266_s19 = sld [smem:[%s9386_s0 + %s8164_s15]]   ;;  %s8169_s15 = smov 15  }
  0x12   :  { %s8271_s24 = sld [smem:[%s9386_s0 + %s8165_s20]]  }
  0x13   :  { %9458 = sst [smem:[#allocation11_spill]] %s8246_s29 }
  0x14   :  { %9459 = sst [smem:[#allocation12_spill]] %s8251_s3 }
  0x15   :  { %9460 = sst [smem:[#allocation13_spill]] %s8256_s8 }
  0x16   :  { %9461 = sst [smem:[#allocation14_spill]] %s8261_s14 }
  0x17   :  { %9462 = sst [smem:[#allocation15_spill]] %s8266_s19 }
  0x18   :  { %9463 = sst [smem:[#allocation16_spill]] %s8271_s24 }
  0x19   :  { %s8276_s30 = sld [smem:[%s9386_s0 + %s8166_s26]]  }
  0x1a   :  { %s8281_s6 = sld [smem:[%s9386_s0 + %s8167_s1]]  }
  0x1b   :  { %s8286_s12 = sld [smem:[%s9386_s0 + %s8168_s7]]   ;;  %s8172_s7 = smov 18  }
  0x1c   :  { %s8291_s20 = sld [smem:[%s9386_s0 + %s8169_s15]]   ;;  %s8173_s15 = smov 19  }
  0x1d   :  { %s8296_s27 = sld [smem:[%s9386_s0 + %s8170_s22]]   ;;  %s8174_s22 = smov 20  }
  0x1e   :  { %s8301_s4 = sld [smem:[%s9386_s0 + %s8171_s28]]   ;;  %s8175_s28 = smov 21  }
  0x1f   :  { %9464 = sst [smem:[#allocation17_spill]] %s8276_s30 }
  0x20   :  { %9465 = sst [smem:[#allocation18_spill]] %s8281_s6 }
  0x21   :  { %9466 = sst [smem:[#allocation19_spill]] %s8286_s12 }
  0x22   :  { %9467 = sst [smem:[#allocation20_spill]] %s8291_s20 }
  0x23   :  { %9468 = sst [smem:[#allocation21_spill]] %s8296_s27 }
  0x24   :  { %9469 = sst [smem:[#allocation22_spill]] %s8301_s4 }
  0x25   :  { %s8306_s17 = sld [smem:[%s9386_s0 + %s8172_s7]]   ;;  %s8176_s7 = smov 22  }
  0x26   :  { %s8311_s9 = sld [smem:[%s9386_s0 + %s8173_s15]]   ;;  %s8177_s15 = smov 23  }
  0x27   :  { %s8316_s27 = sld [smem:[%s9386_s0 + %s8174_s22]]   ;;  %s8178_s22 = smov 24  }
  0x28   :  { %s8321_s4 = sld [smem:[%s9386_s0 + %s8175_s28]]   ;;  %s8179_s28 = smov 25  }
  0x2b   :  { %9470 = sst [smem:[#allocation23_spill]] %s8306_s17 }
  0x2c   :  { %9471 = sst [smem:[#allocation24_spill]] %s8311_s9 }
  0x2d   :  { %9472 = sst [smem:[#allocation25_spill]] %s8316_s27 }
  0x2e   :  { %9473 = sst [smem:[#allocation26_spill]] %s8321_s4 }
  0x2f   :  { %s8326_s17 = sld [smem:[%s9386_s0 + %s8176_s7]]   ;;  %s8180_s7 = smov 26  }
  0x30   :  { %s8331_s9 = sld [smem:[%s9386_s0 + %s8177_s15]]   ;;  %s8181_s15 = smov 27  }
  0x31   :  { %s8336_s27 = sld [smem:[%s9386_s0 + %s8178_s22]]   ;;  %s8182_s22 = smov 28  }
  0x32   :  { %s8341_s4 = sld [smem:[%s9386_s0 + %s8179_s28]]   ;;  %s8183_s28 = smov 29  }
  0x35   :  { %9474 = sst [smem:[#allocation27_spill]] %s8326_s17 }
  0x36   :  { %9475 = sst [smem:[#allocation28_spill]] %s8331_s9 }
  0x37   :  { %9476 = sst [smem:[#allocation29_spill]] %s8336_s27 }
  0x38   :  { %9477 = sst [smem:[#allocation30_spill]] %s8341_s4 }
  0x39   :  { %s8346_s17 = sld [smem:[%s9386_s0 + %s8180_s7]]   ;;  %s8184_s7 = smov 30  }
  0x3a   :  { %s8351_s9 = sld [smem:[%s9386_s0 + %s8181_s15]]   ;;  %s8185_s15 = smov 31  }
  0x3b   :  { %s8356_s27 = sld [smem:[%s9386_s0 + %s8182_s22]]   ;;  %s8186_s22 = smov 32  }
  0x3c   :  { %s8361_s4 = sld [smem:[%s9386_s0 + %s8183_s28]]   ;;  %s8187_s28 = smov 33  }
  0x3f   :  { %9478 = sst [smem:[#allocation31_spill]] %s8346_s17 }
  0x40   :  { %9479 = sst [smem:[#allocation32_spill]] %s8351_s9 }
  0x41   :  { %9480 = sst [smem:[#allocation33_spill]] %s8356_s27 }
  0x42   :  { %9481 = sst [smem:[#allocation34_spill]] %s8361_s4 }
  0x43   :  { %s8366_s17 = sld [smem:[%s9386_s0 + %s8184_s7]]   ;;  %s8188_s7 = smov 34  }
  0x44   :  { %s8371_s9 = sld [smem:[%s9386_s0 + %s8185_s15]]   ;;  %s8189_s15 = smov 35  }
  0x45   :  { %s8376_s27 = sld [smem:[%s9386_s0 + %s8186_s22]]   ;;  %s8190_s22 = smov 36  }
  0x46   :  { %s8381_s4 = sld [smem:[%s9386_s0 + %s8187_s28]]   ;;  %s8191_s28 = smov 37  }
  0x49   :  { %9482 = sst [smem:[#allocation35_spill]] %s8366_s17 }
  0x4a   :  { %9483 = sst [smem:[#allocation36_spill]] %s8371_s9 }
  0x4b   :  { %9484 = sst [smem:[#allocation37_spill]] %s8376_s27 }
  0x4c   :  { %9485 = sst [smem:[#allocation38_spill]] %s8381_s4 }
  0x4d   :  { %s8386_s17 = sld [smem:[%s9386_s0 + %s8188_s7]]   ;;  %s8192_s7 = smov 38  }
  0x4e   :  { %s8391_s9 = sld [smem:[%s9386_s0 + %s8189_s15]]  }
  0x4f   :  { %s8396_s27 = sld [smem:[%s9386_s0 + %s8190_s22]]  }
  0x50   :  { %s8401_s4 = sld [smem:[%s9386_s0 + %s8191_s28]]  }
  0x53   :  { %9486 = sst [smem:[#allocation39_spill]] %s8386_s17 }
  0x54   :  { %s8406_s17 = sld [smem:[%s9386_s0 + %s8192_s7]]  }
  0x55   :  { %9487 = sst [smem:[#allocation40_spill]] %s8396_s27 }
  0x56   :  { %9488 = sst [smem:[#allocation41_spill]] %s8401_s4 }
  0x5a   :  { %9489 = sst [smem:[#allocation42_spill]] %s8406_s17 }
  0x5b   :  { %82 = vsyncpa [#allocation3], 0 }
  0x5c   :  { %84 = vsyncpa [#allocation3 + $0x1], 0  ;;  %s8408_s15 = smov 0   ;;  %s8410_s16 = smov 0  }
  0x5d   :  { %s8412_s18 = smov 0   ;;  %s8414_s22 = smov 0  }
  0x5e LB: > { %s9490_s24 = sld [smem:[#allocation16_spill]]  ;;  %s8429_s0 = sadd.s32 4294967295, %s8153_s22   ;;  %s8153_s22 = sphi %s8414_s22, %s9563_s22   ;;  %s8149_s18 = sphi %s8412_s18, %s9566_s18   ;;  %s8145_s16 = sphi %s8410_s16, %s9565_s16   ;;  %s8141_s15 = sphi %s8408_s15, %s9564_s15  }
  0x5f   : > { %s9491_s19 = sld [smem:[#allocation15_spill]]  ;;  %s6798_s23 = sadd.s32 4294967294, %s8153_s22  }
  0x60   : > { %s9492_s20 = sld [smem:[#allocation20_spill]]  ;;  %s8433_s26 = sadd.s32 1, %s8153_s22  }
  0x61   : > { %s9493_s14 = sld [smem:[#allocation14_spill]]  ;;  %s915_s28 = sadd.s32 1, %s8149_s18 }
  0x62   : > { %s9494_s12 = sld [smem:[#allocation19_spill]]  ;;  %s912_s1 = ssub.s32 %s8153_s22, %s8433_s26 }
  0x63   : > { %s9495_s8 = sld [smem:[#allocation13_spill]]  ;;  %p925_p0 = scmp.ne.s32.totalorder %s8149_s18, %s8145_s16 }
  0x64   : > { %s9496_s6 = sld [smem:[#allocation18_spill]]  ;;  %p913_p1 = scmp.eq.s32.totalorder %s912_s1, 0 }
  0x65   : > { %s9497_s30 = sld [smem:[#allocation17_spill]]  ;;  %p926_p2 = scmp.eq.s32.totalorder %s8429_s0, 1 }
  0x66   : > { %s9498_s29 = sld [smem:[#allocation11_spill]]  ;;  %p931_p3 = scmp.ne.s32.totalorder %s8145_s16, %s8141_s15 }
  0x67   : > { %s9499_s3 = sld [smem:[#allocation12_spill]]  ;;  %p932_p4 = scmp.eq.s32.totalorder %s6798_s23, 1 }
  0x68   : > { %s9500_s25 = sld [smem:[#allocation10_spill]]  ;;  %p8446_p5 = por %p926_p2, %p925_p0 }
  0x69   : > { %s9501_s21 = sld [smem:[#allocation9_spill]]  ;;  %p8450_p6 = por %p932_p4, %p931_p3 }
  0x6a   : > { %9502 = sst [smem:[#allocation43_spill]] %s8141_s15  ;;  %p6801_p7 = scmp.ge.s32.totalorder %s8153_s22, 1 }
  0x6b   : > { %9503 = sst [smem:[#allocation44_spill]] %s8145_s16  ;;  %p1079_p8 = scmp.lt.s32.totalorder %s8153_s22, 3 }
  0x6c   : > { %9504 = sst [smem:[#allocation45_spill]] %s8149_s18 }
  0x6d   : > { %9505 = sst [smem:[#allocation46_spill]] %s8153_s22  ;;  %p1080_p9 = pnand %p6801_p7, %p1079_p8 }
  0x6e   : > { %9506 = sst [smem:[#allocation47_spill]] %s8429_s0  ;;  %p1183_p10 = scmp.lt.s32.totalorder (!%p1080_p9), %s8429_s0, 1 }
  0x6f   : > { %9507 = sst [smem:[#allocation48_spill]] %s8433_s26  ;;  %s9406_s1 = smov (!%p1080_p9), 120  }
  0x70   : > { %s8444_s2 = scalar_select %p913_p1, %s8149_s18, %s915_s28  }
  0x71   : > { %s9509_s7 = scalar_select %p8446_p5, 1, 0 }
  0x72   : > { %9508 = sst [smem:[#allocation49_spill]] %s8444_s2  ;;  %1083 = sbr.rel (%p1080_p9) target bundleno = 19087 (0x4a8f), region = 172 }
  0x73   : > { %9510 = sst [smem:[#allocation50_spill]] %s9509_s7  ;;  %s9522_s2 = smov (!%p1080_p9), 104  }
  0x74   : > { %s9511_s10 = scalar_select %p8450_p6, 1, 0 }
  0x75   : > { %s9513_s5 = sld [smem:[#allocation5_spill]] (!%p1080_p9)  ;;  %s9523_s18 = smov (!%p1080_p9), 72  }
  0x76   : > { %9512 = sst [smem:[#allocation51_spill]] %s9511_s10  ;;  %s9524_s26 = smov (!%p1080_p9), 40  }
  0x77   : > { %v7935_v0 = vld [vmem:[%s9501_s21 + $0x8] sm:$0xff]   ;;  %v8193_v1 = vmov 0.0   ;;  %v7936_v2 = vld [vmem:[%s9501_s21] sm:$0xff]   ;;  %vm8194_vm0 = vmmov 0   ;;  %s8467_s11 = scalar_select %p1183_p10, %s8429_s0, 1  ;;  %vm1230_vm1 = vcmask 261120   ;;  %v1332_v17 = vlaneseq }
  0x78   : > { %7260 = vmatprep.subr.bf16.mxu0 %v8193_v1  ;;  %7268 = vmatprep.subr.bf16.mxu1 %v8193_v1  ;;  %v6806_v5 = vld [vmem:[%s9500_s25] ss:$0 sm:$0xff]  ;;  %s9514_s13 = sld [smem:[#allocation7_spill]]  ;;  %vm1283_vm2 = vcmask 64512   ;;  %v8198_v21 = vmov -1e+09  }
  0x79   : > { %7261 = vmatpush3.bf16.msra.mxu0 %v7935_v0  ;;  %7264 = vmatprep.mubr.msk.bf16.mxu0 %vm8194_vm0, %v8193_v1  ;;  %s8470_s23 = sshll.u32 %s8467_s11, 3  ;;  %v1333_v19 = vshrl.u32 %v1332_v17, 7  ;;  %vm1355_vm4 = vcmask 1043456   ;;  %v1274_v60 = vld [vmem:[%s9498_s29] sm:$0xf]  ;;  %vm2071_vm5 = vcmask 523264  }
  0x7a   : > { %7262 = vmatprep.subr.bf16.mxu0 %v8193_v1  ;;  %7270 = vmatprep.mubr.msk.bf16.mxu1 %vm8194_vm0, %v8193_v1  ;;  %v1563_v61 = vsel %vm1355_vm4, %v1274_v60, 0  ;;  %v1275_v62 = vld [vmem:[%s9498_s29 + $0x4] sm:$0xf]  ;;  %s9538_s10 = sld [smem:[#allocation29_spill]] }
  0x7b   : > { %s1186_s28 = scalar_lea.vmem %s9513_s5, %s8470_s23  ;;  %s9410_s5 = smov 88   ;;  %v1334_v20 = vsub.s32 0, %v1333_v19  ;;  %v1517_v63 = vsel %vm1355_vm4, %v1275_v62, 0 }
  0x7c   : > { %v8475_v3 = vld [vmem:[%s1186_s28] sm:$0xff]  ;;  %s9408_s28 = smov 96   ;;  %s9539_s15 = sld [smem:[#allocation30_spill]] }
  0x7d   : > { %7263 = vmatpush3.bf16.msra.mxu0 %v7936_v2  ;;  %v1210_v4 = vpack.c.bf16 %v8475_v3, %v8475_v3  ;;  %s9541_s22 = sld [smem:[#allocation37_spill]] }
  0x7e   : > { %7274 = vmatprep.subr.bf16.mxu0 %v8193_v1  ;;  %s9543_s0 = sld [smem:[#allocation39_spill]] }
  0x7f   : > { %s9545_s16 = sld [smem:[#allocation34_spill]] }
  0x80   : > { %7265 = vmatmul.mubr.msk.bf16.vlgmr.msra.gmra.mxu0 %vm1230_vm1, %v1210_v4 }
  0x81   : > { %7276 = vmatprep.mubr.msk.bf16.mxu0 %vm8194_vm0, %v8193_v1 }
  0x82   : > { %s9540_s7 = smov %s9539_s15 }
  0x83   : > { %s9542_s17 = smov %s9541_s22 }
 0x140   : > { %v1268_v6 = vpop.f32.mrf.mxu0 }
 0x141   : > { %v1269_v7 = vadd.f32 %v6806_v5, %v1268_v6 }
 0x142   : > { %v7266_v8 = vpop.f32.mrf.mxu0 }
 0x143   : > { %v8483_v9 = vpack.c.bf16 %v1269_v7, %v1269_v7 }
 0x144   : > { %v1271_v10 = vpop.f32.mrf.mxu0 }
 0x145   : > { %1400 = vrot.lane.b32.xlu1 %v8483_v9, %s9406_s1  ;;  %1281 = vrot.lane.b32.xlu0 %v8483_v9, %s9408_s28  ;;  %s1193_s1 = scalar_lea.vmem %s9514_s13, %s8467_s11  ;;  %s9414_s11 = smov 64  }
 0x146   : > { %v7267_v11 = vpop.f32.mrf.mxu0  ;;  %v1199_v18 = vld [vmem:[%s1193_s1] sm:$0x1]  ;;  %s9426_s1 = smov 56   ;;  %s9416_s28 = smov 112  }
 0x147   : > { %vm1200_vm3 = vcmp.gt.f32.partialorder %v1199_v18, 0.0  ;;  %s9518_s13 = smov 112  }
 0x148   : > { %v1201_v22 = vsel %vm1200_vm3, 0.0, %v8198_v21 }
 0x149   : > { %1402 = vrot.lane.b32.xlu0 %v8483_v9, %s9410_s5  ;;  %v8505_v23 = vrot.slane %v1201_v22, %v1334_v20  ;;  %s9412_s5 = smov 80  }
 0x1b7   : > { %v1282_v12 = vpop.permute.xlu0 %1281  ;;  %v1401_v16 = vpop.permute.xlu1 %1400 }
 0x1b8   : > { %v1288_v13 = vsel %vm1283_vm2, %v1282_v12, 0 }
 0x1b9   : > { %7269 = vmatpush3.bf16.xpose.msra.mxu1 %v1288_v13 }
 0x1ba   : > { %7280 = vmatprep.subr.bf16.mxu1 %v8193_v1 }
 0x1bb   : > { %v1403_v14 = vpop.permute.xlu0 %1402 }
 0x1bc   : > { %v1408_v15 = vsel %vm1283_vm2, %v1403_v14, 0 }
 0x1c0   : > { %7271 = vmatmul.mubr.msk.bf16.vlgmr.msra.gmra.mxu1 %vm1283_vm2, %v8483_v9 }
 0x1c1   : > { %7281 = vmatpush3.bf16.xpose.msra.mxu1 %v1408_v15  ;;  %7282 = vmatprep.mubr.msk.bf16.mxu1 %vm8194_vm0, %v8193_v1 }
 0x1c2   : > { %7292 = vmatprep.subr.bf16.mxu1 %v8193_v1 }
 0x1c8   : > { %7283 = vmatmul.mubr.msk.bf16.vlgmr.msra.gmra.mxu1 %vm1283_vm2, %v1401_v16 }
 0x1c9   : > { %7294 = vmatprep.mubr.msk.bf16.mxu1 %vm8194_vm0, %v8193_v1  ;;  %7293 = vmatpush3.bf16.msra.mxu1 %v1517_v63 }
 0x1ca   : > { %7304 = vmatprep.subr.bf16.mxu1 %v8193_v1 }
 0x280   : > { %v1324_v24 = vpop.f32.mrf.mxu1 }
 0x281   : > { %v1330_v25 = vmul.f32 0.35355338, %v1324_v24 }
 0x282   : > { %v7272_v26 = vpop.f32.mrf.mxu1 }
 0x283   : > { %v1337_v27 = vadd.f32 %v8505_v23, %v1330_v25 }
 0x284   : > { %v1327_v28 = vpop.f32.mrf.mxu1 }
 0x285   : > { %v1338_v29 = vsel %vm1283_vm2, %v1337_v27, -inf }
 0x286   : > { %1339 = vmax.xlane.f32.xlu1 %v1338_v29  ;;  %v7273_v30 = vpop.f32.mrf.mxu1 }
 0x288   : > { %v1444_v31 = vpop.f32.mrf.mxu1 }
 0x289   : > { %v1450_v32 = vmul.f32 0.35355338, %v1444_v31 }
 0x28a   : > { %v7284_v33 = vpop.f32.mrf.mxu1 }
 0x28b   : > { %v1451_v34 = vadd.f32 %v1450_v32, %v8505_v23 }
 0x28c   : > { %v1447_v35 = vpop.f32.mrf.mxu1 }
 0x28d   : > { %v1452_v36 = vsel %vm1283_vm2, %v1451_v34, -inf }
 0x28e   : > { %1453 = vmax.xlane.f32.xlu0 %v1452_v36  ;;  %v7285_v37 = vpop.f32.mrf.mxu1 }
 0x30f   : > { %v1340_v38 = vpop.xlane.xlu1 %1339 }
 0x310   : > { %v1341_v39 = vsub.f32 %v1337_v27, %v1340_v38 }
 0x312   : > { %v1342_v40 = vmul.f32 1.442695, %v1341_v39 }
 0x314   : > { %7977 = vpow2.f32 %v1342_v40 }
 0x317   : > { %v1454_v41 = vpop.xlane.xlu0 %1453 }
 0x318   : > { %v1455_v42 = vsub.f32 %v1451_v34, %v1454_v41 }
 0x31a   : > { %v1456_v43 = vmul.f32 1.442695, %v1455_v42 }
 0x31c   : > { %7979 = vpow2.f32 %v1456_v43 }
 0x321   : > { %v7978_v44 = vpop.eup %7977 }
 0x322   : > { %v1344_v45 = vsel %vm1283_vm2, %v7978_v44, 0.0 }
 0x323   : > { %1345 = vadd.xlane.f32.xlu0 %v1344_v45 }
 0x329   : > { %v7980_v46 = vpop.eup %7979 }
 0x32a   : > { %v1458_v47 = vsel %vm1283_vm2, %v7980_v46, 0.0 }
 0x32b   : > { %1459 = vadd.xlane.f32.xlu1 %v1458_v47 }
 0x339   : > { %1350 = vrot.lane.b32.xlu0 %v8483_v9, %s9414_s11  ;;  %s9422_s11 = smov 104  }
 0x33c   : > { %1464 = vrot.lane.b32.xlu1 %v8483_v9, %s9426_s1 }
 0x33d   : > { %1605 = vrot.lane.b32.xlu0 %v8483_v9, %s9416_s28  ;;  %s9424_s28 = smov 48  }
 0x340   : > { %1607 = vrot.lane.b32.xlu1 %v8483_v9, %s9412_s5  ;;  %s9418_s5 = smov 72  }
 0x3ac   : > { %v1346_v48 = vpop.xlane.xlu0 %1345 }
 0x3ad   : > { %7981 = vrcp.f32 %v1346_v48  ;;  %v1276_v48 = vld [vmem:[%s9498_s29 + $0x8] sm:$0xf] }
 0x3b0   : > { %v1351_v49 = vpop.permute.xlu0 %1350 }
 0x3b1   : > { %v1357_v50 = vsel %vm1355_vm4, %v1351_v49, 0  ;;  %v1722_v49 = vsel %vm1355_vm4, %v1276_v48, 0  ;;  %v6824_v48 = vld [vmem:[%s9493_s14] ss:$0 sm:$0xff] }
 0x3b2   : > { %7275 = vmatpush3.bf16.msra.mxu0 %v1357_v50 }
 0x3b3   : > { %7286 = vmatprep.subr.bf16.mxu0 %v8193_v1 }
 0x3b4   : > { %v1460_v51 = vpop.xlane.xlu1 %1459  ;;  %v1606_v15 = vpop.permute.xlu0 %1605 }
 0x3b5   : > { %7983 = vrcp.f32 %v1460_v51 }
 0x3b8   : > { %v1465_v54 = vpop.permute.xlu1 %1464 }
 0x3b9   : > { %v1470_v56 = vsel %vm1355_vm4, %v1465_v54, 0 }
 0x3ba   : > { %v7982_v52 = vpop.eup %7981 }
 0x3bb   : > { %v1348_v53 = vmul.f32 %v7982_v52, %v7978_v44 }
 0x3bc   : > { %v1608_v7 = vpop.permute.xlu1 %1607 }
 0x3bd   : > { %v1349_v55 = vpack.c.bf16 %v1348_v53, %v1348_v53  ;;  %v1613_v12 = vsel %vm1283_vm2, %v1608_v7, 0 }
 0x3bf   : > { %7277 = vmatmul.mubr.msk.bf16.vlgmr.msra.gmra.mxu0 %vm1283_vm2, %v1349_v55 }
 0x3c0   : > { %7287 = vmatpush3.bf16.msra.mxu0 %v1470_v56  ;;  %7288 = vmatprep.mubr.msk.bf16.mxu0 %vm8194_vm0, %v8193_v1 }
 0x3c1   : > { %7298 = vmatprep.subr.bf16.mxu0 %v8193_v1 }
 0x3c2   : > { %v7984_v57 = vpop.eup %7983 }
 0x3c3   : > { %v1462_v58 = vmul.f32 %v7984_v57, %v7980_v46 }
 0x3c5   : > { %v1463_v59 = vpack.c.bf16 %v1462_v58, %v1462_v58 }
 0x3c7   : > { %7289 = vmatmul.mubr.msk.bf16.vlgmr.msra.gmra.mxu0 %vm1283_vm2, %v1463_v59 }
 0x3c8   : > { %7300 = vmatprep.mubr.msk.bf16.mxu0 %vm8194_vm0, %v8193_v1  ;;  %7299 = vmatpush3.bf16.msra.mxu0 %v1563_v61 }
 0x3c9   : > { %7310 = vmatprep.subr.bf16.mxu0 %v8193_v1 }
 0x47f   : > { %v1393_v0 = vpop.f32.mrf.mxu0 }
 0x480   : > { %v1399_v2 = vpack.c.bf16 %v1393_v0, %v1393_v0 }
 0x481   : > { %v7278_v4 = vpop.f32.mrf.mxu0 }
 0x482   : > { %7301 = vmatmul.mubr.msk.bf16.vlgmr.msra.gmra.mxu0 %vm1283_vm2, %v1399_v2 }
 0x483   : > { %v1396_v5 = vpop.f32.mrf.mxu0  ;;  %7312 = vmatprep.mubr.msk.bf16.mxu0 %vm8194_vm0, %v8193_v1 }
 0x485   : > { %v7279_v6 = vpop.f32.mrf.mxu0 }
 0x487   : > { %v1506_v8 = vpop.f32.mrf.mxu0 }
 0x488   : > { %v1512_v10 = vpack.c.bf16 %v1506_v8, %v1506_v8 }
 0x489   : > { %v7290_v11 = vpop.f32.mrf.mxu0 }
 0x48a   : > { %7295 = vmatmul.mubr.msk.bf16.vlgmr.msra.gmra.mxu1 %vm1283_vm2, %v1512_v10  ;;  %v1277_v11 = vld [vmem:[%s9498_s29 + $0xc] sm:$0xf] }
 0x48b   : > { %7305 = vmatpush3.bf16.xpose.msra.mxu1 %v1613_v12  ;;  %v1509_v13 = vpop.f32.mrf.mxu0  ;;  %7306 = vmatprep.mubr.msk.bf16.mxu1 %vm8194_vm0, %v8193_v1  ;;  %v1882_v12 = vsel %vm1355_vm4, %v1277_v11, 0 }
 0x48c   : > { %7316 = vmatprep.subr.bf16.mxu1 %v8193_v1 }
 0x48d   : > { %v7291_v14 = vpop.f32.mrf.mxu0 }
 0x492   : > { %7307 = vmatmul.mubr.msk.bf16.vlgmr.msra.gmra.mxu1 %vm1283_vm2, %v1606_v15 }
 0x493   : > { %7318 = vmatprep.mubr.msk.bf16.mxu1 %vm8194_vm0, %v8193_v1  ;;  %7317 = vmatpush3.bf16.msra.mxu1 %v1722_v49 }
 0x494   : > { %7328 = vmatprep.subr.bf16.mxu1 %v8193_v1 }
 0x542   : > { %v1599_v16 = vpop.f32.mrf.mxu0 }
 0x544   : > { %v7302_v17 = vpop.f32.mrf.mxu0 }
 0x546   : > { %v1602_v18 = vpop.f32.mrf.mxu0 }
 0x548   : > { %v7303_v19 = vpop.f32.mrf.mxu0 }
 0x54a   : > { %v1553_v20 = vpop.f32.mrf.mxu1 }
 0x54b   : > { %v8548_v22 = vadd.f32 %v1599_v16, %v1553_v20 }
 0x54c   : > { %v7296_v24 = vpop.f32.mrf.mxu1 }
 0x54e   : > { %v1556_v25 = vpop.f32.mrf.mxu1 }
 0x54f   : > { %v6822_v25 = vld [vmem:[%s9499_s3] ss:$0 sm:$0xff] }
 0x550   : > { %v7297_v26 = vpop.f32.mrf.mxu1 }
 0x552   : > { %v1649_v27 = vpop.f32.mrf.mxu1 }
 0x553   : > { %v1655_v28 = vmul.f32 0.35355338, %v1649_v27 }
 0x554   : > { %v7308_v29 = vpop.f32.mrf.mxu1 }
 0x555   : > { %v1656_v30 = vadd.f32 %v1655_v28, %v8505_v23 }
 0x556   : > { %v1652_v31 = vpop.f32.mrf.mxu1 }
 0x557   : > { %v1657_v32 = vsel %vm1283_vm2, %v1656_v30, -inf }
 0x558   : > { %1658 = vmax.xlane.f32.xlu1 %v1657_v32  ;;  %v7309_v33 = vpop.f32.mrf.mxu1 }
 0x569   : > { %1767 = vrot.lane.b32.xlu1 %v8483_v9, %s9418_s5  ;;  %s9420_s5 = smov 40  }
 0x56d   : > { %1765 = vrot.lane.b32.xlu1 %v8483_v9, %s9422_s11  ;;  %s9516_s11 = smov 96  }
 0x5e1   : > { %v1659_v34 = vpop.xlane.xlu1 %1658 }
 0x5e2   : > { %v1660_v35 = vsub.f32 %v1656_v30, %v1659_v34 }
 0x5e4   : > { %v1661_v36 = vmul.f32 1.442695, %v1660_v35 }
 0x5e5   : > { %v1768_v44 = vpop.permute.xlu1 %1767 }
 0x5e6   : > { %7985 = vpow2.f32 %v1661_v36  ;;  %v1773_v46 = vsel %vm1283_vm2, %v1768_v44, 0 }
 0x5e9   : > { %v1766_v47 = vpop.permute.xlu1 %1765 }
 0x5f3   : > { %v7986_v37 = vpop.eup %7985 }
 0x5f4   : > { %v1663_v38 = vsel %vm1283_vm2, %v7986_v37, 0.0 }
 0x5f5   : > { %1664 = vadd.xlane.f32.xlu0 %v1663_v38 }
 0x60b   : > { %1669 = vrot.lane.b32.xlu0 %v8483_v9, %s9424_s28  ;;  %s9517_s28 = smov 120  }
 0x67e   : > { %v1665_v39 = vpop.xlane.xlu0 %1664 }
 0x67f   : > { %7987 = vrcp.f32 %v1665_v39  ;;  %v7937_v39 = vld [vmem:[%s9497_s30 + $0x8] sm:$0xff]  }
 0x682   : > { %v1670_v40 = vpop.permute.xlu0 %1669 }
 0x683   : > { %v1675_v41 = vsel %vm1355_vm4, %v1670_v40, 0  ;;  %v7938_v40 = vld [vmem:[%s9497_s30] sm:$0xff]  }
 0x684   : > { %7311 = vmatpush3.bf16.msra.mxu0 %v1675_v41  ;;  %v7940_v41 = vld [vmem:[%s9494_s12 + $0x10] sm:$0xff]  }
 0x685   : > { %7322 = vmatprep.subr.bf16.mxu0 %v8193_v1 }
 0x68c   : > { %v7988_v42 = vpop.eup %7987 }
 0x68d   : > { %v1667_v43 = vmul.f32 %v7988_v42, %v7986_v37 }
 0x68f   : > { %v1668_v45 = vpack.c.bf16 %v1667_v43, %v1667_v43 }
 0x691   : > { %7313 = vmatmul.mubr.msk.bf16.vlgmr.msra.gmra.mxu0 %vm1283_vm2, %v1668_v45 }
 0x692   : > { %7323 = vmatpush3.bf16.xpose.msra.mxu0 %v1773_v46  ;;  %7324 = vmatprep.mubr.msk.bf16.mxu0 %vm8194_vm0, %v8193_v1  ;;  %v6823_v46 = vld [vmem:[%s9495_s8] ss:$0 sm:$0xff] }
 0x693   : > { %7334 = vmatprep.subr.bf16.mxu0 %v8193_v1 }
 0x699   : > { %7325 = vmatmul.mubr.msk.bf16.vlgmr.msra.gmra.mxu0 %vm1283_vm2, %v1766_v47 }
 0x69a   : > { %7336 = vmatprep.mubr.msk.bf16.mxu0 %vm8194_vm0, %v8193_v1  ;;  %7335 = vmatpush3.bf16.msra.mxu0 %v1882_v12 }
 0x69b   : > { %7348 = vmatprep.subr.bf16.mxu0 %v8193_v1 }
 0x751   : > { %v1711_v50 = vpop.f32.mrf.mxu0 }
 0x752   : > { %v1717_v51 = vpack.c.bf16 %v1711_v50, %v1711_v50 }
 0x753   : > { %v7314_v52 = vpop.f32.mrf.mxu0 }
 0x754   : > { %7319 = vmatmul.mubr.msk.bf16.vlgmr.msra.gmra.mxu1 %vm1283_vm2, %v1717_v51  ;;  %v7941_v52 = vld [vmem:[%s9494_s12 + $0x8] sm:$0xff]  }
 0x755   : > { %v1714_v53 = vpop.f32.mrf.mxu0  ;;  %7330 = vmatprep.mubr.msk.bf16.mxu1 %vm8194_vm0, %v8193_v1 }
 0x756   : > { %v7942_v53 = vld [vmem:[%s9494_s12] sm:$0xff]  }
 0x757   : > { %v7315_v54 = vpop.f32.mrf.mxu0 }
 0x758   : > { %v6825_v54 = vld [vmem:[%s9496_s6] ss:$0 sm:$0xff] }
 0x759   : > { %v1809_v55 = vpop.f32.mrf.mxu0 }
 0x75a   : > { %v1815_v56 = vmul.f32 0.35355338, %v1809_v55 }
 0x75b   : > { %v7326_v57 = vpop.f32.mrf.mxu0 }
 0x75c   : > { %v1816_v58 = vadd.f32 %v1815_v56, %v8505_v23 }
 0x75d   : > { %v1812_v59 = vpop.f32.mrf.mxu0 }
 0x75e   : > { %v1817_v60 = vsel %vm1283_vm2, %v1816_v58, -inf }
 0x75f   : > { %1818 = vmax.xlane.f32.xlu0 %v1817_v60  ;;  %v7327_v61 = vpop.f32.mrf.mxu0 }
 0x775   : > { %1829 = vrot.lane.b32.xlu0 %v8483_v9, %s9420_s5  ;;  %s9515_s5 = smov 88  }
 0x7e8   : > { %v1819_v62 = vpop.xlane.xlu0 %1818 }
 0x7e9   : > { %v1820_v63 = vsub.f32 %v1816_v58, %v1819_v62  ;;  %v6829_v62 = vld [vmem:[%s9492_s20] ss:$0 sm:$0xff] }
 0x7eb   : > { %v1821_v0 = vmul.f32 1.442695, %v1820_v63 }
 0x7ec   : > { %v1830_v2 = vpop.permute.xlu0 %1829 }
 0x7ed   : > { %7989 = vpow2.f32 %v1821_v0  ;;  %v1835_v4 = vsel %vm1355_vm4, %v1830_v2, 0 }
 0x7ee   : > { %7329 = vmatpush3.bf16.msra.mxu1 %v1835_v4 }
 0x7ef   : > { %7340 = vmatprep.subr.bf16.mxu1 %v8193_v1 }
 0x7fa   : > { %v7990_v5 = vpop.eup %7989 }
 0x7fb   : > { %v1823_v6 = vsel %vm1283_vm2, %v7990_v5, 0.0 }
 0x7fc   : > { %1824 = vadd.xlane.f32.xlu1 %v1823_v6 }
 0x814   : > { %v1758_v7 = vpop.f32.mrf.mxu1 }
 0x815   : > { %v1764_v8 = vadd.f32 %v1758_v7, %v8548_v22 }
 0x816   : > { %v7320_v10 = vpop.f32.mrf.mxu1 }
 0x818   : > { %v1761_v9 = vpop.f32.mrf.mxu1 }
 0x81a   : > { %v7321_v13 = vpop.f32.mrf.mxu1 }
 0x81b   : > { %v7943_v13 = vld [vmem:[%s9501_s21 + $0x18] sm:$0xff]  }
 0x885   : > { %v1825_v14 = vpop.xlane.xlu1 %1824 }
 0x886   : > { %7991 = vrcp.f32 %v1825_v14  ;;  %v7944_v14 = vld [vmem:[%s9501_s21 + $0x10] sm:$0xff]   ;;  %s9520_s21 = smov 80  }
 0x893   : > { %v7992_v15 = vpop.eup %7991 }
 0x894   : > { %v1827_v16 = vmul.f32 %v7992_v15, %v7990_v5 }
 0x896   : > { %v1828_v17 = vpack.c.bf16 %v1827_v16, %v1827_v16 }
 0x898   : > { %7331 = vmatmul.mubr.msk.bf16.vlgmr.msra.gmra.mxu1 %vm1283_vm2, %v1828_v17 }
 0x899   : > { %7344 = vmatprep.mubr.msk.bf16.mxu1 %vm8194_vm0, %v8193_v1  ;;  %7341 = vmatpush3.bf16.msra.mxu1 %v7937_v39 }
 0x89a   : > { %7342 = vmatprep.subr.bf16.mxu1 %v8193_v1 }
 0x89d   : > { %7343 = vmatpush3.bf16.msra.mxu1 %v7938_v40 }
 0x89e   : > { %7360 = vmatprep.subr.bf16.mxu1 %v8193_v1 }
 0x958   : > { %v1871_v18 = vpop.f32.mrf.mxu1 }
 0x959   : > { %v1877_v19 = vpack.c.bf16 %v1871_v18, %v1871_v18 }
 0x95a   : > { %v7332_v20 = vpop.f32.mrf.mxu1 }
 0x95b   : > { %7337 = vmatmul.mubr.msk.bf16.vlgmr.msra.gmra.mxu0 %vm1283_vm2, %v1877_v19  ;;  %v6835_v19 = vld [vmem:[%s9491_s19] ss:$0 sm:$0xff] }
 0x95c   : > { %v1874_v22 = vpop.f32.mrf.mxu1  ;;  %7356 = vmatprep.mubr.msk.bf16.mxu0 %vm8194_vm0, %v8193_v1 }
 0x95d   : > { %v6836_v22 = vld [vmem:[%s9490_s24] ss:$0 sm:$0xff] }
 0x95e   : > { %v7333_v24 = vpop.f32.mrf.mxu1 }
 0xa1b   : > { %v1918_v26 = vpop.f32.mrf.mxu0 }
 0xa1c   : > { %v1924_v27 = vadd.f32 %v1918_v26, %v1764_v8 }
 0xa1d   : > { %v7338_v28 = vpop.f32.mrf.mxu0 }
 0xa1e   : > { %v1931_v29 = vadd.f32 %v6822_v25, %v1924_v27  ;;  %v6842_v27 = vld [vmem:[%s9500_s25 + $0x1] ss:$0 sm:$0xff]  ;;  %s9521_s25 = smov 48  }
 0xa1f   : > { %v1921_v30 = vpop.f32.mrf.mxu0 }
 0xa20   : > { %v1932_v31 = vadd.f32 %v1931_v29, %v8475_v3  ;;  %v7939_v3 = vld [vmem:[%s9494_s12 + $0x18] sm:$0xff]  }
 0xa21   : > { %v7339_v32 = vpop.f32.mrf.mxu0  ;;  %7349 = vmatpush3.bf16.msra.mxu0 %v7939_v3 }
 0xa22   : > { %v1935_v33 = vsel %vm1230_vm1, %v1932_v31, 0.0  ;;  %7350 = vmatprep.subr.bf16.mxu0 %v8193_v1 }
 0xa23   : > { %1936 = vadd.xlane.f32.xlu1 %v1935_v33 }
 0xa25   : > { %7351 = vmatpush3.bf16.msra.mxu0 %v7940_v41 }
 0xa26   : > { %7352 = vmatprep.subr.bf16.mxu0 %v8193_v1 }
 0xa29   : > { %7353 = vmatpush3.bf16.msra.mxu0 %v7941_v52 }
 0xa2a   : > { %7354 = vmatprep.subr.bf16.mxu0 %v8193_v1 }
 0xa2d   : > { %7355 = vmatpush3.bf16.msra.mxu0 %v7942_v53 }
 0xa2e   : > { %7374 = vmatprep.subr.bf16.mxu0 %v8193_v1 }
 0xaac   : > { %v1937_v34 = vpop.xlane.xlu1 %1936 }
 0xaad   : > { %v1939_v35 = vmul.f32 0.03125, %v1937_v34 }
 0xaaf   : > { %v1940_v36 = vsub.f32 %v1932_v31, %v1939_v35 }
 0xab1   : > { %v1941_v37 = vmul.f32 %v1940_v36, %v1940_v36 }
 0xab3   : > { %v1942_v38 = vsel %vm1230_vm1, %v1941_v37, 0.0 }
 0xab4   : > { %1943 = vadd.xlane.f32.xlu1 %v1942_v38 }
 0xb3d   : > { %v1944_v42 = vpop.xlane.xlu1 %1943 }
 0xb3e   : > { %v1945_v43 = vmul.f32 0.03125, %v1944_v42 }
 0xb40   : > { %v1946_v44 = vadd.f32 1e-05, %v1945_v43 }
 0xb42   : > { %7993 = vrsqrt.f32 %v1946_v44 }
 0xb4f   : > { %v7994_v45 = vpop.eup %7993 }
 0xb50   : > { %v1948_v47 = vmul.f32 %v7994_v45, %v1940_v36 }
 0xb52   : > { %v1955_v49 = vmul.f32 %v6823_v46, %v1948_v47 }
 0xb54   : > { %v1962_v50 = vadd.f32 %v6824_v48, %v1955_v49 }
 0xb56   : > { %v1967_v51 = vpack.c.bf16 %v1962_v50, %v1962_v50 }
 0xb58   : > { %7345 = vmatmul.mubr.msk.bf16.vlgmr.msra.gmra.mxu1 %vm1230_vm1, %v1967_v51 }
 0xb59   : > { %7364 = vmatprep.mubr.msk.bf16.mxu1 %vm8194_vm0, %v8193_v1  ;;  %7361 = vmatpush3.bf16.msra.mxu1 %v7943_v13 }
 0xb5a   : > { %7362 = vmatprep.subr.bf16.mxu1 %v8193_v1 }
 0xb5d   : > { %7363 = vmatpush3.bf16.msra.mxu1 %v7944_v14  ;;  %v6847_v14 = vld [vmem:[%s9498_s29 + $0x14] sm:$0xf] }
 0xb5e   : > { %7368 = vmatprep.subr.bf16.mxu1 %v8193_v1 }
 0xc18   : > { %v2024_v55 = vpop.f32.mrf.mxu1 }
 0xc19   : > { %v2025_v56 = vadd.f32 %v6825_v54, %v2024_v55 }
 0xc1a   : > { %v7346_v57 = vpop.f32.mrf.mxu1 }
 0xc1b   : > { %v2030_v58 = vmax.f32 %v2025_v56, 0.0 }
 0xc1c   : > { %v2027_v59 = vpop.f32.mrf.mxu1 }
 0xc1d   : > { %v2039_v60 = vpack.c.bf16 %v2030_v58, %v2030_v58 }
 0xc1e   : > { %v7347_v61 = vpop.f32.mrf.mxu1 }
 0xc1f   : > { %7357 = vmatmul.mubr.msk.bf16.vlgmr.msra.gmra.mxu0 %vm2071_vm5, %v2039_v60 }
 0xc20   : > { %7376 = vmatprep.mubr.msk.bf16.mxu0 %vm8194_vm0, %v8193_v1 }
 0xcdf   : > { %v2109_v63 = vpop.f32.mrf.mxu0 }
 0xce0   : > { %v2110_v0 = vadd.f32 %v6829_v62, %v2109_v63 }
 0xce1   : > { %v7358_v2 = vpop.f32.mrf.mxu0 }
 0xce2   : > { %v2115_v4 = vadd.f32 %v2110_v0, %v1962_v50 }
 0xce3   : > { %v2112_v5 = vpop.f32.mrf.mxu0 }
 0xce4   : > { %v2118_v6 = vsel %vm1230_vm1, %v2115_v4, 0.0 }
 0xce5   : > { %2119 = vadd.xlane.f32.xlu1 %v2118_v6  ;;  %v7359_v7 = vpop.f32.mrf.mxu0 }
 0xd6e   : > { %v2120_v8 = vpop.xlane.xlu1 %2119 }
 0xd6f   : > { %v2121_v10 = vmul.f32 0.03125, %v2120_v8 }
 0xd71   : > { %v2122_v9 = vsub.f32 %v2115_v4, %v2121_v10 }
 0xd73   : > { %v2123_v11 = vmul.f32 %v2122_v9, %v2122_v9 }
 0xd75   : > { %v2124_v12 = vsel %vm1230_vm1, %v2123_v11, 0.0 }
 0xd76   : > { %2125 = vadd.xlane.f32.xlu1 %v2124_v12  ;;  %v6846_v12 = vld [vmem:[%s9498_s29 + $0x10] sm:$0xf] }
 0xd77   : > { %v2497_v13 = vsel %vm1355_vm4, %v6846_v12, 0 }
 0xdff   : > { %v2126_v15 = vpop.xlane.xlu1 %2125 }
 0xe00   : > { %v2127_v16 = vmul.f32 0.03125, %v2126_v15  ;;  %v2451_v15 = vsel %vm1355_vm4, %v6847_v14, 0 }
 0xe02   : > { %v2128_v17 = vadd.f32 1e-05, %v2127_v16 }
 0xe04   : > { %7995 = vrsqrt.f32 %v2128_v17 }
 0xe11   : > { %v7996_v18 = vpop.eup %7995 }
 0xe12   : > { %v2130_v20 = vmul.f32 %v7996_v18, %v2122_v9 }
 0xe14   : > { %v2137_v24 = vmul.f32 %v6835_v19, %v2130_v20 }
 0xe16   : > { %v8626_v25 = vadd.f32 %v6836_v22, %v2137_v24 }
 0xe18   : > { %v2150_v26 = vpack.c.bf16 %v8626_v25, %v8626_v25 }
 0xe1a   : > { %7365 = vmatmul.mubr.msk.bf16.vlgmr.msra.gmra.mxu1 %vm1230_vm1, %v2150_v26 }
 0xe1b   : > { %7370 = vmatprep.mubr.msk.bf16.mxu1 %vm8194_vm0, %v8193_v1 }
 0xeda   : > { %v2208_v28 = vpop.f32.mrf.mxu1 }
 0xedb   : > { %v2209_v29 = vadd.f32 %v6842_v27, %v2208_v28 }
 0xedc   : > { %v7366_v30 = vpop.f32.mrf.mxu1 }
 0xedd   : > { %v8634_v31 = vpack.c.bf16 %v2209_v29, %v2209_v29 }
 0xede   : > { %v2211_v32 = vpop.f32.mrf.mxu1 }
 0xedf   : > { %2336 = vrot.lane.b32.xlu0 %v8634_v31, %s9515_s5  ;;  %2223 = vrot.lane.b32.xlu1 %v8634_v31, %s9516_s11 }
 0xee0   : > { %v7367_v33 = vpop.f32.mrf.mxu1 }
 0xee3   : > { %2334 = vrot.lane.b32.xlu0 %v8634_v31, %s9517_s28 }
 0xf51   : > { %v2224_v34 = vpop.permute.xlu1 %2223  ;;  %v2337_v36 = vpop.permute.xlu0 %2336 }
 0xf52   : > { %v2229_v35 = vsel %vm1283_vm2, %v2224_v34, 0  ;;  %v2342_v37 = vsel %vm1283_vm2, %v2337_v36, 0 }
 0xf53   : > { %7369 = vmatpush3.bf16.xpose.msra.mxu1 %v2229_v35 }
 0xf54   : > { %7380 = vmatprep.subr.bf16.mxu1 %v8193_v1 }
 0xf55   : > { %v2335_v38 = vpop.permute.xlu0 %2334 }
 0xf5a   : > { %7371 = vmatmul.mubr.msk.bf16.vlgmr.msra.gmra.mxu1 %vm1283_vm2, %v8634_v31 }
 0xf5b   : > { %7381 = vmatpush3.bf16.xpose.msra.mxu1 %v2342_v37  ;;  %7382 = vmatprep.mubr.msk.bf16.mxu1 %vm8194_vm0, %v8193_v1 }
 0xf5c   : > { %7392 = vmatprep.subr.bf16.mxu1 %v8193_v1 }
 0xf62   : > { %7383 = vmatmul.mubr.msk.bf16.vlgmr.msra.gmra.mxu1 %vm1283_vm2, %v2335_v38 }
 0xf63   : > { %7394 = vmatprep.mubr.msk.bf16.mxu1 %vm8194_vm0, %v8193_v1  ;;  %7393 = vmatpush3.bf16.msra.mxu1 %v2451_v15 }
 0xf64   : > { %7404 = vmatprep.subr.bf16.mxu1 %v8193_v1 }
0x101a   : > { %v2265_v39 = vpop.f32.mrf.mxu1 }
0x101b   : > { %v2271_v40 = vmul.f32 0.35355338, %v2265_v39 }
0x101c   : > { %v7372_v3 = vpop.f32.mrf.mxu1 }
0x101d   : > { %v2272_v41 = vadd.f32 %v2271_v40, %v8505_v23 }
0x101e   : > { %v2268_v42 = vpop.f32.mrf.mxu1 }
0x101f   : > { %v2273_v43 = vsel %vm1283_vm2, %v2272_v41, -inf }
0x1020   : > { %2274 = vmax.xlane.f32.xlu0 %v2273_v43  ;;  %v7373_v44 = vpop.f32.mrf.mxu1 }
0x1022   : > { %v2378_v45 = vpop.f32.mrf.mxu1 }
0x1023   : > { %v2384_v46 = vmul.f32 0.35355338, %v2378_v45 }
0x1024   : > { %v7384_v47 = vpop.f32.mrf.mxu1 }
0x1025   : > { %v2385_v48 = vadd.f32 %v2384_v46, %v8505_v23 }
0x1026   : > { %v2381_v49 = vpop.f32.mrf.mxu1 }
0x1027   : > { %v2386_v50 = vsel %vm1283_vm2, %v2385_v48, -inf }
0x1028   : > { %2387 = vmax.xlane.f32.xlu1 %v2386_v50  ;;  %v7385_v51 = vpop.f32.mrf.mxu1 }
0x1039   : > { %2398 = vrot.lane.b32.xlu1 %v8634_v31, %s9426_s1  ;;  %s9519_s1 = smov 64  }
0x103d   : > { %2539 = vrot.lane.b32.xlu1 %v8634_v31, %s9518_s13 }
0x10a9   : > { %v2275_v52 = vpop.xlane.xlu0 %2274 }
0x10aa   : > { %v2276_v53 = vsub.f32 %v2272_v41, %v2275_v52 }
0x10ac   : > { %v2277_v54 = vmul.f32 1.442695, %v2276_v53 }
0x10ae   : > { %7997 = vpow2.f32 %v2277_v54 }
0x10b1   : > { %v2388_v55 = vpop.xlane.xlu1 %2387 }
0x10b2   : > { %v2389_v56 = vsub.f32 %v2385_v48, %v2388_v55 }
0x10b4   : > { %v2390_v57 = vmul.f32 1.442695, %v2389_v56 }
0x10b5   : > { %v2399_v6 = vpop.permute.xlu1 %2398 }
0x10b6   : > { %7999 = vpow2.f32 %v2390_v57  ;;  %v2404_v8 = vsel %vm1355_vm4, %v2399_v6, 0 }
0x10b9   : > { %v2540_v32 = vpop.permute.xlu1 %2539 }
0x10bb   : > { %v7998_v58 = vpop.eup %7997 }
0x10bc   : > { %v2279_v59 = vsel %vm1283_vm2, %v7998_v58, 0.0 }
0x10bd   : > { %2280 = vadd.xlane.f32.xlu0 %v2279_v59 }
0x10c3   : > { %v8000_v60 = vpop.eup %7999 }
0x10c4   : > { %v2392_v61 = vsel %vm1283_vm2, %v8000_v60, 0.0 }
0x10c5   : > { %2393 = vadd.xlane.f32.xlu0 %v2392_v61 }
0x10db   : > { %2285 = vrot.lane.b32.xlu0 %v8634_v31, %s9519_s1 }
0x10df   : > { %2541 = vrot.lane.b32.xlu0 %v8634_v31, %s9520_s21 }
0x1146   : > { %v2281_v62 = vpop.xlane.xlu0 %2280 }
0x1147   : > { %8001 = vrcp.f32 %v2281_v62  ;;  %v6848_v62 = vld [vmem:[%s9498_s29 + $0x18] sm:$0xf] }
0x114e   : > { %v2394_v63 = vpop.xlane.xlu0 %2393 }
0x114f   : > { %8003 = vrcp.f32 %v2394_v63  ;;  %v2656_v63 = vsel %vm1355_vm4, %v6848_v62, 0  ;;  %v6867_v62 = vld [vmem:[%s9493_s14 + $0x1] ss:$0 sm:$0xff]  ;;  %s9534_s14 = sld [smem:[#allocation31_spill]] }
0x1152   : > { %v2286_v0 = vpop.permute.xlu0 %2285 }
0x1153   : > { %v2291_v2 = vsel %vm1355_vm4, %v2286_v0, 0 }
0x1154   : > { %v8002_v4 = vpop.eup %8001  ;;  %7375 = vmatpush3.bf16.msra.mxu0 %v2291_v2 }
0x1155   : > { %7386 = vmatprep.subr.bf16.mxu0 %v8193_v1  ;;  %v2283_v5 = vmul.f32 %v8002_v4, %v7998_v58 }
0x1156   : > { %v2542_v22 = vpop.permute.xlu0 %2541 }
0x1157   : > { %v2284_v7 = vpack.c.bf16 %v2283_v5, %v2283_v5  ;;  %v2547_v28 = vsel %vm1283_vm2, %v2542_v22, 0 }
0x1159   : > { %7377 = vmatmul.mubr.msk.bf16.vlgmr.msra.gmra.mxu0 %vm1283_vm2, %v2284_v7 }
0x115a   : > { %7387 = vmatpush3.bf16.msra.mxu0 %v2404_v8  ;;  %7388 = vmatprep.mubr.msk.bf16.mxu0 %vm8194_vm0, %v8193_v1 }
0x115b   : > { %7398 = vmatprep.subr.bf16.mxu0 %v8193_v1 }
0x115c   : > { %v8004_v10 = vpop.eup %8003 }
0x115d   : > { %v2396_v9 = vmul.f32 %v8004_v10, %v8000_v60 }
0x115f   : > { %v2397_v11 = vpack.c.bf16 %v2396_v9, %v2396_v9 }
0x1161   : > { %7389 = vmatmul.mubr.msk.bf16.vlgmr.msra.gmra.mxu0 %vm1283_vm2, %v2397_v11 }
0x1162   : > { %7400 = vmatprep.mubr.msk.bf16.mxu0 %vm8194_vm0, %v8193_v1  ;;  %7399 = vmatpush3.bf16.msra.mxu0 %v2497_v13 }
0x1163   : > { %7410 = vmatprep.subr.bf16.mxu0 %v8193_v1 }
0x1219   : > { %v2327_v16 = vpop.f32.mrf.mxu0 }
0x121a   : > { %v2333_v17 = vpack.c.bf16 %v2327_v16, %v2327_v16 }
0x121b   : > { %v7378_v18 = vpop.f32.mrf.mxu0 }
0x121c   : > { %7401 = vmatmul.mubr.msk.bf16.vlgmr.msra.gmra.mxu0 %vm1283_vm2, %v2333_v17 }
0x121d   : > { %v2330_v19 = vpop.f32.mrf.mxu0  ;;  %7412 = vmatprep.mubr.msk.bf16.mxu0 %vm8194_vm0, %v8193_v1 }
0x121f   : > { %v7379_v20 = vpop.f32.mrf.mxu0 }
0x1221   : > { %v2440_v24 = vpop.f32.mrf.mxu0 }
0x1222   : > { %v2446_v26 = vpack.c.bf16 %v2440_v24, %v2440_v24 }
0x1223   : > { %v7390_v27 = vpop.f32.mrf.mxu0 }
0x1224   : > { %7395 = vmatmul.mubr.msk.bf16.vlgmr.msra.gmra.mxu1 %vm1283_vm2, %v2446_v26  ;;  %v6849_v26 = vld [vmem:[%s9498_s29 + $0x1c] sm:$0xf]  ;;  %s9526_s29 = sld [smem:[#allocation6_spill]] }
0x1225   : > { %7405 = vmatpush3.bf16.xpose.msra.mxu1 %v2547_v28  ;;  %v2443_v29 = vpop.f32.mrf.mxu0  ;;  %7406 = vmatprep.mubr.msk.bf16.mxu1 %vm8194_vm0, %v8193_v1  ;;  %v2816_v27 = vsel %vm1355_vm4, %v6849_v26, 0 }
0x1226   : > { %7416 = vmatprep.subr.bf16.mxu1 %v8193_v1 }
0x1227   : > { %v7391_v30 = vpop.f32.mrf.mxu0 }
0x122c   : > { %7407 = vmatmul.mubr.msk.bf16.vlgmr.msra.gmra.mxu1 %vm1283_vm2, %v2540_v32 }
0x122d   : > { %7418 = vmatprep.mubr.msk.bf16.mxu1 %vm8194_vm0, %v8193_v1  ;;  %7417 = vmatpush3.bf16.msra.mxu1 %v2656_v63 }
0x122e   : > { %7428 = vmatprep.subr.bf16.mxu1 %v8193_v1 }
0x12dc   : > { %v2533_v33 = vpop.f32.mrf.mxu0 }
0x12de   : > { %v7402_v34 = vpop.f32.mrf.mxu0 }
0x12e0   : > { %v2536_v35 = vpop.f32.mrf.mxu0 }
0x12e2   : > { %v7403_v36 = vpop.f32.mrf.mxu0 }
0x12e4   : > { %v2487_v37 = vpop.f32.mrf.mxu1 }
0x12e5   : > { %v8694_v38 = vadd.f32 %v2533_v33, %v2487_v37 }
0x12e6   : > { %v7396_v39 = vpop.f32.mrf.mxu1 }
0x12e8   : > { %v2490_v40 = vpop.f32.mrf.mxu1 }
0x12e9   : > { %v6863_v40 = vld [vmem:[%s9499_s3 + $0x1] ss:$0 sm:$0xff]  ;;  %s9525_s3 = sld [smem:[#allocation21_spill]] }
0x12ea   : > { %v7397_v3 = vpop.f32.mrf.mxu1 }
0x12ec   : > { %v2583_v41 = vpop.f32.mrf.mxu1 }
0x12ed   : > { %v2589_v42 = vmul.f32 0.35355338, %v2583_v41 }
0x12ee   : > { %v7408_v43 = vpop.f32.mrf.mxu1 }
0x12ef   : > { %v2590_v44 = vadd.f32 %v2589_v42, %v8505_v23 }
0x12f0   : > { %v2586_v45 = vpop.f32.mrf.mxu1 }
0x12f1   : > { %v2591_v46 = vsel %vm1283_vm2, %v2590_v44, -inf }
0x12f2   : > { %2592 = vmax.xlane.f32.xlu0 %v2591_v46  ;;  %v7409_v47 = vpop.f32.mrf.mxu1 }
0x1308   : > { %2603 = vrot.lane.b32.xlu0 %v8634_v31, %s9521_s25 }
0x130c   : > { %2699 = vrot.lane.b32.xlu0 %v8634_v31, %s9522_s2 }
0x137b   : > { %v2593_v48 = vpop.xlane.xlu0 %2592 }
0x137c   : > { %v2594_v49 = vsub.f32 %v2590_v44, %v2593_v48 }
0x137e   : > { %v2595_v50 = vmul.f32 1.442695, %v2594_v49 }
0x137f   : > { %v2604_v51 = vpop.permute.xlu0 %2603 }
0x1380   : > { %8005 = vpow2.f32 %v2595_v50  ;;  %v2609_v52 = vsel %vm1355_vm4, %v2604_v51, 0 }
0x1381   : > { %7411 = vmatpush3.bf16.msra.mxu0 %v2609_v52 }
0x1382   : > { %7422 = vmatprep.subr.bf16.mxu0 %v8193_v1 }
0x1383   : > { %v2700_v61 = vpop.permute.xlu0 %2699 }
0x138d   : > { %v8006_v53 = vpop.eup %8005 }
0x138e   : > { %v2597_v54 = vsel %vm1283_vm2, %v8006_v53, 0.0 }
0x138f   : > { %2598 = vadd.xlane.f32.xlu1 %v2597_v54  ;;  %v7946_v54 = vld [vmem:[%s9497_s30 + $0x10] sm:$0xff]  }
0x13a0   : > { %2701 = vrot.lane.b32.xlu1 %v8634_v31, %s9523_s18 }
0x1418   : > { %v2599_v55 = vpop.xlane.xlu1 %2598 }
0x1419   : > { %8007 = vrcp.f32 %v2599_v55  ;;  %v7950_v55 = vld [vmem:[%s9494_s12 + $0x30] sm:$0xff]  }
0x141c   : > { %v2702_v58 = vpop.permute.xlu1 %2701 }
0x141d   : > { %v2707_v60 = vsel %vm1283_vm2, %v2702_v58, 0 }
0x1426   : > { %v8008_v56 = vpop.eup %8007 }
0x1427   : > { %v2601_v57 = vmul.f32 %v8008_v56, %v8006_v53  ;;  %v7945_v53 = vld [vmem:[%s9497_s30 + $0x18] sm:$0xff]   ;;  %s1190_s30 = scalar_lea.vmem %s9526_s29, %s8470_s23  ;;  %s9527_s29 = sld [smem:[#allocation22_spill]] }
0x1429   : > { %v2602_v59 = vpack.c.bf16 %v2601_v57, %v2601_v57 }
0x142b   : > { %7413 = vmatmul.mubr.msk.bf16.vlgmr.msra.gmra.mxu0 %vm1283_vm2, %v2602_v59 }
0x142c   : > { %7423 = vmatpush3.bf16.xpose.msra.mxu0 %v2707_v60  ;;  %7424 = vmatprep.mubr.msk.bf16.mxu0 %vm8194_vm0, %v8193_v1  ;;  %v6866_v60 = vld [vmem:[%s9495_s8 + $0x1] ss:$0 sm:$0xff]  ;;  %s9532_s8 = sld [smem:[#allocation27_spill]] }
0x142d   : > { %7434 = vmatprep.subr.bf16.mxu0 %v8193_v1 }
0x1433   : > { %7425 = vmatmul.mubr.msk.bf16.vlgmr.msra.gmra.mxu0 %vm1283_vm2, %v2700_v61 }
0x1434   : > { %7436 = vmatprep.mubr.msk.bf16.mxu0 %vm8194_vm0, %v8193_v1  ;;  %7435 = vmatpush3.bf16.msra.mxu0 %v2816_v27 }
0x1435   : > { %7448 = vmatprep.subr.bf16.mxu0 %v8193_v1 }
0x14eb   : > { %v2645_v0 = vpop.f32.mrf.mxu0 }
0x14ec   : > { %v2651_v2 = vpack.c.bf16 %v2645_v0, %v2645_v0 }
0x14ed   : > { %v7414_v4 = vpop.f32.mrf.mxu0 }
0x14ee   : > { %7419 = vmatmul.mubr.msk.bf16.vlgmr.msra.gmra.mxu1 %vm1283_vm2, %v2651_v2  ;;  %v7947_v2 = vld [vmem:[%s9525_s3 + $0x8] sm:$0xff]  }
0x14ef   : > { %v2648_v5 = vpop.f32.mrf.mxu0  ;;  %7430 = vmatprep.mubr.msk.bf16.mxu1 %vm8194_vm0, %v8193_v1 }
0x14f0   : > { %v7948_v5 = vld [vmem:[%s9525_s3] sm:$0xff]  }
0x14f1   : > { %v7415_v6 = vpop.f32.mrf.mxu0 }
0x14f2   : > { %v8763_v6 = vld [vmem:[%s1190_s30] sm:$0xff]  ;;  %s9528_s30 = sld [smem:[#allocation8_spill]] }
0x14f3   : > { %v2743_v7 = vpop.f32.mrf.mxu0 }
0x14f4   : > { %v2749_v8 = vmul.f32 0.35355338, %v2743_v7  ;;  %v3090_v7 = vpack.c.bf16 %v8763_v6, %v8763_v6 }
0x14f5   : > { %v7426_v10 = vpop.f32.mrf.mxu0 }
0x14f6   : > { %v2750_v9 = vadd.f32 %v2749_v8, %v8505_v23  ;;  %v7951_v8 = vld [vmem:[%s9494_s12 + $0x28] sm:$0xff]   ;;  %v7952_v10 = vld [vmem:[%s9494_s12 + $0x20] sm:$0xff]  }
0x14f7   : > { %v2746_v11 = vpop.f32.mrf.mxu0 }
0x14f8   : > { %v2751_v12 = vsel %vm1283_vm2, %v2750_v9, -inf }
0x14f9   : > { %2752 = vmax.xlane.f32.xlu1 %v2751_v12  ;;  %v7427_v13 = vpop.f32.mrf.mxu0 }
0x1582   : > { %v2753_v14 = vpop.xlane.xlu1 %2752 }
0x1583   : > { %v2754_v15 = vsub.f32 %v2750_v9, %v2753_v14  ;;  %v6873_v9 = vld [vmem:[%s9496_s6 + $0x1] ss:$0 sm:$0xff]  ;;  %s1197_s6 = scalar_lea.vmem %s9528_s30, %s8470_s23  ;;  %s9530_s23 = sld [smem:[#allocation23_spill]] }
0x1584   : > { %s9531_s30 = sld [smem:[#allocation24_spill]] }
0x1585   : > { %v2755_v16 = vmul.f32 1.442695, %v2754_v15 }
0x1587   : > { %8009 = vpow2.f32 %v2755_v16 }
0x1594   : > { %v8010_v17 = vpop.eup %8009 }
0x1595   : > { %v2757_v18 = vsel %vm1283_vm2, %v8010_v17, 0.0 }
0x1596   : > { %2758 = vadd.xlane.f32.xlu0 %v2757_v18  ;;  %v6896_v18 = vld [vmem:[%s9527_s29] ss:$0 sm:$0xff] }
0x15ac   : > { %2763 = vrot.lane.b32.xlu0 %v8634_v31, %s9524_s26 }
0x15ae   : > { %v2692_v19 = vpop.f32.mrf.mxu1 }
0x15af   : > { %v2698_v20 = vadd.f32 %v2692_v19, %v8694_v38 }
0x15b0   : > { %v7420_v22 = vpop.f32.mrf.mxu1 }
0x15b2   : > { %v2695_v24 = vpop.f32.mrf.mxu1 }
0x15b4   : > { %v7421_v28 = vpop.f32.mrf.mxu1 }
0x161f   : > { %v2759_v29 = vpop.xlane.xlu0 %2758 }
0x1620   : > { %8011 = vrcp.f32 %v2759_v29 }
0x1623   : > { %v2764_v30 = vpop.permute.xlu0 %2763 }
0x1624   : > { %v2769_v32 = vsel %vm1355_vm4, %v2764_v30, 0 }
0x1625   : > { %7429 = vmatpush3.bf16.msra.mxu1 %v2769_v32 }
0x1626   : > { %7440 = vmatprep.subr.bf16.mxu1 %v8193_v1 }
0x162d   : > { %v8012_v31 = vpop.eup %8011 }
0x162e   : > { %v2761_v33 = vmul.f32 %v8012_v31, %v8010_v17 }
0x1630   : > { %v2762_v34 = vpack.c.bf16 %v2761_v33, %v2761_v33 }
0x1632   : > { %7431 = vmatmul.mubr.msk.bf16.vlgmr.msra.gmra.mxu1 %vm1283_vm2, %v2762_v34 }
0x1633   : > { %7444 = vmatprep.mubr.msk.bf16.mxu1 %vm8194_vm0, %v8193_v1  ;;  %7441 = vmatpush3.bf16.msra.mxu1 %v7945_v53 }
0x1634   : > { %7442 = vmatprep.subr.bf16.mxu1 %v8193_v1 }
0x1637   : > { %7443 = vmatpush3.bf16.msra.mxu1 %v7946_v54 }
0x1638   : > { %7460 = vmatprep.subr.bf16.mxu1 %v8193_v1 }
0x16f2   : > { %v2805_v35 = vpop.f32.mrf.mxu1 }
0x16f3   : > { %v2811_v36 = vpack.c.bf16 %v2805_v35, %v2805_v35 }
0x16f4   : > { %v7432_v37 = vpop.f32.mrf.mxu1 }
0x16f5   : > { %7437 = vmatmul.mubr.msk.bf16.vlgmr.msra.gmra.mxu0 %vm1283_vm2, %v2811_v36  ;;  %v1202_v37 = vld [vmem:[%s1197_s6] sm:$0xff]  ;;  %s9529_s6 = smov 56  }
0x16f6   : > { %v2808_v38 = vpop.f32.mrf.mxu1  ;;  %7456 = vmatprep.mubr.msk.bf16.mxu0 %vm8194_vm0, %v8193_v1  ;;  %vm1203_vm6 = vcmp.gt.f32.partialorder %v1202_v37, 0.0 }
0x16f7   : > { %v8805_v38 = vsel %vm1203_vm6, 0.0, %v8198_v21 }
0x16f8   : > { %v7433_v39 = vpop.f32.mrf.mxu1 }
0x17b5   : > { %v2852_v3 = vpop.f32.mrf.mxu0 }
0x17b6   : > { %v2858_v41 = vadd.f32 %v2852_v3, %v2698_v20 }
0x17b7   : > { %v7438_v42 = vpop.f32.mrf.mxu0 }
0x17b8   : > { %v2865_v43 = vadd.f32 %v6863_v40, %v2858_v41 }
0x17b9   : > { %v2855_v44 = vpop.f32.mrf.mxu0 }
0x17ba   : > { %v2866_v45 = vadd.f32 %v2865_v43, %v8626_v25  ;;  %v7949_v25 = vld [vmem:[%s9494_s12 + $0x38] sm:$0xff]   ;;  %s9533_s12 = sld [smem:[#allocation25_spill]] }
0x17bb   : > { %v7439_v46 = vpop.f32.mrf.mxu0  ;;  %7449 = vmatpush3.bf16.msra.mxu0 %v7949_v25 }
0x17bc   : > { %v2871_v47 = vsel %vm1230_vm1, %v2866_v45, 0.0  ;;  %7450 = vmatprep.subr.bf16.mxu0 %v8193_v1 }
0x17bd   : > { %2872 = vadd.xlane.f32.xlu1 %v2871_v47 }
0x17bf   : > { %7451 = vmatpush3.bf16.msra.mxu0 %v7950_v55 }
0x17c0   : > { %7452 = vmatprep.subr.bf16.mxu0 %v8193_v1 }
0x17c3   : > { %7453 = vmatpush3.bf16.msra.mxu0 %v7951_v8 }
0x17c4   : > { %7454 = vmatprep.subr.bf16.mxu0 %v8193_v1 }
0x17c7   : > { %7455 = vmatpush3.bf16.msra.mxu0 %v7952_v10 }
0x17c8   : > { %7474 = vmatprep.subr.bf16.mxu0 %v8193_v1 }
0x1846   : > { %v2873_v48 = vpop.xlane.xlu1 %2872 }
0x1847   : > { %v2874_v49 = vmul.f32 0.03125, %v2873_v48 }
0x1849   : > { %v2875_v50 = vsub.f32 %v2866_v45, %v2874_v49 }
0x184b   : > { %v2876_v51 = vmul.f32 %v2875_v50, %v2875_v50 }
0x184d   : > { %v2877_v52 = vsel %vm1230_vm1, %v2876_v51, 0.0 }
0x184e   : > { %2878 = vadd.xlane.f32.xlu1 %v2877_v52 }
0x18d7   : > { %v2879_v56 = vpop.xlane.xlu1 %2878 }
0x18d8   : > { %v2880_v57 = vmul.f32 0.03125, %v2879_v56 }
0x18da   : > { %v2881_v58 = vadd.f32 1e-05, %v2880_v57 }
0x18dc   : > { %8013 = vrsqrt.f32 %v2881_v58 }
0x18e9   : > { %v8014_v59 = vpop.eup %8013 }
0x18ea   : > { %v2883_v61 = vmul.f32 %v8014_v59, %v2875_v50 }
0x18ec   : > { %v2890_v63 = vmul.f32 %v6866_v60, %v2883_v61 }
0x18ee   : > { %v8752_v0 = vadd.f32 %v6867_v62, %v2890_v63 }
0x18f0   : > { %v2903_v4 = vpack.c.bf16 %v8752_v0, %v8752_v0 }
0x18f2   : > { %7445 = vmatmul.mubr.msk.bf16.vlgmr.msra.gmra.mxu1 %vm1230_vm1, %v2903_v4 }
0x18f3   : > { %7461 = vmatpush3.bf16.msra.mxu1 %v7947_v2  ;;  %7464 = vmatprep.mubr.msk.bf16.mxu1 %vm8194_vm0, %v8193_v1 }
0x18f4   : > { %7462 = vmatprep.subr.bf16.mxu1 %v8193_v1 }
0x18f7   : > { %7463 = vmatpush3.bf16.msra.mxu1 %v7948_v5 }
0x18f8   : > { %7468 = vmatprep.subr.bf16.mxu1 %v8193_v1 }
0x18fa   : > { %7465 = vmatmul.mubr.msk.bf16.vlgmr.msra.gmra.mxu1 %vm1230_vm1, %v3090_v7 }
0x18fb   : > { %7470 = vmatprep.mubr.msk.bf16.mxu1 %vm8194_vm0, %v8193_v1 }
0x19b2   : > { %v2961_v11 = vpop.f32.mrf.mxu1 }
0x19b3   : > { %v2962_v12 = vadd.f32 %v6873_v9, %v2961_v11 }
0x19b4   : > { %v7446_v13 = vpop.f32.mrf.mxu1 }
0x19b5   : > { %v2967_v14 = vmax.f32 %v2962_v12, 0.0  ;;  %v3153_v12 = vld [vmem:[%s9530_s23] sm:$0xf] }
0x19b6   : > { %v2964_v15 = vpop.f32.mrf.mxu1  ;;  %v3434_v13 = vsel %vm1355_vm4, %v3153_v12, 0 }
0x19b7   : > { %v2977_v16 = vpack.c.bf16 %v2967_v14, %v2967_v14  ;;  %v3154_v14 = vld [vmem:[%s9530_s23 + $0x4] sm:$0xf] }
0x19b8   : > { %v7447_v17 = vpop.f32.mrf.mxu1  ;;  %v3388_v15 = vsel %vm1355_vm4, %v3154_v14, 0 }
0x19b9   : > { %7457 = vmatmul.mubr.msk.bf16.vlgmr.msra.gmra.mxu0 %vm2071_vm5, %v2977_v16 }
0x19ba   : > { %v3147_v19 = vpop.f32.mrf.mxu1  ;;  %7476 = vmatprep.mubr.msk.bf16.mxu0 %vm8194_vm0, %v8193_v1 }
0x19bb   : > { %v3148_v20 = vadd.f32 %v6896_v18, %v3147_v19 }
0x19bc   : > { %v7466_v22 = vpop.f32.mrf.mxu1 }
0x19bd   : > { %v8781_v24 = vpack.c.bf16 %v3148_v20, %v3148_v20 }
0x19be   : > { %v3150_v26 = vpop.f32.mrf.mxu1 }
0x19bf   : > { %3273 = vrot.lane.b32.xlu0 %v8781_v24, %s9515_s5  ;;  %3160 = vrot.lane.b32.xlu1 %v8781_v24, %s9516_s11 }
0x19c0   : > { %v7467_v27 = vpop.f32.mrf.mxu1 }
0x19c3   : > { %3271 = vrot.lane.b32.xlu0 %v8781_v24, %s9517_s28 }
0x1a31   : > { %v3161_v28 = vpop.permute.xlu1 %3160  ;;  %v3274_v30 = vpop.permute.xlu0 %3273 }
0x1a32   : > { %v3166_v29 = vsel %vm1283_vm2, %v3161_v28, 0  ;;  %v3279_v32 = vsel %vm1283_vm2, %v3274_v30, 0 }
0x1a33   : > { %7469 = vmatpush3.bf16.xpose.msra.mxu1 %v3166_v29 }
0x1a34   : > { %7480 = vmatprep.subr.bf16.mxu1 %v8193_v1 }
0x1a35   : > { %v3272_v31 = vpop.permute.xlu0 %3271 }
0x1a3a   : > { %7471 = vmatmul.mubr.msk.bf16.vlgmr.msra.gmra.mxu1 %vm1283_vm2, %v8781_v24 }
0x1a3b   : > { %7481 = vmatpush3.bf16.xpose.msra.mxu1 %v3279_v32  ;;  %7482 = vmatprep.mubr.msk.bf16.mxu1 %vm8194_vm0, %v8193_v1 }
0x1a3c   : > { %7492 = vmatprep.subr.bf16.mxu1 %v8193_v1 }
0x1a42   : > { %7483 = vmatmul.mubr.msk.bf16.vlgmr.msra.gmra.mxu1 %vm1283_vm2, %v3272_v31 }
0x1a43   : > { %7494 = vmatprep.mubr.msk.bf16.mxu1 %vm8194_vm0, %v8193_v1  ;;  %7493 = vmatpush3.bf16.msra.mxu1 %v3388_v15 }
0x1a44   : > { %7504 = vmatprep.subr.bf16.mxu1 %v8193_v1 }
0x1a79   : > { %v8800_v33 = vpop.f32.mrf.mxu0 }
0x1a7b   : > { %v7458_v34 = vpop.f32.mrf.mxu0 }
0x1a7d   : > { %v3050_v35 = vpop.f32.mrf.mxu0 }
0x1a7f   : > { %v7459_v36 = vpop.f32.mrf.mxu0 }
0x1afa   : > { %v3202_v39 = vpop.f32.mrf.mxu1 }
0x1afb   : > { %v3208_v40 = vmul.f32 0.35355338, %v3202_v39 }
0x1afc   : > { %v7472_v3 = vpop.f32.mrf.mxu1 }
0x1afd   : > { %v3209_v41 = vadd.f32 %v3208_v40, %v8805_v38 }
0x1afe   : > { %v3205_v42 = vpop.f32.mrf.mxu1 }
0x1aff   : > { %v3210_v43 = vsel %vm1283_vm2, %v3209_v41, -inf }
0x1b00   : > { %3211 = vmax.xlane.f32.xlu1 %v3210_v43  ;;  %v7473_v44 = vpop.f32.mrf.mxu1 }
0x1b02   : > { %v3315_v45 = vpop.f32.mrf.mxu1 }
0x1b03   : > { %v3321_v46 = vmul.f32 0.35355338, %v3315_v45 }
0x1b04   : > { %v7484_v47 = vpop.f32.mrf.mxu1 }
0x1b05   : > { %v3322_v48 = vadd.f32 %v3321_v46, %v8805_v38 }
0x1b06   : > { %v3318_v49 = vpop.f32.mrf.mxu1 }
0x1b07   : > { %v3323_v50 = vsel %vm1283_vm2, %v3322_v48, -inf }
0x1b08   : > { %3324 = vmax.xlane.f32.xlu0 %v3323_v50  ;;  %v7485_v21 = vpop.f32.mrf.mxu1 }
0x1b89   : > { %v3212_v51 = vpop.xlane.xlu1 %3211 }
0x1b8a   : > { %v3213_v52 = vsub.f32 %v3209_v41, %v3212_v51 }
0x1b8c   : > { %v3214_v53 = vmul.f32 1.442695, %v3213_v52 }
0x1b8e   : > { %8015 = vpow2.f32 %v3214_v53 }
0x1b91   : > { %v3325_v54 = vpop.xlane.xlu0 %3324 }
0x1b92   : > { %v3326_v25 = vsub.f32 %v3322_v48, %v3325_v54 }
0x1b94   : > { %v3327_v55 = vmul.f32 1.442695, %v3326_v25 }
0x1b96   : > { %8017 = vpow2.f32 %v3327_v55 }
0x1b9b   : > { %v8016_v56 = vpop.eup %8015 }
0x1b9c   : > { %v3216_v57 = vsel %vm1283_vm2, %v8016_v56, 0.0 }
0x1b9d   : > { %3217 = vadd.xlane.f32.xlu0 %v3216_v57 }
0x1ba3   : > { %v8018_v58 = vpop.eup %8017 }
0x1ba4   : > { %v3329_v59 = vsel %vm1283_vm2, %v8018_v58, 0.0 }
0x1ba5   : > { %3330 = vadd.xlane.f32.xlu1 %v3329_v59 }
0x1bb3   : > { %3222 = vrot.lane.b32.xlu0 %v8781_v24, %s9519_s1 }
0x1bb6   : > { %3335 = vrot.lane.b32.xlu1 %v8781_v24, %s9529_s6 }
0x1bb7   : > { %3476 = vrot.lane.b32.xlu0 %v8781_v24, %s9518_s13 }
0x1bba   : > { %3478 = vrot.lane.b32.xlu1 %v8781_v24, %s9520_s21 }
0x1c26   : > { %v3218_v60 = vpop.xlane.xlu0 %3217 }
0x1c27   : > { %8019 = vrcp.f32 %v3218_v60 }
0x1c2a   : > { %v3223_v61 = vpop.permute.xlu0 %3222 }
0x1c2b   : > { %v3228_v62 = vsel %vm1355_vm4, %v3223_v61, 0 }
0x1c2c   : > { %7475 = vmatpush3.bf16.msra.mxu0 %v3228_v62  ;;  %v3155_v62 = vld [vmem:[%s9530_s23 + $0x8] sm:$0xf] }
0x1c2d   : > { %7486 = vmatprep.subr.bf16.mxu0 %v8193_v1 }
0x1c2e   : > { %v3331_v63 = vpop.xlane.xlu1 %3330  ;;  %v3477_v31 = vpop.permute.xlu0 %3476 }
0x1c2f   : > { %8021 = vrcp.f32 %v3331_v63  ;;  %v3593_v63 = vsel %vm1355_vm4, %v3155_v62, 0 }
0x1c32   : > { %v3336_v5 = vpop.permute.xlu1 %3335 }
0x1c33   : > { %v3341_v8 = vsel %vm1355_vm4, %v3336_v5, 0 }
0x1c34   : > { %v8020_v2 = vpop.eup %8019 }
0x1c35   : > { %v3220_v4 = vmul.f32 %v8020_v2, %v8016_v56 }
0x1c36   : > { %v3479_v22 = vpop.permute.xlu1 %3478 }
0x1c37   : > { %v3221_v7 = vpack.c.bf16 %v3220_v4, %v3220_v4  ;;  %v3484_v29 = vsel %vm1283_vm2, %v3479_v22, 0  ;;  %v6886_v22 = vld [vmem:[%s9492_s20 + $0x1] ss:$0 sm:$0xff]  ;;  %s9535_s20 = sld [smem:[#allocation32_spill]] }
0x1c39   : > { %7477 = vmatmul.mubr.msk.bf16.vlgmr.msra.gmra.mxu0 %vm1283_vm2, %v3221_v7 }
0x1c3a   : > { %7487 = vmatpush3.bf16.msra.mxu0 %v3341_v8  ;;  %7488 = vmatprep.mubr.msk.bf16.mxu0 %vm8194_vm0, %v8193_v1 }
0x1c3b   : > { %7498 = vmatprep.subr.bf16.mxu0 %v8193_v1 }
0x1c3c   : > { %v8022_v10 = vpop.eup %8021 }
0x1c3d   : > { %v3333_v9 = vmul.f32 %v8022_v10, %v8018_v58 }
0x1c3f   : > { %v3334_v11 = vpack.c.bf16 %v3333_v9, %v3333_v9 }
0x1c41   : > { %7489 = vmatmul.mubr.msk.bf16.vlgmr.msra.gmra.mxu0 %vm1283_vm2, %v3334_v11 }
0x1c42   : > { %7500 = vmatprep.mubr.msk.bf16.mxu0 %vm8194_vm0, %v8193_v1  ;;  %7499 = vmatpush3.bf16.msra.mxu0 %v3434_v13 }
0x1c43   : > { %7510 = vmatprep.subr.bf16.mxu0 %v8193_v1 }
0x1cf9   : > { %v3264_v16 = vpop.f32.mrf.mxu0 }
0x1cfa   : > { %v3270_v17 = vpack.c.bf16 %v3264_v16, %v3264_v16 }
0x1cfb   : > { %v7478_v18 = vpop.f32.mrf.mxu0 }
0x1cfc   : > { %7501 = vmatmul.mubr.msk.bf16.vlgmr.msra.gmra.mxu0 %vm1283_vm2, %v3270_v17 }
0x1cfd   : > { %v3267_v19 = vpop.f32.mrf.mxu0  ;;  %7512 = vmatprep.mubr.msk.bf16.mxu0 %vm8194_vm0, %v8193_v1 }
0x1cff   : > { %v7479_v20 = vpop.f32.mrf.mxu0 }
0x1d01   : > { %v3377_v26 = vpop.f32.mrf.mxu0 }
0x1d02   : > { %v3383_v27 = vpack.c.bf16 %v3377_v26, %v3377_v26  ;;  %v3048_v26 = vadd.f32 %v6886_v22, %v8800_v33  ;;  %v6914_v22 = vld [vmem:[%s9535_s20] ss:$0 sm:$0xff] }
0x1d03   : > { %v7490_v28 = vpop.f32.mrf.mxu0 }
0x1d04   : > { %7495 = vmatmul.mubr.msk.bf16.vlgmr.msra.gmra.mxu1 %vm1283_vm2, %v3383_v27 }
0x1d05   : > { %7505 = vmatpush3.bf16.xpose.msra.mxu1 %v3484_v29  ;;  %v3380_v30 = vpop.f32.mrf.mxu0  ;;  %7506 = vmatprep.mubr.msk.bf16.mxu1 %vm8194_vm0, %v8193_v1  ;;  %v3053_v29 = vadd.f32 %v3048_v26, %v8752_v0 }
0x1d06   : > { %7516 = vmatprep.subr.bf16.mxu1 %v8193_v1 }
0x1d07   : > { %v7491_v32 = vpop.f32.mrf.mxu0 }
0x1d0c   : > { %7507 = vmatmul.mubr.msk.bf16.vlgmr.msra.gmra.mxu1 %vm1283_vm2, %v3477_v31 }
0x1d0d   : > { %7518 = vmatprep.mubr.msk.bf16.mxu1 %vm8194_vm0, %v8193_v1  ;;  %7517 = vmatpush3.bf16.msra.mxu1 %v3593_v63 }
0x1d0e   : > { %7528 = vmatprep.subr.bf16.mxu1 %v8193_v1 }
0x1dbc   : > { %v3470_v34 = vpop.f32.mrf.mxu0 }
0x1dbe   : > { %v7502_v35 = vpop.f32.mrf.mxu0 }
0x1dbf   : > { %v3156_v35 = vld [vmem:[%s9530_s23 + $0xc] sm:$0xf] }
0x1dc0   : > { %v3473_v36 = vpop.f32.mrf.mxu0 }
0x1dc1   : > { %v3753_v36 = vsel %vm1355_vm4, %v3156_v35, 0 }
0x1dc2   : > { %v7503_v37 = vpop.f32.mrf.mxu0 }
0x1dc4   : > { %v3424_v39 = vpop.f32.mrf.mxu1 }
0x1dc5   : > { %v8848_v40 = vadd.f32 %v3470_v34, %v3424_v39 }
0x1dc6   : > { %v7496_v3 = vpop.f32.mrf.mxu1 }
0x1dc8   : > { %v3427_v41 = vpop.f32.mrf.mxu1 }
0x1dca   : > { %v7497_v42 = vpop.f32.mrf.mxu1 }
0x1dcc   : > { %v3520_v43 = vpop.f32.mrf.mxu1 }
0x1dcd   : > { %v3526_v44 = vmul.f32 0.35355338, %v3520_v43 }
0x1dce   : > { %v7508_v45 = vpop.f32.mrf.mxu1 }
0x1dcf   : > { %v3527_v46 = vadd.f32 %v3526_v44, %v8805_v38 }
0x1dd0   : > { %v3523_v47 = vpop.f32.mrf.mxu1 }
0x1dd1   : > { %v3528_v48 = vsel %vm1283_vm2, %v3527_v46, -inf  ;;  %v6912_v47 = vld [vmem:[%s9531_s30] ss:$0 sm:$0xff] }
0x1dd2   : > { %3529 = vmax.xlane.f32.xlu1 %v3528_v48  ;;  %v7509_v49 = vpop.f32.mrf.mxu1 }
0x1de3   : > { %3638 = vrot.lane.b32.xlu1 %v8781_v24, %s9523_s18 }
0x1de7   : > { %3636 = vrot.lane.b32.xlu1 %v8781_v24, %s9522_s2 }
0x1e5b   : > { %v3530_v50 = vpop.xlane.xlu1 %3529 }
0x1e5c   : > { %v3531_v21 = vsub.f32 %v3527_v46, %v3530_v50 }
0x1e5e   : > { %v3532_v51 = vmul.f32 1.442695, %v3531_v21 }
0x1e5f   : > { %v3639_v58 = vpop.permute.xlu1 %3638 }
0x1e60   : > { %8023 = vpow2.f32 %v3532_v51  ;;  %v3644_v60 = vsel %vm1283_vm2, %v3639_v58, 0  ;;  %v7954_v58 = vld [vmem:[%s9532_s8] sm:$0xff]  }
0x1e63   : > { %v3637_v61 = vpop.permute.xlu1 %3636 }
0x1e6d   : > { %v8024_v52 = vpop.eup %8023 }
0x1e6e   : > { %v3534_v53 = vsel %vm1283_vm2, %v8024_v52, 0.0 }
0x1e6f   : > { %3535 = vadd.xlane.f32.xlu0 %v3534_v53 }
0x1e85   : > { %3540 = vrot.lane.b32.xlu0 %v8781_v24, %s9521_s25 }
0x1ef8   : > { %v3536_v54 = vpop.xlane.xlu0 %3535 }
0x1ef9   : > { %8025 = vrcp.f32 %v3536_v54 }
0x1efc   : > { %v3541_v25 = vpop.permute.xlu0 %3540 }
0x1efd   : > { %v3546_v55 = vsel %vm1355_vm4, %v3541_v25, 0 }
0x1efe   : > { %7511 = vmatpush3.bf16.msra.mxu0 %v3546_v55 }
0x1eff   : > { %7522 = vmatprep.subr.bf16.mxu0 %v8193_v1 }
0x1f06   : > { %v8026_v56 = vpop.eup %8025 }
0x1f07   : > { %v3538_v57 = vmul.f32 %v8026_v56, %v8024_v52 }
0x1f09   : > { %v3539_v59 = vpack.c.bf16 %v3538_v57, %v3538_v57  ;;  %v7953_v57 = vld [vmem:[%s9532_s8 + $0x8] sm:$0xff]  }
0x1f0b   : > { %7513 = vmatmul.mubr.msk.bf16.vlgmr.msra.gmra.mxu0 %vm1283_vm2, %v3539_v59 }
0x1f0c   : > { %7523 = vmatpush3.bf16.xpose.msra.mxu0 %v3644_v60  ;;  %7524 = vmatprep.mubr.msk.bf16.mxu0 %vm8194_vm0, %v8193_v1 }
0x1f0d   : > { %7534 = vmatprep.subr.bf16.mxu0 %v8193_v1 }
0x1f13   : > { %7525 = vmatmul.mubr.msk.bf16.vlgmr.msra.gmra.mxu0 %vm1283_vm2, %v3637_v61 }
0x1f14   : > { %7536 = vmatprep.mubr.msk.bf16.mxu0 %vm8194_vm0, %v8193_v1  ;;  %7535 = vmatpush3.bf16.msra.mxu0 %v3753_v36 }
0x1f15   : > { %7548 = vmatprep.subr.bf16.mxu0 %v8193_v1 }
0x1fcb   : > { %v3582_v2 = vpop.f32.mrf.mxu0 }
0x1fcc   : > { %v3588_v4 = vpack.c.bf16 %v3582_v2, %v3582_v2 }
0x1fcd   : > { %v7514_v5 = vpop.f32.mrf.mxu0 }
0x1fce   : > { %7519 = vmatmul.mubr.msk.bf16.vlgmr.msra.gmra.mxu1 %vm1283_vm2, %v3588_v4 }
0x1fcf   : > { %v3585_v7 = vpop.f32.mrf.mxu0  ;;  %7530 = vmatprep.mubr.msk.bf16.mxu1 %vm8194_vm0, %v8193_v1 }
0x1fd0   : > { %v6894_v7 = vld [vmem:[%s9491_s19 + $0x1] ss:$0 sm:$0xff]  ;;  %s9536_s19 = sld [smem:[#allocation28_spill]] }
0x1fd1   : > { %v7515_v8 = vpop.f32.mrf.mxu0 }
0x1fd3   : > { %v3680_v10 = vpop.f32.mrf.mxu0 }
0x1fd4   : > { %v3686_v9 = vmul.f32 0.35355338, %v3680_v10  ;;  %v6895_v10 = vld [vmem:[%s9490_s24 + $0x1] ss:$0 sm:$0xff]  ;;  %s9537_s24 = sld [smem:[#allocation26_spill]] }
0x1fd5   : > { %v7526_v11 = vpop.f32.mrf.mxu0 }
0x1fd6   : > { %v3687_v12 = vadd.f32 %v3686_v9, %v8805_v38 }
0x1fd7   : > { %v3683_v13 = vpop.f32.mrf.mxu0 }
0x1fd8   : > { %v3688_v14 = vsel %vm1283_vm2, %v3687_v12, -inf  ;;  %v7955_v13 = vld [vmem:[%s9533_s12 + $0x8] sm:$0xff]  }
0x1fd9   : > { %3689 = vmax.xlane.f32.xlu0 %v3688_v14  ;;  %v7527_v15 = vpop.f32.mrf.mxu0  ;;  %v7956_v14 = vld [vmem:[%s9533_s12] sm:$0xff]  }
0x1fef   : > { %3700 = vrot.lane.b32.xlu0 %v8781_v24, %s9524_s26  ;;  %v3058_v24 = vsel %vm1230_vm1, %v3053_v29, 0.0 }
0x2062   : > { %v3690_v16 = vpop.xlane.xlu0 %3689 }
0x2063   : > { %v3691_v17 = vsub.f32 %v3687_v12, %v3690_v16 }
0x2065   : > { %v3692_v18 = vmul.f32 1.442695, %v3691_v17 }
0x2066   : > { %v3701_v19 = vpop.permute.xlu0 %3700 }
0x2067   : > { %8027 = vpow2.f32 %v3692_v18  ;;  %v3706_v20 = vsel %vm1355_vm4, %v3701_v19, 0  ;;  %v6913_v19 = vld [vmem:[%s9534_s14] ss:$0 sm:$0xff] }
0x2068   : > { %7529 = vmatpush3.bf16.msra.mxu1 %v3706_v20 }
0x2069   : > { %7540 = vmatprep.subr.bf16.mxu1 %v8193_v1 }
0x2074   : > { %v8028_v27 = vpop.eup %8027 }
0x2075   : > { %v3694_v28 = vsel %vm1283_vm2, %v8028_v27, 0.0 }
0x2076   : > { %3695 = vadd.xlane.f32.xlu1 %v3694_v28 }
0x207a   : > { %3059 = vadd.xlane.f32.xlu1 %v3058_v24 }
0x208e   : > { %v3629_v30 = vpop.f32.mrf.mxu1 }
0x208f   : > { %v3635_v32 = vadd.f32 %v3629_v30, %v8848_v40 }
0x2090   : > { %v7520_v31 = vpop.f32.mrf.mxu1 }
0x2092   : > { %v3632_v34 = vpop.f32.mrf.mxu1 }
0x2094   : > { %v7521_v37 = vpop.f32.mrf.mxu1 }
0x2095   : > { %v6915_v37 = vld [vmem:[%s9537_s24] ss:$0 sm:$0xff] }
0x20ff   : > { %v3696_v33 = vpop.xlane.xlu1 %3695 }
0x2100   : > { %8029 = vrcp.f32 %v3696_v33 }
0x2103   : > { %v3060_v45 = vpop.xlane.xlu1 %3059 }
0x2104   : > { %v3061_v46 = vmul.f32 0.03125, %v3060_v45 }
0x2106   : > { %v3062_v21 = vsub.f32 %v3053_v29, %v3061_v46  ;;  %v6919_v29 = vld [vmem:[%s9536_s19] ss:$0 sm:$0xff] }
0x2108   : > { %v3063_v55 = vmul.f32 %v3062_v21, %v3062_v21 }
0x210a   : > { %v3064_v56 = vsel %vm1230_vm1, %v3063_v55, 0.0 }
0x210d   : > { %v8030_v0 = vpop.eup %8029 }
0x210e   : > { %v3698_v39 = vmul.f32 %v8030_v0, %v8028_v27 }
0x2110   : > { %v3699_v3 = vpack.c.bf16 %v3698_v39, %v3698_v39 }
0x2112   : > { %7531 = vmatmul.mubr.msk.bf16.vlgmr.msra.gmra.mxu1 %vm1283_vm2, %v3699_v3 }
0x2113   : > { %7544 = vmatprep.mubr.msk.bf16.mxu1 %vm8194_vm0, %v8193_v1  ;;  %7541 = vmatpush3.bf16.msra.mxu1 %v7955_v13 }
0x2114   : > { %7542 = vmatprep.subr.bf16.mxu1 %v8193_v1 }
0x2117   : > { %7543 = vmatpush3.bf16.msra.mxu1 %v7956_v14 }
0x2118   : > { %7556 = vmatprep.subr.bf16.mxu1 %v8193_v1 }
0x21d2   : > { %v3742_v40 = vpop.f32.mrf.mxu1 }
0x21d3   : > { %v3748_v41 = vpack.c.bf16 %v3742_v40, %v3742_v40 }
0x21d4   : > { %v7532_v42 = vpop.f32.mrf.mxu1 }
0x21d5   : > { %7537 = vmatmul.mubr.msk.bf16.vlgmr.msra.gmra.mxu0 %vm1283_vm2, %v3748_v41 }
0x21d6   : > { %v3745_v43 = vpop.f32.mrf.mxu1  ;;  %7552 = vmatprep.mubr.msk.bf16.mxu0 %vm8194_vm0, %v8193_v1  ;;  %7549 = vmatpush3.bf16.msra.mxu0 %v7953_v57 }
0x21d7   : > { %7550 = vmatprep.subr.bf16.mxu0 %v8193_v1 }
0x21d8   : > { %v7533_v44 = vpop.f32.mrf.mxu1 }
0x21da   : > { %7551 = vmatpush3.bf16.msra.mxu0 %v7954_v58 }
0x21db   : > { %7562 = vmatprep.subr.bf16.mxu0 %v8193_v1 }
0x2295   : > { %v3789_v48 = vpop.f32.mrf.mxu0 }
0x2296   : > { %v3795_v49 = vadd.f32 %v3789_v48, %v3635_v32 }
0x2297   : > { %v7538_v50 = vpop.f32.mrf.mxu0 }
0x2298   : > { %v3802_v51 = vadd.f32 %v6912_v47, %v3795_v49 }
0x2299   : > { %v3792_v52 = vpop.f32.mrf.mxu0 }
0x229a   : > { %v3803_v53 = vadd.f32 %v3802_v51, %v8763_v6 }
0x229b   : > { %v7539_v54 = vpop.f32.mrf.mxu0 }
0x229c   : > { %v3806_v25 = vsel %vm1230_vm1, %v3803_v53, 0.0 }
0x229d   : > { %3807 = vadd.xlane.f32.xlu1 %v3806_v25 }
0x22a1   : > { %3065 = vadd.xlane.f32.xlu1 %v3064_v56 }
0x2326   : > { %v3808_v59 = vpop.xlane.xlu1 %3807 }
0x2327   : > { %v3809_v6 = vmul.f32 0.03125, %v3808_v59 }
0x2329   : > { %v3810_v60 = vsub.f32 %v3803_v53, %v3809_v6 }
0x232a   : > { %v3066_v61 = vpop.xlane.xlu1 %3065 }
0x232b   : > { %v3067_v62 = vmul.f32 0.03125, %v3066_v61  ;;  %v3811_v63 = vmul.f32 %v3810_v60, %v3810_v60 }
0x232d   : > { %v3068_v2 = vadd.f32 1e-05, %v3067_v62  ;;  %v3812_v4 = vsel %vm1230_vm1, %v3811_v63, 0.0 }
0x232e   : > { %3813 = vadd.xlane.f32.xlu1 %v3812_v4 }
0x232f   : > { %8031 = vrsqrt.f32 %v3068_v2 }
0x233c   : > { %v8032_v5 = vpop.eup %8031 }
0x233d   : > { %v3070_v8 = vmul.f32 %v8032_v5, %v3062_v21 }
0x233f   : > { %v3077_v9 = vmul.f32 %v6894_v7, %v3070_v8 }
0x2341   : > { %v3084_v11 = vadd.f32 %v6895_v10, %v3077_v9 }
0x2343   : > { %v8907_v12 = vpack.c.bf16 %v3084_v11, %v3084_v11 }
0x2345   : > { %7553 = vmatmul.mubr.msk.bf16.vlgmr.msra.gmra.mxu0 %vm1230_vm1, %v8907_v12 }
0x2346   : > { %7564 = vmatprep.mubr.msk.bf16.mxu0 %vm8194_vm0, %v8193_v1 }
0x23b7   : > { %v3814_v15 = vpop.xlane.xlu1 %3813 }
0x23b8   : > { %v3815_v16 = vmul.f32 0.03125, %v3814_v15 }
0x23ba   : > { %v3816_v17 = vadd.f32 1e-05, %v3815_v16 }
0x23bc   : > { %8033 = vrsqrt.f32 %v3816_v17 }
0x23c9   : > { %v8034_v18 = vpop.eup %8033 }
0x23ca   : > { %v3818_v20 = vmul.f32 %v8034_v18, %v3810_v60 }
0x23cc   : > { %v3825_v26 = vmul.f32 %v6913_v19, %v3818_v20  ;;  %v3967_v19 = vld [vmem:[%s9538_s10] sm:$0xf] }
0x23cd   : > { %v4248_v20 = vsel %vm1355_vm4, %v3967_v19, 0 }
0x23ce   : > { %v8919_v27 = vadd.f32 %v6914_v22, %v3825_v26  ;;  %v3968_v22 = vld [vmem:[%s9538_s10 + $0x4] sm:$0xf] }
0x23cf   : > { %v4202_v26 = vsel %vm1355_vm4, %v3968_v22, 0 }
0x23d0   : > { %v3837_v28 = vpack.c.bf16 %v8919_v27, %v8919_v27 }
0x23d2   : > { %7545 = vmatmul.mubr.msk.bf16.vlgmr.msra.gmra.mxu1 %vm1230_vm1, %v3837_v28 }
0x23d3   : > { %7558 = vmatprep.mubr.msk.bf16.mxu1 %vm8194_vm0, %v8193_v1 }
0x2405   : > { %v3961_v24 = vpop.f32.mrf.mxu0 }
0x2406   : > { %v3962_v30 = vadd.f32 %v6919_v29, %v3961_v24 }
0x2407   : > { %v7554_v32 = vpop.f32.mrf.mxu0 }
0x2408   : > { %v8927_v31 = vpack.c.bf16 %v3962_v30, %v3962_v30 }
0x2409   : > { %v3964_v34 = vpop.f32.mrf.mxu0 }
0x240a   : > { %4087 = vrot.lane.b32.xlu1 %v8927_v31, %s9517_s28  ;;  %v3978_v35 = vsel %vm1283_vm2, %v8927_v31, 0 }
0x240b   : > { %v7555_v36 = vpop.f32.mrf.mxu0  ;;  %7557 = vmatpush3.bf16.xpose.msra.mxu1 %v3978_v35 }
0x240c   : > { %7568 = vmatprep.subr.bf16.mxu1 %v8193_v1 }
0x247c   : > { %v4088_v39 = vpop.permute.xlu1 %4087 }
0x247d   : > { %v4093_v42 = vsel %vm1283_vm2, %v4088_v39, 0 }
0x2492   : > { %v3894_v33 = vpop.f32.mrf.mxu1 }
0x2493   : > { %v3895_v0 = vadd.f32 %v6915_v37, %v3894_v33 }
0x2494   : > { %v7546_v3 = vpop.f32.mrf.mxu1 }
0x2495   : > { %v8935_v40 = vpack.c.bf16 %v3895_v0, %v3895_v0 }
0x2496   : > { %v3897_v41 = vpop.f32.mrf.mxu1 }
0x2497   : > { %4085 = vrot.lane.b32.xlu0 %v8935_v40, %s9517_s28  ;;  %7559 = vmatmul.mubr.msk.bf16.vlgmr.msra.gmra.mxu1 %vm1283_vm2, %v8935_v40 }
0x2498   : > { %7569 = vmatpush3.bf16.xpose.msra.mxu1 %v4093_v42  ;;  %v7547_v43 = vpop.f32.mrf.mxu1  ;;  %7570 = vmatprep.mubr.msk.bf16.mxu1 %vm8194_vm0, %v8193_v1 }
0x2499   : > { %7580 = vmatprep.subr.bf16.mxu1 %v8193_v1 }
0x2509   : > { %v4086_v44 = vpop.permute.xlu0 %4085 }
0x250a   : > { %7571 = vmatmul.mubr.msk.bf16.vlgmr.msra.gmra.mxu1 %vm1283_vm2, %v4086_v44 }
0x250b   : > { %7582 = vmatprep.mubr.msk.bf16.mxu1 %vm8194_vm0, %v8193_v1  ;;  %7581 = vmatpush3.bf16.msra.mxu1 %v4202_v26 }
0x250c   : > { %7592 = vmatprep.subr.bf16.mxu1 %v8193_v1 }
0x2557   : > { %v4014_v45 = vpop.f32.mrf.mxu1 }
0x2558   : > { %v4020_v46 = vmul.f32 0.35355338, %v4014_v45 }
0x2559   : > { %v7560_v47 = vpop.f32.mrf.mxu1 }
0x255a   : > { %v4021_v48 = vadd.f32 %v4020_v46, %v8505_v23 }
0x255b   : > { %v4017_v49 = vpop.f32.mrf.mxu1 }
0x255c   : > { %v4022_v50 = vsel %vm1283_vm2, %v4021_v48, -inf }
0x255d   : > { %4023 = vmax.xlane.f32.xlu0 %v4022_v50  ;;  %v7561_v21 = vpop.f32.mrf.mxu1 }
0x25ca   : > { %v4129_v51 = vpop.f32.mrf.mxu1 }
0x25cb   : > { %v4135_v52 = vmul.f32 0.35355338, %v4129_v51 }
0x25cc   : > { %v7572_v53 = vpop.f32.mrf.mxu1 }
0x25cd   : > { %v4136_v54 = vadd.f32 %v4135_v52, %v8505_v23 }
0x25ce   : > { %v4132_v25 = vpop.f32.mrf.mxu1 }
0x25cf   : > { %v4137_v55 = vsel %vm1283_vm2, %v4136_v54, -inf }
0x25d0   : > { %4138 = vmax.xlane.f32.xlu1 %v4137_v55  ;;  %v7573_v56 = vpop.f32.mrf.mxu1 }
0x25e1   : > { %4149 = vrot.lane.b32.xlu1 %v8927_v31, %s9515_s5 }
0x25e6   : > { %v4024_v57 = vpop.xlane.xlu0 %4023 }
0x25e7   : > { %v4025_v58 = vsub.f32 %v4021_v48, %v4024_v57 }
0x25e9   : > { %v4026_v59 = vmul.f32 1.442695, %v4025_v58 }
0x25eb   : > { %8035 = vpow2.f32 %v4026_v59 }
0x25f8   : > { %v8036_v6 = vpop.eup %8035 }
0x25f9   : > { %v4028_v60 = vsel %vm1283_vm2, %v8036_v6, 0.0 }
0x25fa   : > { %4029 = vadd.xlane.f32.xlu0 %v4028_v60 }
0x2659   : > { %v4139_v61 = vpop.xlane.xlu1 %4138 }
0x265a   : > { %v4140_v62 = vsub.f32 %v4136_v54, %v4139_v61 }
0x265c   : > { %v4141_v63 = vmul.f32 1.442695, %v4140_v62 }
0x265d   : > { %v4150_v13 = vpop.permute.xlu1 %4149 }
0x265e   : > { %8037 = vpow2.f32 %v4141_v63  ;;  %v4155_v15 = vsel %vm1355_vm4, %v4150_v13, 0 }
0x266b   : > { %v8038_v2 = vpop.eup %8037 }
0x266c   : > { %v4143_v4 = vsel %vm1283_vm2, %v8038_v2, 0.0 }
0x266d   : > { %4144 = vadd.xlane.f32.xlu0 %v4143_v4 }
0x2683   : > { %4035 = vrot.lane.b32.xlu0 %v8927_v31, %s9516_s11  ;;  %v4030_v5 = vpop.xlane.xlu0 %4029 }
0x2684   : > { %8039 = vrcp.f32 %v4030_v5 }
0x2687   : > { %4292 = vrot.lane.b32.xlu0 %v8927_v31, %s9518_s13 }
0x268b   : > { %4290 = vrot.lane.b32.xlu0 %v8935_v40, %s9518_s13 }
0x2691   : > { %v8040_v7 = vpop.eup %8039 }
0x2692   : > { %v4032_v10 = vmul.f32 %v8040_v7, %v8036_v6  ;;  %v3969_v7 = vld [vmem:[%s9538_s10 + $0x8] sm:$0xf] }
0x2694   : > { %v4033_v14 = vpack.c.bf16 %v4032_v10, %v4032_v10 }
0x26f6   : > { %v4145_v8 = vpop.xlane.xlu0 %4144 }
0x26f7   : > { %8041 = vrcp.f32 %v4145_v8  ;;  %v4407_v8 = vsel %vm1355_vm4, %v3969_v7, 0 }
0x26fa   : > { %v4036_v9 = vpop.permute.xlu0 %4035 }
0x26fb   : > { %v4041_v11 = vsel %vm1355_vm4, %v4036_v9, 0 }
0x26fc   : > { %7563 = vmatpush3.bf16.msra.mxu0 %v4041_v11 }
0x26fd   : > { %7574 = vmatprep.subr.bf16.mxu0 %v8193_v1 }
0x26fe   : > { %v4293_v34 = vpop.permute.xlu0 %4292 }
0x26ff   : > { %7565 = vmatmul.mubr.msk.bf16.vlgmr.msra.gmra.mxu0 %vm1283_vm2, %v4033_v14  ;;  %v4298_v33 = vsel %vm1283_vm2, %v4293_v34, 0 }
0x2700   : > { %7575 = vmatpush3.bf16.msra.mxu0 %v4155_v15  ;;  %7576 = vmatprep.mubr.msk.bf16.mxu0 %vm8194_vm0, %v8193_v1 }
0x2701   : > { %7586 = vmatprep.subr.bf16.mxu0 %v8193_v1 }
0x2702   : > { %v4291_v3 = vpop.permute.xlu0 %4290 }
0x2704   : > { %v8042_v16 = vpop.eup %8041 }
0x2705   : > { %v4147_v17 = vmul.f32 %v8042_v16, %v8038_v2 }
0x2707   : > { %v4148_v18 = vpack.c.bf16 %v4147_v17, %v4147_v17 }
0x2709   : > { %7577 = vmatmul.mubr.msk.bf16.vlgmr.msra.gmra.mxu0 %vm1283_vm2, %v4148_v18 }
0x270a   : > { %7588 = vmatprep.mubr.msk.bf16.mxu0 %vm8194_vm0, %v8193_v1  ;;  %7587 = vmatpush3.bf16.msra.mxu0 %v4248_v20 }
0x270b   : > { %7598 = vmatprep.subr.bf16.mxu0 %v8193_v1 }
0x27bf   : > { %v4077_v28 = vpop.f32.mrf.mxu0 }
0x27c0   : > { %v4083_v29 = vpack.c.bf16 %v4077_v28, %v4077_v28 }
0x27c1   : > { %v7566_v24 = vpop.f32.mrf.mxu0 }
0x27c2   : > { %7589 = vmatmul.mubr.msk.bf16.vlgmr.msra.gmra.mxu0 %vm1283_vm2, %v4083_v29 }
0x27c3   : > { %v4080_v30 = vpop.f32.mrf.mxu0  ;;  %7600 = vmatprep.mubr.msk.bf16.mxu0 %vm8194_vm0, %v8193_v1 }
0x27c5   : > { %v7567_v32 = vpop.f32.mrf.mxu0 }
0x27c9   : > { %v4191_v35 = vpop.f32.mrf.mxu0 }
0x27ca   : > { %v4197_v36 = vpack.c.bf16 %v4191_v35, %v4191_v35 }
0x27cb   : > { %v7578_v37 = vpop.f32.mrf.mxu0 }
0x27cc   : > { %7583 = vmatmul.mubr.msk.bf16.vlgmr.msra.gmra.mxu1 %vm1283_vm2, %v4197_v36 }
0x27cd   : > { %7593 = vmatpush3.bf16.xpose.msra.mxu1 %v4298_v33  ;;  %v4194_v0 = vpop.f32.mrf.mxu0  ;;  %7594 = vmatprep.mubr.msk.bf16.mxu1 %vm8194_vm0, %v8193_v1  ;;  %v3970_v33 = vld [vmem:[%s9538_s10 + $0xc] sm:$0xf] }
0x27ce   : > { %7604 = vmatprep.subr.bf16.mxu1 %v8193_v1  ;;  %v4567_v0 = vsel %vm1355_vm4, %v3970_v33, 0 }
0x27cf   : > { %v7579_v39 = vpop.f32.mrf.mxu0 }
0x27d4   : > { %7595 = vmatmul.mubr.msk.bf16.vlgmr.msra.gmra.mxu1 %vm1283_vm2, %v4291_v3 }
0x27d5   : > { %7606 = vmatprep.mubr.msk.bf16.mxu1 %vm8194_vm0, %v8193_v1  ;;  %7605 = vmatpush3.bf16.msra.mxu1 %v4407_v8  ;;  %v6937_v8 = vld [vmem:[%s9545_s16] ss:$0 sm:$0xff]  ;;  %s9547_s16 = sld [smem:[#allocation35_spill]] }
0x27d6   : > { %7616 = vmatprep.subr.bf16.mxu1 %v8193_v1 }
0x27db   : > { %s9548_s4 = smov %s9547_s16 }
0x2882   : > { %v4284_v41 = vpop.f32.mrf.mxu0 }
0x2884   : > { %v7590_v42 = vpop.f32.mrf.mxu0 }
0x2886   : > { %v4287_v43 = vpop.f32.mrf.mxu0 }
0x2888   : > { %v7591_v44 = vpop.f32.mrf.mxu0 }
0x288c   : > { %v4238_v45 = vpop.f32.mrf.mxu1 }
0x288d   : > { %v8989_v46 = vadd.f32 %v4284_v41, %v4238_v45 }
0x288e   : > { %v7584_v47 = vpop.f32.mrf.mxu1 }
0x2890   : > { %v4241_v48 = vpop.f32.mrf.mxu1 }
0x2892   : > { %v7585_v49 = vpop.f32.mrf.mxu1 }
0x2893   : > { %v6935_v49 = vld [vmem:[%s9539_s15] ss:$0 sm:$0xff]  ;;  %s9544_s15 = sld [smem:[#allocation33_spill]] }
0x2894   : > { %v4334_v50 = vpop.f32.mrf.mxu1 }
0x2895   : > { %v4340_v21 = vmul.f32 0.35355338, %v4334_v50 }
0x2896   : > { %v7596_v51 = vpop.f32.mrf.mxu1 }
0x2897   : > { %v4341_v52 = vadd.f32 %v4340_v21, %v8505_v23 }
0x2898   : > { %v4337_v53 = vpop.f32.mrf.mxu1 }
0x2899   : > { %v4342_v54 = vsel %vm1283_vm2, %v4341_v52, -inf }
0x289a   : > { %4343 = vmax.xlane.f32.xlu1 %v4342_v54  ;;  %v7597_v25 = vpop.f32.mrf.mxu1 }
0x28ab   : > { %4452 = vrot.lane.b32.xlu1 %v8927_v31, %s9522_s2 }
0x28af   : > { %4450 = vrot.lane.b32.xlu1 %v8935_v40, %s9522_s2 }
0x2923   : > { %v4344_v55 = vpop.xlane.xlu1 %4343 }
0x2924   : > { %v4345_v56 = vsub.f32 %v4341_v52, %v4344_v55 }
0x2926   : > { %v4346_v57 = vmul.f32 1.442695, %v4345_v56 }
0x2927   : > { %v4453_v63 = vpop.permute.xlu1 %4452 }
0x2928   : > { %8043 = vpow2.f32 %v4346_v57  ;;  %v4458_v4 = vsel %vm1283_vm2, %v4453_v63, 0 }
0x292b   : > { %v4451_v5 = vpop.permute.xlu1 %4450 }
0x2935   : > { %v8044_v58 = vpop.eup %8043 }
0x2936   : > { %v4348_v59 = vsel %vm1283_vm2, %v8044_v58, 0.0 }
0x2937   : > { %4349 = vadd.xlane.f32.xlu0 %v4348_v59 }
0x294d   : > { %4354 = vrot.lane.b32.xlu0 %v8927_v31, %s9520_s21 }
0x29c0   : > { %v4350_v6 = vpop.xlane.xlu0 %4349 }
0x29c1   : > { %8045 = vrcp.f32 %v4350_v6 }
0x29c4   : > { %v4355_v60 = vpop.permute.xlu0 %4354 }
0x29c5   : > { %v4360_v61 = vsel %vm1355_vm4, %v4355_v60, 0  ;;  %v7957_v60 = vld [vmem:[%s9541_s22 + $0x8] sm:$0xff]   ;;  %s9546_s22 = sld [smem:[#allocation38_spill]] }
0x29c6   : > { %7599 = vmatpush3.bf16.msra.mxu0 %v4360_v61  ;;  %v7958_v61 = vld [vmem:[%s9542_s17] sm:$0xff]  }
0x29c7   : > { %7610 = vmatprep.subr.bf16.mxu0 %v8193_v1 }
0x29ce   : > { %v8046_v40 = vpop.eup %8045 }
0x29cf   : > { %v4352_v62 = vmul.f32 %v8046_v40, %v8044_v58  ;;  %v7960_v40 = vld [vmem:[%s9543_s0 + $0x10] sm:$0xff]  }
0x29d1   : > { %v4353_v2 = vpack.c.bf16 %v4352_v62, %v4352_v62 }
0x29d3   : > { %7601 = vmatmul.mubr.msk.bf16.vlgmr.msra.gmra.mxu0 %vm1283_vm2, %v4353_v2 }
0x29d4   : > { %7611 = vmatpush3.bf16.xpose.msra.mxu0 %v4458_v4  ;;  %7612 = vmatprep.mubr.msk.bf16.mxu0 %vm8194_vm0, %v8193_v1 }
0x29d5   : > { %7622 = vmatprep.subr.bf16.mxu0 %v8193_v1 }
0x29db   : > { %7613 = vmatmul.mubr.msk.bf16.vlgmr.msra.gmra.mxu0 %vm1283_vm2, %v4451_v5  ;;  %v6936_v5 = vld [vmem:[%s9544_s15] ss:$0 sm:$0xff]  ;;  %s9549_s15 = sld [smem:[#allocation36_spill]] }
0x29dc   : > { %7624 = vmatprep.mubr.msk.bf16.mxu0 %vm8194_vm0, %v8193_v1  ;;  %7623 = vmatpush3.bf16.msra.mxu0 %v4567_v0 }
0x29dd   : > { %7636 = vmatprep.subr.bf16.mxu0 %v8193_v1 }
0x29e1   : > { %s9550_s27 = smov %s9549_s15 }
0x2a93   : > { %v4396_v10 = vpop.f32.mrf.mxu0 }
0x2a94   : > { %v4402_v9 = vpack.c.bf16 %v4396_v10, %v4396_v10 }
0x2a95   : > { %v7602_v11 = vpop.f32.mrf.mxu0 }
0x2a96   : > { %7607 = vmatmul.mubr.msk.bf16.vlgmr.msra.gmra.mxu1 %vm1283_vm2, %v4402_v9 }
0x2a97   : > { %v4399_v13 = vpop.f32.mrf.mxu0  ;;  %7618 = vmatprep.mubr.msk.bf16.mxu1 %vm8194_vm0, %v8193_v1 }
0x2a98   : > { %v7961_v13 = vld [vmem:[%s9543_s0 + $0x8] sm:$0xff]  }
0x2a99   : > { %v7603_v14 = vpop.f32.mrf.mxu0 }
0x2a9a   : > { %v7962_v14 = vld [vmem:[%s9543_s0] sm:$0xff]  }
0x2a9b   : > { %v4494_v15 = vpop.f32.mrf.mxu0 }
0x2a9c   : > { %v4500_v16 = vmul.f32 0.35355338, %v4494_v15  ;;  %v6938_v15 = vld [vmem:[%s9546_s22] ss:$0 sm:$0xff] }
0x2a9d   : > { %v7614_v17 = vpop.f32.mrf.mxu0 }
0x2a9e   : > { %v4501_v18 = vadd.f32 %v4500_v16, %v8505_v23 }
0x2a9f   : > { %v4497_v19 = vpop.f32.mrf.mxu0 }
0x2aa0   : > { %v4502_v20 = vsel %vm1283_vm2, %v4501_v18, -inf }
0x2aa1   : > { %4503 = vmax.xlane.f32.xlu0 %v4502_v20  ;;  %v7615_v22 = vpop.f32.mrf.mxu0 }
0x2ab7   : > { %4514 = vrot.lane.b32.xlu0 %v8927_v31, %s9523_s18 }
0x2b2a   : > { %v4504_v26 = vpop.xlane.xlu0 %4503 }
0x2b2b   : > { %v4505_v28 = vsub.f32 %v4501_v18, %v4504_v26 }
0x2b2d   : > { %v4506_v29 = vmul.f32 1.442695, %v4505_v28  ;;  %v6942_v28 = vld [vmem:[%s8391_s9] ss:$0 sm:$0xff] }
0x2b2e   : > { %v4515_v24 = vpop.permute.xlu0 %4514 }
0x2b2f   : > { %8047 = vpow2.f32 %v4506_v29  ;;  %v4520_v30 = vsel %vm1355_vm4, %v4515_v24, 0 }
0x2b30   : > { %7617 = vmatpush3.bf16.msra.mxu1 %v4520_v30 }
0x2b31   : > { %7628 = vmatprep.subr.bf16.mxu1 %v8193_v1 }
0x2b3c   : > { %v8048_v32 = vpop.eup %8047 }
0x2b3d   : > { %v4508_v34 = vsel %vm1283_vm2, %v8048_v32, 0.0 }
0x2b3e   : > { %4509 = vadd.xlane.f32.xlu1 %v4508_v34 }
0x2b56   : > { %v4443_v35 = vpop.f32.mrf.mxu1 }
0x2b57   : > { %v4449_v36 = vadd.f32 %v4443_v35, %v8989_v46 }
0x2b58   : > { %v7608_v37 = vpop.f32.mrf.mxu1 }
0x2b5a   : > { %v4446_v31 = vpop.f32.mrf.mxu1 }
0x2b5c   : > { %v7609_v39 = vpop.f32.mrf.mxu1 }
0x2bc7   : > { %v4510_v3 = vpop.xlane.xlu1 %4509 }
0x2bc8   : > { %8049 = vrcp.f32 %v4510_v3  ;;  %v7963_v3 = vld [vmem:[%s9525_s3 + $0x18] sm:$0xff]  }
0x2bd5   : > { %v8050_v41 = vpop.eup %8049 }
0x2bd6   : > { %v4512_v42 = vmul.f32 %v8050_v41, %v8048_v32  ;;  %v7964_v41 = vld [vmem:[%s9525_s3 + $0x10] sm:$0xff]  }
0x2bd8   : > { %v4513_v43 = vpack.c.bf16 %v4512_v42, %v4512_v42 }
0x2bda   : > { %7619 = vmatmul.mubr.msk.bf16.vlgmr.msra.gmra.mxu1 %vm1283_vm2, %v4513_v43 }
0x2bdb   : > { %7632 = vmatprep.mubr.msk.bf16.mxu1 %vm8194_vm0, %v8193_v1  ;;  %7629 = vmatpush3.bf16.msra.mxu1 %v7957_v60 }
0x2bdc   : > { %7630 = vmatprep.subr.bf16.mxu1 %v8193_v1 }
0x2bdf   : > { %7631 = vmatpush3.bf16.msra.mxu1 %v7958_v61 }
0x2be0   : > { %7648 = vmatprep.subr.bf16.mxu1 %v8193_v1 }
0x2c9a   : > { %v4556_v44 = vpop.f32.mrf.mxu1 }
0x2c9b   : > { %v4562_v45 = vpack.c.bf16 %v4556_v44, %v4556_v44 }
0x2c9c   : > { %v7620_v46 = vpop.f32.mrf.mxu1 }
0x2c9d   : > { %7625 = vmatmul.mubr.msk.bf16.vlgmr.msra.gmra.mxu0 %vm1283_vm2, %v4562_v45  ;;  %v6948_v46 = vld [vmem:[%s9547_s16] ss:$0 sm:$0xff] }
0x2c9e   : > { %v4559_v47 = vpop.f32.mrf.mxu1  ;;  %7644 = vmatprep.mubr.msk.bf16.mxu0 %vm8194_vm0, %v8193_v1 }
0x2ca0   : > { %v7621_v48 = vpop.f32.mrf.mxu1 }
0x2ca1   : > { %v6949_v48 = vld [vmem:[%s9549_s15] ss:$0 sm:$0xff] }
0x2d5d   : > { %v4603_v50 = vpop.f32.mrf.mxu0 }
0x2d5e   : > { %v4609_v21 = vadd.f32 %v4603_v50, %v4449_v36 }
0x2d5f   : > { %v7626_v51 = vpop.f32.mrf.mxu0 }
0x2d60   : > { %v4616_v52 = vadd.f32 %v6935_v49, %v4609_v21  ;;  %v6955_v51 = vld [vmem:[%s9527_s29 + $0x1] ss:$0 sm:$0xff] }
0x2d61   : > { %v4606_v53 = vpop.f32.mrf.mxu0 }
0x2d62   : > { %v4617_v54 = vadd.f32 %v4616_v52, %v8919_v27  ;;  %v7959_v27 = vld [vmem:[%s9543_s0 + $0x18] sm:$0xff]  }
0x2d63   : > { %v7627_v25 = vpop.f32.mrf.mxu0  ;;  %7637 = vmatpush3.bf16.msra.mxu0 %v7959_v27 }
0x2d64   : > { %v4620_v55 = vsel %vm1230_vm1, %v4617_v54, 0.0  ;;  %7638 = vmatprep.subr.bf16.mxu0 %v8193_v1 }
0x2d65   : > { %4621 = vadd.xlane.f32.xlu1 %v4620_v55 }
0x2d67   : > { %7639 = vmatpush3.bf16.msra.mxu0 %v7960_v40 }
0x2d68   : > { %7640 = vmatprep.subr.bf16.mxu0 %v8193_v1 }
0x2d6b   : > { %7641 = vmatpush3.bf16.msra.mxu0 %v7961_v13 }
0x2d6c   : > { %7642 = vmatprep.subr.bf16.mxu0 %v8193_v1 }
0x2d6f   : > { %7643 = vmatpush3.bf16.msra.mxu0 %v7962_v14 }
0x2d70   : > { %7662 = vmatprep.subr.bf16.mxu0 %v8193_v1 }
0x2dee   : > { %v4622_v56 = vpop.xlane.xlu1 %4621 }
0x2def   : > { %v4623_v57 = vmul.f32 0.03125, %v4622_v56 }
0x2df1   : > { %v4624_v58 = vsub.f32 %v4617_v54, %v4623_v57 }
0x2df3   : > { %v4625_v59 = vmul.f32 %v4624_v58, %v4624_v58 }
0x2df5   : > { %v4626_v6 = vsel %vm1230_vm1, %v4625_v59, 0.0 }
0x2df6   : > { %4627 = vadd.xlane.f32.xlu1 %v4626_v6 }
0x2e7f   : > { %v4628_v62 = vpop.xlane.xlu1 %4627 }
0x2e80   : > { %v4629_v63 = vmul.f32 0.03125, %v4628_v62 }
0x2e82   : > { %v4630_v2 = vadd.f32 1e-05, %v4629_v63 }
0x2e84   : > { %8051 = vrsqrt.f32 %v4630_v2 }
0x2e91   : > { %v8052_v4 = vpop.eup %8051 }
0x2e92   : > { %v4632_v7 = vmul.f32 %v8052_v4, %v4624_v58 }
0x2e94   : > { %v4639_v10 = vmul.f32 %v6936_v5, %v4632_v7 }
0x2e96   : > { %v4646_v9 = vadd.f32 %v6937_v8, %v4639_v10 }
0x2e98   : > { %v4651_v11 = vpack.c.bf16 %v4646_v9, %v4646_v9 }
0x2e9a   : > { %7633 = vmatmul.mubr.msk.bf16.vlgmr.msra.gmra.mxu1 %vm1230_vm1, %v4651_v11 }
0x2e9b   : > { %7652 = vmatprep.mubr.msk.bf16.mxu1 %vm8194_vm0, %v8193_v1  ;;  %7649 = vmatpush3.bf16.msra.mxu1 %v7963_v3  ;;  %v6959_v3 = vld [vmem:[%s9530_s23 + $0x10] sm:$0xf] }
0x2e9c   : > { %7650 = vmatprep.subr.bf16.mxu1 %v8193_v1 }
0x2e9f   : > { %7651 = vmatpush3.bf16.msra.mxu1 %v7964_v41  ;;  %v5180_v41 = vsel %vm1355_vm4, %v6959_v3, 0 }
0x2ea0   : > { %7656 = vmatprep.subr.bf16.mxu1 %v8193_v1 }
0x2f5a   : > { %v4708_v16 = vpop.f32.mrf.mxu1 }
0x2f5b   : > { %v4709_v17 = vadd.f32 %v6938_v15, %v4708_v16 }
0x2f5c   : > { %v7634_v18 = vpop.f32.mrf.mxu1 }
0x2f5d   : > { %v4714_v19 = vmax.f32 %v4709_v17, 0.0 }
0x2f5e   : > { %v4711_v20 = vpop.f32.mrf.mxu1 }
0x2f5f   : > { %v4723_v22 = vpack.c.bf16 %v4714_v19, %v4714_v19 }
0x2f60   : > { %v7635_v26 = vpop.f32.mrf.mxu1 }
0x2f61   : > { %7645 = vmatmul.mubr.msk.bf16.vlgmr.msra.gmra.mxu0 %vm2071_vm5, %v4723_v22 }
0x2f62   : > { %7664 = vmatprep.mubr.msk.bf16.mxu0 %vm8194_vm0, %v8193_v1 }
0x3021   : > { %v4792_v29 = vpop.f32.mrf.mxu0 }
0x3022   : > { %v4793_v24 = vadd.f32 %v6942_v28, %v4792_v29 }
0x3023   : > { %v7646_v30 = vpop.f32.mrf.mxu0 }
0x3024   : > { %v4798_v32 = vadd.f32 %v4793_v24, %v4646_v9 }
0x3025   : > { %v4795_v34 = vpop.f32.mrf.mxu0 }
0x3026   : > { %v4801_v35 = vsel %vm1230_vm1, %v4798_v32, 0.0 }
0x3027   : > { %4802 = vadd.xlane.f32.xlu1 %v4801_v35  ;;  %v7647_v36 = vpop.f32.mrf.mxu0 }
0x30b0   : > { %v4803_v37 = vpop.xlane.xlu1 %4802 }
0x30b1   : > { %v4804_v31 = vmul.f32 0.03125, %v4803_v37 }
0x30b3   : > { %v4805_v33 = vsub.f32 %v4798_v32, %v4804_v31 }
0x30b5   : > { %v4806_v0 = vmul.f32 %v4805_v33, %v4805_v33 }
0x30b7   : > { %v4807_v39 = vsel %vm1230_vm1, %v4806_v0, 0.0 }
0x30b8   : > { %4808 = vadd.xlane.f32.xlu1 %v4807_v39 }
0x3141   : > { %v4809_v42 = vpop.xlane.xlu1 %4808 }
0x3142   : > { %v4810_v43 = vmul.f32 0.03125, %v4809_v42  ;;  %v6960_v42 = vld [vmem:[%s9530_s23 + $0x14] sm:$0xf] }
0x3144   : > { %v4811_v44 = vadd.f32 1e-05, %v4810_v43  ;;  %v5134_v43 = vsel %vm1355_vm4, %v6960_v42, 0 }
0x3146   : > { %8053 = vrsqrt.f32 %v4811_v44 }
0x3153   : > { %v8054_v45 = vpop.eup %8053 }
0x3154   : > { %v4813_v47 = vmul.f32 %v8054_v45, %v4805_v33 }
0x3156   : > { %v4820_v49 = vmul.f32 %v6948_v46, %v4813_v47 }
0x3158   : > { %v9067_v50 = vadd.f32 %v6949_v48, %v4820_v49 }
0x315a   : > { %v4833_v21 = vpack.c.bf16 %v9067_v50, %v9067_v50 }
0x315c   : > { %7653 = vmatmul.mubr.msk.bf16.vlgmr.msra.gmra.mxu1 %vm1230_vm1, %v4833_v21 }
0x315d   : > { %7658 = vmatprep.mubr.msk.bf16.mxu1 %vm8194_vm0, %v8193_v1 }
0x321c   : > { %v4891_v52 = vpop.f32.mrf.mxu1 }
0x321d   : > { %v4892_v53 = vadd.f32 %v6955_v51, %v4891_v52 }
0x321e   : > { %v7654_v54 = vpop.f32.mrf.mxu1 }
0x321f   : > { %v9075_v25 = vpack.c.bf16 %v4892_v53, %v4892_v53 }
0x3220   : > { %v4894_v55 = vpop.f32.mrf.mxu1 }
0x3221   : > { %5019 = vrot.lane.b32.xlu0 %v9075_v25, %s9515_s5  ;;  %4906 = vrot.lane.b32.xlu1 %v9075_v25, %s9516_s11 }
0x3222   : > { %v7655_v56 = vpop.f32.mrf.mxu1 }
0x3225   : > { %5017 = vrot.lane.b32.xlu0 %v9075_v25, %s9517_s28 }
0x3293   : > { %v4907_v57 = vpop.permute.xlu1 %4906  ;;  %v5020_v59 = vpop.permute.xlu0 %5019 }
0x3294   : > { %v4912_v58 = vsel %vm1283_vm2, %v4907_v57, 0  ;;  %v5025_v6 = vsel %vm1283_vm2, %v5020_v59, 0 }
0x3295   : > { %7657 = vmatpush3.bf16.xpose.msra.mxu1 %v4912_v58 }
0x3296   : > { %7668 = vmatprep.subr.bf16.mxu1 %v8193_v1 }
0x3297   : > { %v5018_v60 = vpop.permute.xlu0 %5017 }
0x329c   : > { %7659 = vmatmul.mubr.msk.bf16.vlgmr.msra.gmra.mxu1 %vm1283_vm2, %v9075_v25 }
0x329d   : > { %7669 = vmatpush3.bf16.xpose.msra.mxu1 %v5025_v6  ;;  %7670 = vmatprep.mubr.msk.bf16.mxu1 %vm8194_vm0, %v8193_v1 }
0x329e   : > { %7680 = vmatprep.subr.bf16.mxu1 %v8193_v1 }
0x32a4   : > { %7671 = vmatmul.mubr.msk.bf16.vlgmr.msra.gmra.mxu1 %vm1283_vm2, %v5018_v60 }
0x32a5   : > { %7682 = vmatprep.mubr.msk.bf16.mxu1 %vm8194_vm0, %v8193_v1  ;;  %7681 = vmatpush3.bf16.msra.mxu1 %v5134_v43 }
0x32a6   : > { %7692 = vmatprep.subr.bf16.mxu1 %v8193_v1 }
0x335c   : > { %v4948_v61 = vpop.f32.mrf.mxu1 }
0x335d   : > { %v4954_v27 = vmul.f32 0.35355338, %v4948_v61 }
0x335e   : > { %v7660_v40 = vpop.f32.mrf.mxu1 }
0x335f   : > { %v4955_v62 = vadd.f32 %v4954_v27, %v8805_v38 }
0x3360   : > { %v4951_v63 = vpop.f32.mrf.mxu1 }
0x3361   : > { %v4956_v2 = vsel %vm1283_vm2, %v4955_v62, -inf }
0x3362   : > { %4957 = vmax.xlane.f32.xlu0 %v4956_v2  ;;  %v7661_v4 = vpop.f32.mrf.mxu1 }
0x3364   : > { %v5061_v5 = vpop.f32.mrf.mxu1 }
0x3365   : > { %v5067_v7 = vmul.f32 0.35355338, %v5061_v5 }
0x3366   : > { %v7672_v8 = vpop.f32.mrf.mxu1 }
0x3367   : > { %v5068_v10 = vadd.f32 %v5067_v7, %v8805_v38 }
0x3368   : > { %v5064_v9 = vpop.f32.mrf.mxu1 }
0x3369   : > { %v5069_v11 = vsel %vm1283_vm2, %v5068_v10, -inf }
0x336a   : > { %5070 = vmax.xlane.f32.xlu1 %v5069_v11  ;;  %v7673_v13 = vpop.f32.mrf.mxu1 }
0x337b   : > { %5081 = vrot.lane.b32.xlu1 %v9075_v25, %s9529_s6 }
0x337f   : > { %5222 = vrot.lane.b32.xlu1 %v9075_v25, %s9518_s13 }
0x33eb   : > { %v4958_v14 = vpop.xlane.xlu0 %4957 }
0x33ec   : > { %v4959_v15 = vsub.f32 %v4955_v62, %v4958_v14 }
0x33ee   : > { %v4960_v16 = vmul.f32 1.442695, %v4959_v15 }
0x33f0   : > { %8055 = vpow2.f32 %v4960_v16 }
0x33f3   : > { %v5071_v17 = vpop.xlane.xlu1 %5070 }
0x33f4   : > { %v5072_v18 = vsub.f32 %v5068_v10, %v5071_v17 }
0x33f6   : > { %v5073_v19 = vmul.f32 1.442695, %v5072_v18 }
0x33f7   : > { %v5082_v36 = vpop.permute.xlu1 %5081 }
0x33f8   : > { %8057 = vpow2.f32 %v5073_v19  ;;  %v5087_v31 = vsel %vm1355_vm4, %v5082_v36, 0 }
0x33fb   : > { %v5223_v56 = vpop.permute.xlu1 %5222 }
0x33fd   : > { %v8056_v20 = vpop.eup %8055 }
0x33fe   : > { %v4962_v22 = vsel %vm1283_vm2, %v8056_v20, 0.0 }
0x33ff   : > { %4963 = vadd.xlane.f32.xlu0 %v4962_v22 }
0x3405   : > { %v8058_v26 = vpop.eup %8057 }
0x3406   : > { %v5075_v28 = vsel %vm1283_vm2, %v8058_v26, 0.0 }
0x3407   : > { %5076 = vadd.xlane.f32.xlu0 %v5075_v28 }
0x341d   : > { %4968 = vrot.lane.b32.xlu0 %v9075_v25, %s9519_s1 }
0x3421   : > { %5224 = vrot.lane.b32.xlu0 %v9075_v25, %s9520_s21 }
0x3488   : > { %v4964_v29 = vpop.xlane.xlu0 %4963 }
0x3489   : > { %8059 = vrcp.f32 %v4964_v29 }
0x3490   : > { %v5077_v24 = vpop.xlane.xlu0 %5076 }
0x3491   : > { %8061 = vrcp.f32 %v5077_v24  ;;  %v6961_v24 = vld [vmem:[%s9530_s23 + $0x18] sm:$0xf] }
0x3494   : > { %v4969_v30 = vpop.permute.xlu0 %4968 }
0x3495   : > { %v4974_v32 = vsel %vm1355_vm4, %v4969_v30, 0  ;;  %v5339_v30 = vsel %vm1355_vm4, %v6961_v24, 0 }
0x3496   : > { %v8060_v34 = vpop.eup %8059  ;;  %7663 = vmatpush3.bf16.msra.mxu0 %v4974_v32 }
0x3497   : > { %v4966_v35 = vmul.f32 %v8060_v34, %v8056_v20  ;;  %7674 = vmatprep.subr.bf16.mxu0 %v8193_v1 }
0x3498   : > { %v5225_v49 = vpop.permute.xlu0 %5224 }
0x3499   : > { %v4967_v37 = vpack.c.bf16 %v4966_v35, %v4966_v35  ;;  %v5230_v53 = vsel %vm1283_vm2, %v5225_v49, 0 }
0x349b   : > { %7665 = vmatmul.mubr.msk.bf16.vlgmr.msra.gmra.mxu0 %vm1283_vm2, %v4967_v37 }
0x349c   : > { %7675 = vmatpush3.bf16.msra.mxu0 %v5087_v31  ;;  %7676 = vmatprep.mubr.msk.bf16.mxu0 %vm8194_vm0, %v8193_v1 }
0x349d   : > { %7686 = vmatprep.subr.bf16.mxu0 %v8193_v1 }
0x349e   : > { %v8062_v33 = vpop.eup %8061 }
0x349f   : > { %v5079_v0 = vmul.f32 %v8062_v33, %v8058_v26 }
0x34a1   : > { %v5080_v39 = vpack.c.bf16 %v5079_v0, %v5079_v0 }
0x34a3   : > { %7677 = vmatmul.mubr.msk.bf16.vlgmr.msra.gmra.mxu0 %vm1283_vm2, %v5080_v39 }
0x34a4   : > { %7688 = vmatprep.mubr.msk.bf16.mxu0 %vm8194_vm0, %v8193_v1  ;;  %7687 = vmatpush3.bf16.msra.mxu0 %v5180_v41 }
0x34a5   : > { %7698 = vmatprep.subr.bf16.mxu0 %v8193_v1 }
0x355b   : > { %v5010_v44 = vpop.f32.mrf.mxu0 }
0x355c   : > { %v5016_v45 = vpack.c.bf16 %v5010_v44, %v5010_v44 }
0x355d   : > { %v7666_v46 = vpop.f32.mrf.mxu0 }
0x355e   : > { %7689 = vmatmul.mubr.msk.bf16.vlgmr.msra.gmra.mxu0 %vm1283_vm2, %v5016_v45 }
0x355f   : > { %v5013_v47 = vpop.f32.mrf.mxu0  ;;  %7700 = vmatprep.mubr.msk.bf16.mxu0 %vm8194_vm0, %v8193_v1 }
0x3561   : > { %v7667_v48 = vpop.f32.mrf.mxu0 }
0x3563   : > { %v5123_v21 = vpop.f32.mrf.mxu0 }
0x3564   : > { %v5129_v51 = vpack.c.bf16 %v5123_v21, %v5123_v21 }
0x3565   : > { %v7678_v52 = vpop.f32.mrf.mxu0 }
0x3566   : > { %7683 = vmatmul.mubr.msk.bf16.vlgmr.msra.gmra.mxu1 %vm1283_vm2, %v5129_v51  ;;  %v6962_v51 = vld [vmem:[%s9530_s23 + $0x1c] sm:$0xf] }
0x3567   : > { %7693 = vmatpush3.bf16.xpose.msra.mxu1 %v5230_v53  ;;  %v5126_v54 = vpop.f32.mrf.mxu0  ;;  %7694 = vmatprep.mubr.msk.bf16.mxu1 %vm8194_vm0, %v8193_v1  ;;  %v5499_v52 = vsel %vm1355_vm4, %v6962_v51, 0 }
0x3568   : > { %7704 = vmatprep.subr.bf16.mxu1 %v8193_v1 }
0x3569   : > { %v7679_v55 = vpop.f32.mrf.mxu0 }
0x356e   : > { %7695 = vmatmul.mubr.msk.bf16.vlgmr.msra.gmra.mxu1 %vm1283_vm2, %v5223_v56 }
0x356f   : > { %7706 = vmatprep.mubr.msk.bf16.mxu1 %vm8194_vm0, %v8193_v1  ;;  %7705 = vmatpush3.bf16.msra.mxu1 %v5339_v30 }
0x3570   : > { %7716 = vmatprep.subr.bf16.mxu1 %v8193_v1 }
0x361e   : > { %v5216_v57 = vpop.f32.mrf.mxu0 }
0x3620   : > { %v7690_v58 = vpop.f32.mrf.mxu0 }
0x3622   : > { %v5219_v59 = vpop.f32.mrf.mxu0 }
0x3624   : > { %v7691_v6 = vpop.f32.mrf.mxu0 }
0x3625   : > { %v7965_v6 = vld [vmem:[%s9532_s8 + $0x18] sm:$0xff]  }
0x3626   : > { %v5170_v60 = vpop.f32.mrf.mxu1 }
0x3627   : > { %v9135_v61 = vadd.f32 %v5216_v57, %v5170_v60 }
0x3628   : > { %v7684_v27 = vpop.f32.mrf.mxu1 }
0x362a   : > { %v5173_v40 = vpop.f32.mrf.mxu1 }
0x362b   : > { %v7966_v40 = vld [vmem:[%s9532_s8 + $0x10] sm:$0xff]  }
0x362c   : > { %v7685_v62 = vpop.f32.mrf.mxu1 }
0x362e   : > { %v5266_v63 = vpop.f32.mrf.mxu1 }
0x362f   : > { %v5272_v2 = vmul.f32 0.35355338, %v5266_v63  ;;  %v6976_v63 = vld [vmem:[%s9531_s30 + $0x1] ss:$0 sm:$0xff] }
0x3630   : > { %v7696_v4 = vpop.f32.mrf.mxu1 }
0x3631   : > { %v5273_v5 = vadd.f32 %v5272_v2, %v8805_v38 }
0x3632   : > { %v5269_v7 = vpop.f32.mrf.mxu1 }
0x3633   : > { %v5274_v8 = vsel %vm1283_vm2, %v5273_v5, -inf }
0x3634   : > { %5275 = vmax.xlane.f32.xlu0 %v5274_v8  ;;  %v7697_v10 = vpop.f32.mrf.mxu1 }
0x364a   : > { %5286 = vrot.lane.b32.xlu0 %v9075_v25, %s9521_s25  ;;  %s9554_s25 = sld [smem:[#allocation40_spill]] }
0x364e   : > { %5382 = vrot.lane.b32.xlu0 %v9075_v25, %s9522_s2 }
0x36bd   : > { %v5276_v9 = vpop.xlane.xlu0 %5275 }
0x36be   : > { %v5277_v11 = vsub.f32 %v5273_v5, %v5276_v9 }
0x36c0   : > { %v5278_v13 = vmul.f32 1.442695, %v5277_v11 }
0x36c1   : > { %v5287_v14 = vpop.permute.xlu0 %5286 }
0x36c2   : > { %8063 = vpow2.f32 %v5278_v13  ;;  %v5292_v15 = vsel %vm1355_vm4, %v5287_v14, 0 }
0x36c3   : > { %7699 = vmatpush3.bf16.msra.mxu0 %v5292_v15 }
0x36c4   : > { %7710 = vmatprep.subr.bf16.mxu0 %v8193_v1 }
0x36c5   : > { %v5383_v29 = vpop.permute.xlu0 %5382 }
0x36cf   : > { %v8064_v16 = vpop.eup %8063 }
0x36d0   : > { %v5280_v17 = vsel %vm1283_vm2, %v8064_v16, 0.0 }
0x36d1   : > { %5281 = vadd.xlane.f32.xlu1 %v5280_v17 }
0x36e2   : > { %5384 = vrot.lane.b32.xlu1 %v9075_v25, %s9523_s18 }
0x375a   : > { %v5282_v18 = vpop.xlane.xlu1 %5281 }
0x375b   : > { %8065 = vrcp.f32 %v5282_v18 }
0x375e   : > { %v5385_v22 = vpop.permute.xlu1 %5384 }
0x375f   : > { %v5390_v28 = vsel %vm1283_vm2, %v5385_v22, 0  ;;  %v6995_v22 = vld [vmem:[%s9536_s19 + $0x1] ss:$0 sm:$0xff] }
0x3768   : > { %v8066_v19 = vpop.eup %8065 }
0x3769   : > { %v5284_v20 = vmul.f32 %v8066_v19, %v8064_v16 }
0x376b   : > { %v5285_v26 = vpack.c.bf16 %v5284_v20, %v5284_v20 }
0x376d   : > { %7701 = vmatmul.mubr.msk.bf16.vlgmr.msra.gmra.mxu0 %vm1283_vm2, %v5285_v26 }
0x376e   : > { %7711 = vmatpush3.bf16.xpose.msra.mxu0 %v5390_v28  ;;  %7712 = vmatprep.mubr.msk.bf16.mxu0 %vm8194_vm0, %v8193_v1  ;;  %v7967_v28 = vld [vmem:[%s9533_s12 + $0x18] sm:$0xff]  }
0x376f   : > { %7722 = vmatprep.subr.bf16.mxu0 %v8193_v1 }
0x3775   : > { %7713 = vmatmul.mubr.msk.bf16.vlgmr.msra.gmra.mxu0 %vm1283_vm2, %v5383_v29  ;;  %v7968_v29 = vld [vmem:[%s9533_s12 + $0x10] sm:$0xff]  }
0x3776   : > { %7724 = vmatprep.mubr.msk.bf16.mxu0 %vm8194_vm0, %v8193_v1  ;;  %7723 = vmatpush3.bf16.msra.mxu0 %v5499_v52 }
0x3777   : > { %7736 = vmatprep.subr.bf16.mxu0 %v8193_v1 }
0x382d   : > { %v5328_v32 = vpop.f32.mrf.mxu0 }
0x382e   : > { %v5334_v34 = vpack.c.bf16 %v5328_v32, %v5328_v32 }
0x382f   : > { %v7702_v35 = vpop.f32.mrf.mxu0 }
0x3830   : > { %7707 = vmatmul.mubr.msk.bf16.vlgmr.msra.gmra.mxu1 %vm1283_vm2, %v5334_v34  ;;  %v6979_v35 = vld [vmem:[%s9534_s14 + $0x1] ss:$0 sm:$0xff] }
0x3831   : > { %v5331_v36 = vpop.f32.mrf.mxu0  ;;  %7718 = vmatprep.mubr.msk.bf16.mxu1 %vm8194_vm0, %v8193_v1 }
0x3833   : > { %v7703_v37 = vpop.f32.mrf.mxu0 }
0x3834   : > { %v6980_v37 = vld [vmem:[%s9535_s20 + $0x1] ss:$0 sm:$0xff] }
0x3835   : > { %v5426_v31 = vpop.f32.mrf.mxu0 }
0x3836   : > { %v5432_v33 = vmul.f32 0.35355338, %v5426_v31 }
0x3837   : > { %v7714_v0 = vpop.f32.mrf.mxu0 }
0x3838   : > { %v5433_v39 = vadd.f32 %v5432_v33, %v8805_v38 }
0x3839   : > { %v5429_v3 = vpop.f32.mrf.mxu0 }
0x383a   : > { %v5434_v41 = vsel %vm1283_vm2, %v5433_v39, -inf  ;;  %v6986_v3 = vld [vmem:[%s9537_s24 + $0x1] ss:$0 sm:$0xff] }
0x383b   : > { %5435 = vmax.xlane.f32.xlu1 %v5434_v41  ;;  %v7715_v42 = vpop.f32.mrf.mxu0 }
0x38c4   : > { %v5436_v43 = vpop.xlane.xlu1 %5435 }
0x38c5   : > { %v5437_v44 = vsub.f32 %v5433_v39, %v5436_v43 }
0x38c7   : > { %v5438_v45 = vmul.f32 1.442695, %v5437_v44 }
0x38c9   : > { %8067 = vpow2.f32 %v5438_v45 }
0x38d6   : > { %v8068_v46 = vpop.eup %8067 }
0x38d7   : > { %v5440_v47 = vsel %vm1283_vm2, %v8068_v46, 0.0 }
0x38d8   : > { %5441 = vadd.xlane.f32.xlu0 %v5440_v47 }
0x38ee   : > { %5446 = vrot.lane.b32.xlu0 %v9075_v25, %s9524_s26  ;;  %s9556_s26 = sld [smem:[#allocation41_spill]] }
0x38f0   : > { %v5375_v48 = vpop.f32.mrf.mxu1 }
0x38f1   : > { %v5381_v38 = vadd.f32 %v5375_v48, %v9135_v61 }
0x38f2   : > { %v7708_v49 = vpop.f32.mrf.mxu1 }
0x38f4   : > { %v5378_v21 = vpop.f32.mrf.mxu1 }
0x38f6   : > { %v7709_v53 = vpop.f32.mrf.mxu1 }
0x3961   : > { %v5442_v54 = vpop.xlane.xlu0 %5441 }
0x3962   : > { %8069 = vrcp.f32 %v5442_v54 }
0x3965   : > { %v5447_v55 = vpop.permute.xlu0 %5446 }
0x3966   : > { %v5452_v56 = vsel %vm1355_vm4, %v5447_v55, 0 }
0x3967   : > { %7717 = vmatpush3.bf16.msra.mxu1 %v5452_v56 }
0x3968   : > { %7728 = vmatprep.subr.bf16.mxu1 %v8193_v1 }
0x396f   : > { %v8070_v25 = vpop.eup %8069 }
0x3970   : > { %v5444_v57 = vmul.f32 %v8070_v25, %v8068_v46 }
0x3972   : > { %v5445_v58 = vpack.c.bf16 %v5444_v57, %v5444_v57 }
0x3974   : > { %7719 = vmatmul.mubr.msk.bf16.vlgmr.msra.gmra.mxu1 %vm1283_vm2, %v5445_v58 }
0x3975   : > { %7732 = vmatprep.mubr.msk.bf16.mxu1 %vm8194_vm0, %v8193_v1  ;;  %7729 = vmatpush3.bf16.msra.mxu1 %v7967_v28 }
0x3976   : > { %7730 = vmatprep.subr.bf16.mxu1 %v8193_v1 }
0x3979   : > { %7731 = vmatpush3.bf16.msra.mxu1 %v7968_v29 }
0x397a   : > { %7744 = vmatprep.subr.bf16.mxu1 %v8193_v1 }
0x3a34   : > { %v5488_v59 = vpop.f32.mrf.mxu1 }
0x3a35   : > { %v5494_v60 = vpack.c.bf16 %v5488_v59, %v5488_v59 }
0x3a36   : > { %v7720_v61 = vpop.f32.mrf.mxu1 }
0x3a37   : > { %7725 = vmatmul.mubr.msk.bf16.vlgmr.msra.gmra.mxu0 %vm1283_vm2, %v5494_v60 }
0x3a38   : > { %v5491_v27 = vpop.f32.mrf.mxu1  ;;  %7737 = vmatpush3.bf16.msra.mxu0 %v7965_v6  ;;  %7740 = vmatprep.mubr.msk.bf16.mxu0 %vm8194_vm0, %v8193_v1 }
0x3a39   : > { %7738 = vmatprep.subr.bf16.mxu0 %v8193_v1 }
0x3a3a   : > { %v7721_v62 = vpop.f32.mrf.mxu1 }
0x3a3c   : > { %7739 = vmatpush3.bf16.msra.mxu0 %v7966_v40 }
0x3a3d   : > { %7750 = vmatprep.subr.bf16.mxu0 %v8193_v1 }
0x3a3f   : > { %7741 = vmatmul.mubr.msk.bf16.vlgmr.msra.gmra.mxu0 %vm1230_vm1, %v8907_v12 }
0x3a40   : > { %7752 = vmatprep.mubr.msk.bf16.mxu0 %vm8194_vm0, %v8193_v1 }
0x3af7   : > { %v5535_v2 = vpop.f32.mrf.mxu0 }
0x3af8   : > { %v5541_v4 = vadd.f32 %v5535_v2, %v5381_v38 }
0x3af9   : > { %v7726_v5 = vpop.f32.mrf.mxu0 }
0x3afa   : > { %v5548_v7 = vadd.f32 %v6976_v63, %v5541_v4 }
0x3afb   : > { %v5538_v8 = vpop.f32.mrf.mxu0 }
0x3afc   : > { %v5549_v10 = vadd.f32 %v5548_v7, %v9067_v50 }
0x3afd   : > { %v7727_v9 = vpop.f32.mrf.mxu0 }
0x3afe   : > { %v5554_v11 = vsel %vm1230_vm1, %v5549_v10, 0.0 }
0x3aff   : > { %5555 = vadd.xlane.f32.xlu1 %v5554_v11  ;;  %v5709_v13 = vpop.f32.mrf.mxu0 }
0x3b00   : > { %v5710_v50 = vadd.f32 %v6995_v22, %v5709_v13  ;;  %v6999_v22 = vld [vmem:[%s9538_s10 + $0x10] sm:$0xf] }
0x3b01   : > { %v7742_v14 = vpop.f32.mrf.mxu0  ;;  %v5998_v29 = vsel %vm1355_vm4, %v6999_v22, 0 }
0x3b02   : > { %v9192_v26 = vpack.c.bf16 %v5710_v50, %v5710_v50 }
0x3b03   : > { %v5712_v12 = vpop.f32.mrf.mxu0 }
0x3b04   : > { %v5728_v39 = vsel %vm1283_vm2, %v9192_v26, 0 }
0x3b05   : > { %v7743_v15 = vpop.f32.mrf.mxu0 }
0x3b06   : > { %v7000_v15 = vld [vmem:[%s9538_s10 + $0x14] sm:$0xf] }
0x3b88   : > { %v5556_v16 = vpop.xlane.xlu1 %5555 }
0x3b89   : > { %v5557_v17 = vmul.f32 0.03125, %v5556_v16  ;;  %v5952_v16 = vsel %vm1355_vm4, %v7000_v15, 0 }
0x3b8b   : > { %v5558_v18 = vsub.f32 %v5549_v10, %v5557_v17 }
0x3b8d   : > { %v5559_v19 = vmul.f32 %v5558_v18, %v5558_v18 }
0x3b8f   : > { %v5560_v20 = vsel %vm1230_vm1, %v5559_v19, 0.0 }
0x3b90   : > { %5561 = vadd.xlane.f32.xlu1 %v5560_v20 }
0x3ba1   : > { %5837 = vrot.lane.b32.xlu1 %v9192_v26, %s9517_s28 }
0x3c19   : > { %v5562_v24 = vpop.xlane.xlu1 %5561 }
0x3c1a   : > { %v5563_v30 = vmul.f32 0.03125, %v5562_v24 }
0x3c1c   : > { %v5564_v32 = vadd.f32 1e-05, %v5563_v30 }
0x3c1d   : > { %v5838_v43 = vpop.permute.xlu1 %5837 }
0x3c1e   : > { %8071 = vrsqrt.f32 %v5564_v32  ;;  %v5843_v47 = vsel %vm1283_vm2, %v5838_v43, 0 }
0x3c2b   : > { %v8072_v34 = vpop.eup %8071 }
0x3c2c   : > { %v5566_v36 = vmul.f32 %v8072_v34, %v5558_v18 }
0x3c2e   : > { %v5573_v31 = vmul.f32 %v6979_v35, %v5566_v36 }
0x3c30   : > { %v9202_v33 = vadd.f32 %v6980_v37, %v5573_v31 }
0x3c32   : > { %v5586_v0 = vpack.c.bf16 %v9202_v33, %v9202_v33 }
0x3c34   : > { %7733 = vmatmul.mubr.msk.bf16.vlgmr.msra.gmra.mxu1 %vm1230_vm1, %v5586_v0 }
0x3c35   : > { %7745 = vmatpush3.bf16.xpose.msra.mxu1 %v5728_v39  ;;  %7746 = vmatprep.mubr.msk.bf16.mxu1 %vm8194_vm0, %v8193_v1 }
0x3c36   : > { %7756 = vmatprep.subr.bf16.mxu1 %v8193_v1 }
0x3cf4   : > { %v5644_v41 = vpop.f32.mrf.mxu1 }
0x3cf5   : > { %v5645_v42 = vadd.f32 %v6986_v3, %v5644_v41 }
0x3cf6   : > { %v7734_v44 = vpop.f32.mrf.mxu1 }
0x3cf7   : > { %v9213_v45 = vpack.c.bf16 %v5645_v42, %v5645_v42 }
0x3cf8   : > { %v5647_v46 = vpop.f32.mrf.mxu1 }
0x3cf9   : > { %5835 = vrot.lane.b32.xlu0 %v9213_v45, %s9517_s28  ;;  %7747 = vmatmul.mubr.msk.bf16.vlgmr.msra.gmra.mxu1 %vm1283_vm2, %v9213_v45  ;;  %s9558_s28 = sld [smem:[#allocation42_spill]] }
0x3cfa   : > { %7757 = vmatpush3.bf16.xpose.msra.mxu1 %v5843_v47  ;;  %v7735_v48 = vpop.f32.mrf.mxu1  ;;  %7758 = vmatprep.mubr.msk.bf16.mxu1 %vm8194_vm0, %v8193_v1 }
0x3cfb   : > { %7768 = vmatprep.subr.bf16.mxu1 %v8193_v1 }
0x3d6b   : > { %v5836_v38 = vpop.permute.xlu0 %5835 }
0x3d6c   : > { %7759 = vmatmul.mubr.msk.bf16.vlgmr.msra.gmra.mxu1 %vm1283_vm2, %v5836_v38 }
0x3d6d   : > { %7770 = vmatprep.mubr.msk.bf16.mxu1 %vm8194_vm0, %v8193_v1  ;;  %7769 = vmatpush3.bf16.msra.mxu1 %v5952_v16 }
0x3d6e   : > { %7780 = vmatprep.subr.bf16.mxu1 %v8193_v1 }
0x3db9   : > { %v5764_v49 = vpop.f32.mrf.mxu1 }
0x3dba   : > { %v5770_v21 = vmul.f32 0.35355338, %v5764_v49 }
0x3dbb   : > { %v7748_v51 = vpop.f32.mrf.mxu1 }
0x3dbc   : > { %v5771_v52 = vadd.f32 %v5770_v21, %v8505_v23 }
0x3dbd   : > { %v5767_v53 = vpop.f32.mrf.mxu1 }
0x3dbe   : > { %v5772_v54 = vsel %vm1283_vm2, %v5771_v52, -inf }
0x3dbf   : > { %5773 = vmax.xlane.f32.xlu0 %v5772_v54  ;;  %v7749_v55 = vpop.f32.mrf.mxu1 }
0x3e2c   : > { %v5879_v56 = vpop.f32.mrf.mxu1 }
0x3e2d   : > { %v5885_v25 = vmul.f32 0.35355338, %v5879_v56 }
0x3e2e   : > { %v7760_v57 = vpop.f32.mrf.mxu1 }
0x3e2f   : > { %v5886_v58 = vadd.f32 %v5885_v25, %v8505_v23 }
0x3e30   : > { %v5882_v59 = vpop.f32.mrf.mxu1 }
0x3e31   : > { %v5887_v6 = vsel %vm1283_vm2, %v5886_v58, -inf }
0x3e32   : > { %5888 = vmax.xlane.f32.xlu1 %v5887_v6  ;;  %v7761_v60 = vpop.f32.mrf.mxu1 }
0x3e43   : > { %5785 = vrot.lane.b32.xlu1 %v9192_v26, %s9516_s11 }
0x3e47   : > { %6042 = vrot.lane.b32.xlu1 %v9192_v26, %s9518_s13 }
0x3e48   : > { %v5774_v61 = vpop.xlane.xlu0 %5773 }
0x3e49   : > { %v5775_v27 = vsub.f32 %v5771_v52, %v5774_v61 }
0x3e4b   : > { %v5776_v40 = vmul.f32 1.442695, %v5775_v27  ;;  %6040 = vrot.lane.b32.xlu1 %v9213_v45, %s9518_s13  ;;  %s9552_s13 = sld [smem:[#allocation34_spill]] }
0x3e4d   : > { %8073 = vpow2.f32 %v5776_v40 }
0x3e5a   : > { %v8074_v62 = vpop.eup %8073 }
0x3e5b   : > { %v5778_v63 = vsel %vm1283_vm2, %v8074_v62, 0.0 }
0x3e5c   : > { %5779 = vadd.xlane.f32.xlu0 %v5778_v63 }
0x3ebb   : > { %v5889_v2 = vpop.xlane.xlu1 %5888 }
0x3ebc   : > { %v5890_v4 = vsub.f32 %v5886_v58, %v5889_v2 }
0x3ebe   : > { %v5891_v5 = vmul.f32 1.442695, %v5890_v4 }
0x3ebf   : > { %v5786_v7 = vpop.permute.xlu1 %5785 }
0x3ec0   : > { %8075 = vpow2.f32 %v5891_v5  ;;  %v5791_v8 = vsel %vm1355_vm4, %v5786_v7, 0  ;;  %v7001_v7 = vld [vmem:[%s9538_s10 + $0x18] sm:$0xf] }
0x3ec1   : > { %7751 = vmatpush3.bf16.msra.mxu0 %v5791_v8  ;;  %v6157_v8 = vsel %vm1355_vm4, %v7001_v7, 0 }
0x3ec2   : > { %7762 = vmatprep.subr.bf16.mxu0 %v8193_v1 }
0x3ec3   : > { %v6043_v36 = vpop.permute.xlu1 %6042 }
0x3ec4   : > { %v6048_v39 = vsel %vm1283_vm2, %v6043_v36, 0  ;;  %v7002_v36 = vld [vmem:[%s9538_s10 + $0x1c] sm:$0xf] }
0x3ec7   : > { %v6041_v42 = vpop.permute.xlu1 %6040 }
0x3ecd   : > { %v8076_v10 = vpop.eup %8075 }
0x3ece   : > { %v5893_v9 = vsel %vm1283_vm2, %v8076_v10, 0.0 }
0x3ecf   : > { %5894 = vadd.xlane.f32.xlu0 %v5893_v9 }
0x3ee5   : > { %v5780_v11 = vpop.xlane.xlu0 %5779  ;;  %5899 = vrot.lane.b32.xlu0 %v9192_v26, %s9515_s5  ;;  %s9551_s5 = sld [smem:[#allocation33_spill]] }
0x3ee6   : > { %8077 = vrcp.f32 %v5780_v11 }
0x3ef3   : > { %v8078_v13 = vpop.eup %8077 }
0x3ef4   : > { %v5782_v14 = vmul.f32 %v8078_v13, %v8074_v62 }
0x3ef6   : > { %v5783_v12 = vpack.c.bf16 %v5782_v14, %v5782_v14 }
0x3ef8   : > { %7753 = vmatmul.mubr.msk.bf16.vlgmr.msra.gmra.mxu0 %vm1283_vm2, %v5783_v12 }
0x3ef9   : > { %7764 = vmatprep.mubr.msk.bf16.mxu0 %vm8194_vm0, %v8193_v1 }
0x3f58   : > { %v5895_v17 = vpop.xlane.xlu0 %5894 }
0x3f59   : > { %8079 = vrcp.f32 %v5895_v17 }
0x3f5c   : > { %v5900_v18 = vpop.permute.xlu0 %5899 }
0x3f5d   : > { %v5905_v19 = vsel %vm1355_vm4, %v5900_v18, 0 }
0x3f5e   : > { %7763 = vmatpush3.bf16.msra.mxu0 %v5905_v19 }
0x3f5f   : > { %7774 = vmatprep.subr.bf16.mxu0 %v8193_v1 }
0x3f66   : > { %v8080_v20 = vpop.eup %8079 }
0x3f67   : > { %v5897_v50 = vmul.f32 %v8080_v20, %v8076_v10 }
0x3f69   : > { %v5898_v28 = vpack.c.bf16 %v5897_v50, %v5897_v50 }
0x3f6b   : > { %7765 = vmatmul.mubr.msk.bf16.vlgmr.msra.gmra.mxu0 %vm1283_vm2, %v5898_v28 }
0x3f6c   : > { %7775 = vmatpush3.bf16.msra.mxu0 %v5998_v29  ;;  %7776 = vmatprep.mubr.msk.bf16.mxu0 %vm8194_vm0, %v8193_v1 }
0x3f6d   : > { %7786 = vmatprep.subr.bf16.mxu0 %v8193_v1 }
0x3fb8   : > { %v5827_v24 = vpop.f32.mrf.mxu0 }
0x3fb9   : > { %v5833_v30 = vpack.c.bf16 %v5827_v24, %v5827_v24 }
0x3fba   : > { %v7754_v32 = vpop.f32.mrf.mxu0 }
0x3fbb   : > { %7777 = vmatmul.mubr.msk.bf16.vlgmr.msra.gmra.mxu0 %vm1283_vm2, %v5833_v30 }
0x3fbc   : > { %v5830_v34 = vpop.f32.mrf.mxu0  ;;  %7788 = vmatprep.mubr.msk.bf16.mxu0 %vm8194_vm0, %v8193_v1 }
0x3fbe   : > { %v7755_v35 = vpop.f32.mrf.mxu0 }
0x402b   : > { %v5941_v37 = vpop.f32.mrf.mxu0 }
0x402c   : > { %v5947_v31 = vpack.c.bf16 %v5941_v37, %v5941_v37  ;;  %v6317_v37 = vsel %vm1355_vm4, %v7002_v36, 0 }
0x402d   : > { %v7766_v0 = vpop.f32.mrf.mxu0 }
0x402e   : > { %7771 = vmatmul.mubr.msk.bf16.vlgmr.msra.gmra.mxu1 %vm1283_vm2, %v5947_v31 }
0x402f   : > { %7781 = vmatpush3.bf16.xpose.msra.mxu1 %v6048_v39  ;;  %v5944_v3 = vpop.f32.mrf.mxu0  ;;  %7782 = vmatprep.mubr.msk.bf16.mxu1 %vm8194_vm0, %v8193_v1 }
0x4030   : > { %7792 = vmatprep.subr.bf16.mxu1 %v8193_v1 }
0x4031   : > { %v7767_v41 = vpop.f32.mrf.mxu0 }
0x4036   : > { %7783 = vmatmul.mubr.msk.bf16.vlgmr.msra.gmra.mxu1 %vm1283_vm2, %v6041_v42 }
0x4037   : > { %7794 = vmatprep.mubr.msk.bf16.mxu1 %vm8194_vm0, %v8193_v1  ;;  %7793 = vmatpush3.bf16.msra.mxu1 %v6157_v8 }
0x4038   : > { %7804 = vmatprep.subr.bf16.mxu1 %v8193_v1 }
0x407b   : > { %v9267_v43 = vpop.f32.mrf.mxu0 }
0x407d   : > { %v7778_v44 = vpop.f32.mrf.mxu0 }
0x407f   : > { %v6037_v46 = vpop.f32.mrf.mxu0 }
0x4081   : > { %v7779_v47 = vpop.f32.mrf.mxu0 }
0x40ee   : > { %v9269_v48 = vpop.f32.mrf.mxu1 }
0x40f0   : > { %v7772_v38 = vpop.f32.mrf.mxu1 }
0x40f1   : > { %v7016_v38 = vld [vmem:[%s9540_s7 + $0x1] ss:$0 sm:$0xff] }
0x40f2   : > { %v5991_v49 = vpop.f32.mrf.mxu1 }
0x40f4   : > { %v7773_v21 = vpop.f32.mrf.mxu1 }
0x40f6   : > { %v6084_v51 = vpop.f32.mrf.mxu1 }
0x40f7   : > { %v6090_v52 = vmul.f32 0.35355338, %v6084_v51 }
0x40f8   : > { %v7784_v53 = vpop.f32.mrf.mxu1 }
0x40f9   : > { %v6091_v54 = vadd.f32 %v6090_v52, %v8505_v23 }
0x40fa   : > { %v6087_v55 = vpop.f32.mrf.mxu1 }
0x40fb   : > { %v6092_v56 = vsel %vm1283_vm2, %v6091_v54, -inf }
0x40fc   : > { %6093 = vmax.xlane.f32.xlu0 %v6092_v56  ;;  %v7785_v25 = vpop.f32.mrf.mxu1 }
0x4112   : > { %6104 = vrot.lane.b32.xlu0 %v9192_v26, %s9520_s21  ;;  %s9553_s21 = smov %s9546_s22 }
0x4116   : > { %6200 = vrot.lane.b32.xlu0 %v9213_v45, %s9522_s2 }
0x4185   : > { %v6094_v57 = vpop.xlane.xlu0 %6093 }
0x4186   : > { %v6095_v58 = vsub.f32 %v6091_v54, %v6094_v57 }
0x4188   : > { %v6096_v59 = vmul.f32 1.442695, %v6095_v58 }
0x4189   : > { %v6105_v6 = vpop.permute.xlu0 %6104 }
0x418a   : > { %8081 = vpow2.f32 %v6096_v59  ;;  %v6110_v60 = vsel %vm1355_vm4, %v6105_v6, 0 }
0x418b   : > { %7787 = vmatpush3.bf16.msra.mxu0 %v6110_v60  ;;  %v7969_v60 = vld [vmem:[%s9542_s17 + $0x18] sm:$0xff]  }
0x418c   : > { %7798 = vmatprep.subr.bf16.mxu0 %v8193_v1 }
0x418d   : > { %v6201_v5 = vpop.permute.xlu0 %6200 }
0x4197   : > { %v8082_v61 = vpop.eup %8081 }
0x4198   : > { %v6098_v27 = vsel %vm1283_vm2, %v8082_v61, 0.0 }
0x4199   : > { %6099 = vadd.xlane.f32.xlu1 %v6098_v27  ;;  %v7972_v27 = vld [vmem:[%s9543_s0 + $0x30] sm:$0xff]  }
0x41aa   : > { %6202 = vrot.lane.b32.xlu1 %v9192_v26, %s9522_s2  ;;  %s9557_s2 = sld [smem:[#allocation47_spill]] }
0x41b0   : > { %s7054_s22 = sshll.u32 %s9557_s2, 7 }
0x4222   : > { %v6100_v40 = vpop.xlane.xlu1 %6099 }
0x4223   : > { %8083 = vrcp.f32 %v6100_v40 }
0x4226   : > { %v6203_v63 = vpop.permute.xlu1 %6202 }
0x4227   : > { %v6208_v4 = vsel %vm1283_vm2, %v6203_v63, 0 }
0x4230   : > { %v8084_v45 = vpop.eup %8083 }
0x4231   : > { %v6102_v62 = vmul.f32 %v8084_v45, %v8082_v61  ;;  %v7970_v61 = vld [vmem:[%s9542_s17 + $0x10] sm:$0xff]  }
0x4233   : > { %v6103_v2 = vpack.c.bf16 %v6102_v62, %v6102_v62 }
0x4235   : > { %7789 = vmatmul.mubr.msk.bf16.vlgmr.msra.gmra.mxu0 %vm1283_vm2, %v6103_v2  ;;  %v7019_v2 = vld [vmem:[%s9551_s5 + $0x1] ss:$0 sm:$0xff]  ;;  %s9349_s5 = scalar_lea.hbm %s9558_s28, %s7054_s22 }
0x4236   : > { %7799 = vmatpush3.bf16.xpose.msra.mxu0 %v6208_v4  ;;  %7800 = vmatprep.mubr.msk.bf16.mxu0 %vm8194_vm0, %v8193_v1 }
0x4237   : > { %7810 = vmatprep.subr.bf16.mxu0 %v8193_v1 }
0x423d   : > { %7801 = vmatmul.mubr.msk.bf16.vlgmr.msra.gmra.mxu0 %vm1283_vm2, %v6201_v5  ;;  %v7020_v5 = vld [vmem:[%s9552_s13 + $0x1] ss:$0 sm:$0xff] }
0x423e   : > { %7812 = vmatprep.mubr.msk.bf16.mxu0 %vm8194_vm0, %v8193_v1  ;;  %7811 = vmatpush3.bf16.msra.mxu0 %v6317_v37 }
0x423f   : > { %7824 = vmatprep.subr.bf16.mxu0 %v8193_v1 }
0x42f5   : > { %v6146_v10 = vpop.f32.mrf.mxu0 }
0x42f6   : > { %v6152_v9 = vpack.c.bf16 %v6146_v10, %v6146_v10 }
0x42f7   : > { %v7790_v11 = vpop.f32.mrf.mxu0 }
0x42f8   : > { %7795 = vmatmul.mubr.msk.bf16.vlgmr.msra.gmra.mxu1 %vm1283_vm2, %v6152_v9  ;;  %v7973_v9 = vld [vmem:[%s9543_s0 + $0x28] sm:$0xff]   ;;  %v7974_v11 = vld [vmem:[%s9543_s0 + $0x20] sm:$0xff]  }
0x42f9   : > { %v6149_v13 = vpop.f32.mrf.mxu0  ;;  %7806 = vmatprep.mubr.msk.bf16.mxu1 %vm8194_vm0, %v8193_v1 }
0x42fa   : > { %v7026_v13 = vld [vmem:[%s9553_s21 + $0x1] ss:$0 sm:$0xff] }
0x42fb   : > { %v7791_v14 = vpop.f32.mrf.mxu0 }
0x42fd   : > { %v6244_v12 = vpop.f32.mrf.mxu0 }
0x42fe   : > { %v6250_v15 = vmul.f32 0.35355338, %v6244_v12 }
0x42ff   : > { %v7802_v16 = vpop.f32.mrf.mxu0 }
0x4300   : > { %v6251_v17 = vadd.f32 %v6250_v15, %v8505_v23  ;;  %v6035_v23 = vadd.f32 %v9267_v43, %v9269_v48 }
0x4301   : > { %v6247_v18 = vpop.f32.mrf.mxu0 }
0x4302   : > { %v6252_v19 = vsel %vm1283_vm2, %v6251_v17, -inf }
0x4303   : > { %6253 = vmax.xlane.f32.xlu1 %v6252_v19  ;;  %v7803_v20 = vpop.f32.mrf.mxu0 }
0x4304   : > { %v7039_v20 = vld [vmem:[%s8391_s9 + $0x1] ss:$0 sm:$0xff] }
0x438c   : > { %v6254_v22 = vpop.xlane.xlu1 %6253 }
0x438d   : > { %v6255_v50 = vsub.f32 %v6251_v17, %v6254_v22 }
0x438f   : > { %v6256_v28 = vmul.f32 1.442695, %v6255_v50 }
0x4391   : > { %8085 = vpow2.f32 %v6256_v28 }
0x439e   : > { %v8086_v29 = vpop.eup %8085 }
0x439f   : > { %v6258_v24 = vsel %vm1283_vm2, %v8086_v29, 0.0 }
0x43a0   : > { %6259 = vadd.xlane.f32.xlu0 %v6258_v24 }
0x43b6   : > { %6264 = vrot.lane.b32.xlu0 %v9192_v26, %s9523_s18  ;;  %s9555_s18 = sld [smem:[#allocation44_spill]] }
0x43b8   : > { %v6193_v30 = vpop.f32.mrf.mxu1 }
0x43b9   : > { %v6199_v32 = vadd.f32 %v6193_v30, %v6035_v23 }
0x43ba   : > { %v7796_v34 = vpop.f32.mrf.mxu1 }
0x43bc   : > { %v6196_v35 = vpop.f32.mrf.mxu1  ;;  %s1180_s11 = sand.u32 1, %s9555_s18   ;;  %s8207_s18 = smov [#allocation2]  }
0x43bd   : > { %s6802_s6 = sshll.u32 %s1180_s11, 3  ;;  %s6655_s13 = scalar_lea.sflag [#allocation3], %s1180_s11 }
0x43be   : > { %v7797_v31 = vpop.f32.mrf.mxu1  ;;  %s1182_s16 = scalar_lea.vmem [#allocation2], %s6802_s6 }
0x43bf   : > { %v7975_v31 = vld [vmem:[%s9554_s25 + $0x8] sm:$0xff]   ;;  %s6668_s15 = sshll.u32 %s1182_s16, 4  ;;  %s9351_s15 = int_to_ptr.vmem [resolvable:$true] %s6668_s15 }
0x43c0   : > { %s8093_s21 = scalar_lea.vmem %s9351_s15, 128 }
0x43c1   : > { %p8094_p11 = scmp.ne.s32.totalorder %s9351_s15, %s8093_s21 }
0x43c3   : > { %p8095_p12 = pnand %p8094_p11, %p8446_p5 }
0x43c5   : > { %p8096_p13 = pneg %p8095_p12 }
0x4429   : > { %v6260_v0 = vpop.xlane.xlu0 %6259 }
0x442a   : > { %8087 = vrcp.f32 %v6260_v0  ;;  %v7976_v0 = vld [vmem:[%s9554_s25] sm:$0xff]  }
0x442d   : > { %v6265_v39 = vpop.permute.xlu0 %6264 }
0x442e   : > { %v6270_v26 = vsel %vm1355_vm4, %v6265_v39, 0 }
0x442f   : > { %7805 = vmatpush3.bf16.msra.mxu1 %v6270_v26 }
0x4430   : > { %7816 = vmatprep.subr.bf16.mxu1 %v8193_v1 }
0x4437   : > { %v8088_v3 = vpop.eup %8087 }
0x4438   : > { %v6262_v41 = vmul.f32 %v8088_v3, %v8086_v29 }
0x443a   : > { %v6263_v42 = vpack.c.bf16 %v6262_v41, %v6262_v41 }
0x443c   : > { %7807 = vmatmul.mubr.msk.bf16.vlgmr.msra.gmra.mxu1 %vm1283_vm2, %v6263_v42  ;;  %v7047_v42 = vld [vmem:[%s9548_s4 + $0x1] ss:$0 sm:$0xff] }
0x443d   : > { %7820 = vmatprep.mubr.msk.bf16.mxu1 %vm8194_vm0, %v8193_v1  ;;  %7817 = vmatpush3.bf16.msra.mxu1 %v7969_v60 }
0x443e   : > { %7818 = vmatprep.subr.bf16.mxu1 %v8193_v1 }
0x4441   : > { %7819 = vmatpush3.bf16.msra.mxu1 %v7970_v61 }
0x4442   : > { %7836 = vmatprep.subr.bf16.mxu1 %v8193_v1 }
0x44fc   : > { %v6306_v43 = vpop.f32.mrf.mxu1 }
0x44fd   : > { %v6312_v44 = vpack.c.bf16 %v6306_v43, %v6306_v43 }
0x44fe   : > { %v7808_v46 = vpop.f32.mrf.mxu1 }
0x44ff   : > { %7813 = vmatmul.mubr.msk.bf16.vlgmr.msra.gmra.mxu0 %vm1283_vm2, %v6312_v44  ;;  %v7048_v44 = vld [vmem:[%s9550_s27 + $0x1] ss:$0 sm:$0xff] }
0x4500   : > { %v6309_v47 = vpop.f32.mrf.mxu1  ;;  %7832 = vmatprep.mubr.msk.bf16.mxu0 %vm8194_vm0, %v8193_v1 }
0x4502   : > { %v7809_v48 = vpop.f32.mrf.mxu1 }
0x45bf   : > { %v6353_v49 = vpop.f32.mrf.mxu0 }
0x45c0   : > { %v6359_v21 = vadd.f32 %v6353_v49, %v6199_v32 }
0x45c1   : > { %v7814_v51 = vpop.f32.mrf.mxu0 }
0x45c2   : > { %v6366_v52 = vadd.f32 %v7016_v38, %v6359_v21 }
0x45c3   : > { %v6356_v53 = vpop.f32.mrf.mxu0 }
0x45c4   : > { %v6367_v54 = vadd.f32 %v6366_v52, %v9202_v33  ;;  %v7971_v33 = vld [vmem:[%s9543_s0 + $0x38] sm:$0xff]  }
0x45c5   : > { %v7815_v55 = vpop.f32.mrf.mxu0  ;;  %7825 = vmatpush3.bf16.msra.mxu0 %v7971_v33 }
0x45c6   : > { %v6372_v56 = vsel %vm1230_vm1, %v6367_v54, 0.0  ;;  %7826 = vmatprep.subr.bf16.mxu0 %v8193_v1 }
0x45c7   : > { %6373 = vadd.xlane.f32.xlu1 %v6372_v56 }
0x45c9   : > { %7827 = vmatpush3.bf16.msra.mxu0 %v7972_v27 }
0x45ca   : > { %7828 = vmatprep.subr.bf16.mxu0 %v8193_v1 }
0x45cd   : > { %7829 = vmatpush3.bf16.msra.mxu0 %v7973_v9 }
0x45ce   : > { %7830 = vmatprep.subr.bf16.mxu0 %v8193_v1 }
0x45d1   : > { %7831 = vmatpush3.bf16.msra.mxu0 %v7974_v11 }
0x4650   : > { %v6374_v25 = vpop.xlane.xlu1 %6373 }
0x4651   : > { %v6375_v57 = vmul.f32 0.03125, %v6374_v25 }
0x4653   : > { %v6376_v58 = vsub.f32 %v6367_v54, %v6375_v57 }
0x4655   : > { %v6377_v59 = vmul.f32 %v6376_v58, %v6376_v58 }
0x4657   : > { %v6378_v6 = vsel %vm1230_vm1, %v6377_v59, 0.0 }
0x4658   : > { %6379 = vadd.xlane.f32.xlu1 %v6378_v6 }
0x46e1   : > { %v6380_v40 = vpop.xlane.xlu1 %6379 }
0x46e2   : > { %v6381_v45 = vmul.f32 0.03125, %v6380_v40 }
0x46e4   : > { %v6382_v62 = vadd.f32 1e-05, %v6381_v45 }
0x46e6   : > { %8089 = vrsqrt.f32 %v6382_v62 }
0x46f3   : > { %v8090_v63 = vpop.eup %8089 }
0x46f4   : > { %v6384_v4 = vmul.f32 %v8090_v63, %v6376_v58 }
0x46f6   : > { %v6391_v7 = vmul.f32 %v7019_v2, %v6384_v4 }
0x46f8   : > { %v6398_v8 = vadd.f32 %v7020_v5, %v6391_v7 }
0x46fa   : > { %v6404_v10 = vpack.c.bf16 %v6398_v8, %v6398_v8 }
0x46fc   : > { %7821 = vmatmul.mubr.msk.bf16.vlgmr.msra.gmra.mxu1 %vm1230_vm1, %v6404_v10 }
0x46fd   : > { %7840 = vmatprep.mubr.msk.bf16.mxu1 %vm8194_vm0, %v8193_v1  ;;  %7837 = vmatpush3.bf16.msra.mxu1 %v7975_v31 }
0x46fe   : > { %7838 = vmatprep.subr.bf16.mxu1 %v8193_v1  ;;  %v7049_v1 = vld [vmem:[%s9556_s26] ss:$0 sm:$0xff]  ;;  %s8097_s26 = sshll.u32 %s8207_s18, 4  ;;  %s8098_s26 = int_to_ptr.vmem [resolvable:$false] %s8097_s26 }
0x46ff   : > { %s8099_s2 = scalar_lea.vmem %s8098_s26, 256  ;;  %p8100_p0 = scmp.lt.s32.totalorder %s9351_s15, %s8098_s26 }
0x4700   : > { %p8101_p1 = scmp.lt.s32.totalorder %s8099_s2, %s8093_s21 }
0x4701   : > { %7839 = vmatpush3.bf16.msra.mxu1 %v7976_v0 }
0x4702   : > { %p8102_p2 = por %p8101_p1, %p8100_p0 }
0x4704   : > { %p8103_p3 = pnand %p8102_p2, %p8096_p13 }
0x47bc   : > { %v6462_v14 = vpop.f32.mrf.mxu1 }
0x47bd   : > { %v6463_v12 = vadd.f32 %v7026_v13, %v6462_v14 }
0x47be   : > { %v7822_v15 = vpop.f32.mrf.mxu1 }
0x47bf   : > { %v6468_v16 = vmax.f32 %v6463_v12, 0.0 }
0x47c0   : > { %v6465_v17 = vpop.f32.mrf.mxu1 }
0x47c1   : > { %v6478_v18 = vpack.c.bf16 %v6468_v16, %v6468_v16 }
0x47c2   : > { %v7823_v19 = vpop.f32.mrf.mxu1 }
0x47c3   : > { %7833 = vmatmul.mubr.msk.bf16.vlgmr.msra.gmra.mxu0 %vm2071_vm5, %v6478_v18 }
0x4883   : > { %v6548_v22 = vpop.f32.mrf.mxu0 }
0x4884   : > { %v6549_v50 = vadd.f32 %v7039_v20, %v6548_v22 }
0x4885   : > { %v7834_v28 = vpop.f32.mrf.mxu0 }
0x4886   : > { %v6554_v29 = vadd.f32 %v6549_v50, %v6398_v8 }
0x4887   : > { %v6551_v24 = vpop.f32.mrf.mxu0 }
0x4888   : > { %v6559_v23 = vsel %vm1230_vm1, %v6554_v29, 0.0 }
0x4889   : > { %6560 = vadd.xlane.f32.xlu1 %v6559_v23  ;;  %v7835_v30 = vpop.f32.mrf.mxu0 }
0x4912   : > { %v6561_v32 = vpop.xlane.xlu1 %6560 }
0x4913   : > { %v6562_v34 = vmul.f32 0.03125, %v6561_v32 }
0x4915   : > { %v6563_v35 = vsub.f32 %v6554_v29, %v6562_v34 }
0x4917   : > { %v6564_v36 = vmul.f32 %v6563_v35, %v6563_v35 }
0x4919   : > { %v6565_v37 = vsel %vm1230_vm1, %v6564_v36, 0.0 }
0x491a   : > { %6566 = vadd.xlane.f32.xlu1 %v6565_v37 }
0x49a3   : > { %v6567_v39 = vpop.xlane.xlu1 %6566 }
0x49a4   : > { %v6568_v26 = vmul.f32 0.03125, %v6567_v39 }
0x49a6   : > { %v6569_v3 = vadd.f32 1e-05, %v6568_v26 }
0x49a8   : > { %8091 = vrsqrt.f32 %v6569_v3 }
0x49b5   : > { %v8092_v41 = vpop.eup %8091 }
0x49b6   : > { %v6571_v43 = vmul.f32 %v8092_v41, %v6563_v35 }
0x49b8   : > { %v6578_v46 = vmul.f32 %v7047_v42, %v6571_v43 }
0x49ba   : > { %v6585_v47 = vadd.f32 %v7048_v44, %v6578_v46 }
0x49bc   : > { %v6590_v48 = vpack.c.bf16 %v6585_v47, %v6585_v47 }
0x49be   : > { %7841 = vmatmul.mubr.msk.bf16.vlgmr.msra.gmra.mxu1 %vm1230_vm1, %v6590_v48 }
0x4a7e   : > { %v6647_v38 = vpop.f32.mrf.mxu1 }
0x4a7f   : > { %v6648_v49 = vadd.f32 %v7049_v1, %v6647_v38 }
0x4a80   : > { %v7842_v21 = vpop.f32.mrf.mxu1 }
0x4a81   : > { %6653 = vst [vmem:[%s1182_s16] sm:$0xff] %v6648_v49 }
0x4a82   : > { %v6650_v51 = vpop.f32.mrf.mxu1 }
0x4a83   : > { %8106 = shalt.err (!%p8103_p3)
}
0x4a84   : > { %s8107_s11 = scalar_lea.hbm %s9349_s5, 128  ;;  %s8111_s6 = scalar_lea.hbm %s9558_s28, 256 }
0x4a85   : > { %p8108_p4 = scmp.ne.s32.totalorder %s9349_s5, %s8107_s11  ;;  %p8112_p9 = scmp.lt.s32.totalorder %s9349_s5, %s9558_s28 }
0x4a86   : > { %p8113_p10 = scmp.lt.s32.totalorder %s8111_s6, %s8107_s11 }
0x4a87   : > { %p8109_p7 = pnand %p8108_p4, %p8446_p5 }
0x4a88   : > { %p8114_p11 = por %p8113_p10, %p8112_p9 }
0x4a89   : > { %p8110_p8 = pneg %p8109_p7 }
0x4a8b   : > { %p8115_p12 = pnand %p8114_p11, %p8110_p8 }
0x4a8d   : > { %8118 = shalt.err (!%p8115_p12)
}
0x4a8e   : > { %7844 = dma.vmem_to_hbm [thread:$0]  (%p8446_p5), %s9351_s15, 128, %s9349_s5, %s6655_s13   ;;  %v7843_v52 = vpop.f32.mrf.mxu1 }
0x4a8f PF: > { %s9560_s22 = sld [smem:[#allocation46_spill]] }
0x4a90   : > { %s9561_s16 = sld [smem:[#allocation43_spill]] }
0x4a95   : > { %p7850_p13 = scmp.ge.s32.totalorder %s9560_s22, 2 }
0x4a96   : > { %s6680_s18 = sand.u32 1, %s9561_s16  }
0x4a97   : > { %p7847_p0 = pnand %p7850_p13, %p8450_p6  ;;  %s6681_s26 = scalar_lea.sflag [#allocation3], %s6680_s18 }
0x4a99   : > { %p7848_p1 = pneg %p7847_p0 }
0x4a9b   : > { %8136 = dma.done.wait (%p7848_p1), %s6681_s26, 128  }
0x4a9c   : > { %8138 = vsyncadd (%p7848_p1), %s6681_s26, 4294967168  ;;  %s9563_s22 = sld [smem:[#allocation48_spill]] }
0x4a9d   : > { %s9564_s15 = sld [smem:[#allocation44_spill]] }
0x4a9e   : > { %s9565_s16 = sld [smem:[#allocation45_spill]] }
0x4a9f   : > { %s9566_s18 = sld [smem:[#allocation49_spill]] }
0x4aa2   : > { %p87_p2 = scmp.ge.s32.totalorder %s9563_s22, 4  }
0x4aa4   :  { %89 = sbr.rel (!%p87_p2) target bundleno = 94 (0x5e), region = 286 }
0x4aa9   :  { %6686 = vsyncpa [#allocation3], 1 }
0x4aaa   :  { %6688 = vsyncpa [#allocation3 + $0x1], 1 }

</bundles_post_ra>
